<compile_context>
chip_gen: v5e
topology: v5e:2x2
jax: 0.10.0
libtpu: 0.0.40
codegen_flags: <defaults>
</compile_context>

<pallas_src>
import functools

import jax
import jax.numpy as jnp
from jax.experimental import pallas as pl
from jax.experimental.pallas import tpu as pltpu

MATMUL_DTYPE = jnp.bfloat16     # MXU operand dtype (f32 accumulation)
_EPS = 1e-5


def _round_up(x, m):
    return (x + m - 1) // m * m


def _compiler_params(n_axes):
    return pltpu.CompilerParams(
        dimension_semantics=("parallel",) * n_axes,
        vmem_limit_bytes=48 * 1024 * 1024,
    )


# --------------------------------------------------------------------------- #
# Kernels
# --------------------------------------------------------------------------- #
def _pointwise_kernel(x_ref, w_ref, scale_ref, bias_ref, y_ref, stats_ref, *, pre_act):
    """[optional folded-BN + ReLU] -> 1x1 conv (token matmul) -> partial BN stats."""
    x = x_ref[...].astype(jnp.float32)                      # (TM, Cp)
    if pre_act:
        x = jnp.maximum(x * scale_ref[...] + bias_ref[...], 0.0)
    y = jnp.dot(x.astype(MATMUL_DTYPE), w_ref[...],
                preferred_element_type=jnp.float32)         # (TM, Cp) f32
    y_ref[...] = y.astype(y_ref.dtype)
    s = jnp.sum(y, axis=0, keepdims=True)                   # (1, Cp)
    ss = jnp.sum(y * y, axis=0, keepdims=True)              # (1, Cp)
    stats_ref[...] = jnp.concatenate([s, ss], axis=0)[None]  # (1, 2, Cp)


def _conv3x3_kernel(x_ref, w_ref, scale_ref, bias_ref, y_ref, stats_ref, hp_ref,
                    *, H, W):
    """folded-BN + ReLU -> 3x3 conv (pad=1) via 3 fused-K matmuls -> partial stats.

    x_ref:   (H*W, Cp) tokens of one image
    w_ref:   (3, 3*Cp, Cp) per-row weights, rows ordered [v=0 chans, v=1, v=2]
    hp_ref:  (H+2, W+2, Cp) f32 VMEM scratch (zero halo, interior = activation)
    """
    Cp = x_ref.shape[-1]
    h = jnp.maximum(x_ref[...].astype(jnp.float32) * scale_ref[...] + bias_ref[...],
                    0.0)                                    # (H*W, Cp)

    # Zero only the halo border strips (the interior is fully overwritten below).
    zrow = jnp.zeros((1, W + 2, Cp), jnp.float32)
    hp_ref[0:1, :, :] = zrow
    hp_ref[H + 1:H + 2, :, :] = zrow
    zcol = jnp.zeros((H, 1, Cp), jnp.float32)
    hp_ref[1:H + 1, 0:1, :] = zcol
    hp_ref[1:H + 1, W + 1:W + 2, :] = zcol
    hp_ref[1:H + 1, 1:W + 1, :] = h.reshape(H, W, Cp)
    hp = hp_ref[...]                                        # (H+2, W+2, Cp)

    w = w_ref[...]                                          # (3, 3*Cp, Cp) bf16
    acc = None
    for u in range(3):                                      # kernel row
        slab = hp[u:u + H]                                  # (H, W+2, Cp)
        tap = jnp.concatenate(
            [slab[:, 0:W, :], slab[:, 1:W + 1, :], slab[:, 2:W + 2, :]],
            axis=-1)                                        # (H, W, 3*Cp)
        tap = tap.reshape(H * W, 3 * Cp).astype(MATMUL_DTYPE)
        part = jnp.dot(tap, w[u], preferred_element_type=jnp.float32)
        acc = part if acc is None else acc + part           # (H*W, Cp) f32

    y_ref[...] = acc.astype(y_ref.dtype)
    s = jnp.sum(acc, axis=0, keepdims=True)
    ss = jnp.sum(acc * acc, axis=0, keepdims=True)
    stats_ref[...] = jnp.concatenate([s, ss], axis=0)[None]


def _residual_kernel(y_ref, x_ref, scale_ref, bias_ref, o_ref):
    """folded-BN3 + identity residual + ReLU."""
    y = y_ref[...].astype(jnp.float32) * scale_ref[...] + bias_ref[...]
    o_ref[...] = jnp.maximum(y + x_ref[...].astype(jnp.float32), 0.0).astype(o_ref.dtype)


# --------------------------------------------------------------------------- #
# pallas_call wrappers
# --------------------------------------------------------------------------- #
def _run_pointwise(x_tok, w, scale, bias, tm, pre_act):
    T, Cp = x_tok.shape
    grid = (T // tm,)
    kernel = functools.partial(_pointwise_kernel, pre_act=pre_act)
    y, stats = pl.pallas_call(
        kernel,
        grid=grid,
        in_specs=[
            pl.BlockSpec((tm, Cp), lambda i: (i, 0)),
            pl.BlockSpec((Cp, Cp), lambda i: (0, 0)),
            pl.BlockSpec((1, Cp), lambda i: (0, 0)),
            pl.BlockSpec((1, Cp), lambda i: (0, 0)),
        ],
        out_specs=[
            pl.BlockSpec((tm, Cp), lambda i: (i, 0)),
            pl.BlockSpec((1, 2, Cp), lambda i: (i, 0, 0)),
        ],
        out_shape=[
            jax.ShapeDtypeStruct((T, Cp), MATMUL_DTYPE),
            jax.ShapeDtypeStruct((grid[0], 2, Cp), jnp.float32),
        ],
        compiler_params=_compiler_params(1),
    )(x_tok, w, scale, bias)
    return y, stats


def _run_conv3x3(x_tok, w2, scale, bias, N, H, W):
    Cp = x_tok.shape[-1]
    HW = H * W
    kernel = functools.partial(_conv3x3_kernel, H=H, W=W)
    y, stats = pl.pallas_call(
        kernel,
        grid=(N,),
        in_specs=[
            pl.BlockSpec((HW, Cp), lambda n: (n, 0)),
            pl.BlockSpec((3, 3 * Cp, Cp), lambda n: (0, 0, 0)),
            pl.BlockSpec((1, Cp), lambda n: (0, 0)),
            pl.BlockSpec((1, Cp), lambda n: (0, 0)),
        ],
        out_specs=[
            pl.BlockSpec((HW, Cp), lambda n: (n, 0)),
            pl.BlockSpec((1, 2, Cp), lambda n: (n, 0, 0)),
        ],
        out_shape=[
            jax.ShapeDtypeStruct((N * HW, Cp), MATMUL_DTYPE),
            jax.ShapeDtypeStruct((N, 2, Cp), jnp.float32),
        ],
        scratch_shapes=[pltpu.VMEM((H + 2, W + 2, Cp), jnp.float32)],
        compiler_params=_compiler_params(1),
    )(x_tok, w2, scale, bias)
    return y, stats


def _run_residual(y_tok, x_tok, scale, bias, tm, out_dtype):
    T, Cp = x_tok.shape
    return pl.pallas_call(
        _residual_kernel,
        grid=(T // tm,),
        in_specs=[
            pl.BlockSpec((tm, Cp), lambda i: (i, 0)),
            pl.BlockSpec((tm, Cp), lambda i: (i, 0)),
            pl.BlockSpec((1, Cp), lambda i: (0, 0)),
            pl.BlockSpec((1, Cp), lambda i: (0, 0)),
        ],
        out_specs=pl.BlockSpec((tm, Cp), lambda i: (i, 0)),
        out_shape=jax.ShapeDtypeStruct((T, Cp), out_dtype),
        compiler_params=_compiler_params(1),
    )(y_tok, x_tok, scale, bias)


# --------------------------------------------------------------------------- #
# Public wrapper (takes PyTorch OIHW weights)
# --------------------------------------------------------------------------- #
def pspnet_block(x_nchw, w1_t, w2_t, w3_t, gammas, betas, eps=_EPS):
    """x_nchw: (N, C, H, W).  w1_t/w3_t: (C, C, 1, 1), w2_t: (C, C, 3, 3) torch
    layout.  gammas/betas: (3, C) for bn1/bn2/bn3.  Returns (N, C, H, W)."""
    N, C, H, W = x_nchw.shape
    assert w1_t.shape[0] == w1_t.shape[1] == C, \
        "identity residual requires in_channels == out_channels (downsample=None)"
    assert (H * W) % 8 == 0 or N == 1, "per-image token block must be sublane aligned"

    Cp = _round_up(C, 128)          # lane-dense channel padding
    pad_c = Cp - C
    NHW = N * H * W

    # token tile for the 1x1 / residual stages: biggest power-of-two tile that
    # divides NHW, capped at 1024 tokens (keeps VMEM modest, amortizes per-step cost)
    tm = min(1024, NHW)
    while tm > 8 and NHW % tm != 0:
        tm //= 2
    if NHW % tm != 0:
        tm = NHW

    # NCHW -> channel-last tokens, zero-padded channels
    x_tok = jnp.transpose(x_nchw, (0, 2, 3, 1)).reshape(NHW, C)
    x_tok = jnp.pad(x_tok, ((0, 0), (0, pad_c))).astype(jnp.float32)

    # weights -> (in, out) matmul layout, padded, bf16 MXU operands
    w1 = jnp.pad(jnp.transpose(w1_t[:, :, 0, 0], (1, 0)),
                 ((0, pad_c), (0, pad_c))).astype(MATMUL_DTYPE)
    w3 = jnp.pad(jnp.transpose(w3_t[:, :, 0, 0], (1, 0)),
                 ((0, pad_c), (0, pad_c))).astype(MATMUL_DTYPE)
    w2 = jnp.transpose(w2_t, (2, 3, 1, 0))                        # (u, v, in, out)
    w2 = jnp.pad(w2, ((0, 0), (0, 0), (0, pad_c), (0, pad_c)))
    w2 = w2.reshape(3, 3 * Cp, Cp).astype(MATMUL_DTYPE)

    gam = jnp.pad(gammas.astype(jnp.float32), ((0, 0), (0, pad_c)))
    bet = jnp.pad(betas.astype(jnp.float32), ((0, 0), (0, pad_c)))
    ones = jnp.ones((1, Cp), jnp.float32)
    zeros = jnp.zeros((1, Cp), jnp.float32)

    def fold(stats, g, b):
        # combine per-tile partial sums -> folded BN scale/bias (training mode,
        # biased variance over all N*H*W tokens).
        s = jnp.sum(stats, axis=0)                  # (2, Cp)
        mean = s[0] / NHW
        var = s[1] / NHW - mean * mean
        scale = g * jax.lax.rsqrt(var + eps)
        bias = b - mean * scale
        return scale[None, :], bias[None, :]

    # stage 1: conv1 + stats1
    y1, st1 = _run_pointwise(x_tok, w1, ones, zeros, tm, pre_act=False)
    s1, b1 = fold(st1, gam[0], bet[0])
    # stage 2: bn1 + relu -> conv2 (3x3, pad=1) + stats2
    y2, st2 = _run_conv3x3(y1, w2, s1, b1, N, H, W)
    s2, b2 = fold(st2, gam[1], bet[1])
    # stage 3: bn2 + relu -> conv3 + stats3
    y3, st3 = _run_pointwise(y2, w3, s2, b2, tm, pre_act=True)
    s3, b3 = fold(st3, gam[2], bet[2])
    # stage 4: bn3 + identity residual + relu
    out_tok = _run_residual(y3, x_tok, s3, b3, tm, x_nchw.dtype)

    out = out_tok[:, :C].reshape(N, H, W, C)
    return jnp.transpose(out, (0, 3, 1, 2))         # NHWC -> NCHW


# --------------------------------------------------------------------------- #
# Pure-JAX reference (f32, lax convolutions, torch-shaped weights)
# --------------------------------------------------------------------------- #
def _ref_forward(x_nchw, w1_t, w2_t, w3_t, gammas, betas, eps=_EPS):
    dn = ("NCHW", "OIHW", "NCHW")

    def bn(y, g, b):
        m = y.mean(axis=(0, 2, 3), keepdims=True)
        v = ((y - m) ** 2).mean(axis=(0, 2, 3), keepdims=True)
        return (y - m) * jax.lax.rsqrt(v + eps) * g[None, :, None, None] \
            + b[None, :, None, None]

    h = jax.lax.conv_general_dilated(x_nchw, w1_t, (1, 1), "VALID",
                                     dimension_numbers=dn)
    h = jax.nn.relu(bn(h, gammas[0], betas[0]))
    h = jax.lax.conv_general_dilated(h, w2_t, (1, 1), ((1, 1), (1, 1)),
                                     dimension_numbers=dn)
    h = jax.nn.relu(bn(h, gammas[1], betas[1]))
    h = jax.lax.conv_general_dilated(h, w3_t, (1, 1), "VALID",
                                     dimension_numbers=dn)
    h = bn(h, gammas[2], betas[2])
    return jax.nn.relu(h + x_nchw)


if __name__ == "__main__":
    N, C, H, W = 2, 32, 16, 16          # in_channels == out_channels, stride=1
    key = jax.random.PRNGKey(0)
    kx, k1, k2, k3, kg, kb = jax.random.split(key, 6)

    x = jax.random.normal(kx, (N, C, H, W), jnp.float32)
    w1_t = 0.1 * jax.random.normal(k1, (C, C, 1, 1), jnp.float32)
    w2_t = 0.1 * jax.random.normal(k2, (C, C, 3, 3), jnp.float32)
    w3_t = 0.1 * jax.random.normal(k3, (C, C, 1, 1), jnp.float32)
    gammas = 1.0 + 0.1 * jax.random.normal(kg, (3, C), jnp.float32)
    betas = 0.1 * jax.random.normal(kb, (3, C), jnp.float32)

    fwd = jax.jit(pspnet_block)
    out = jax.block_until_ready(fwd(x, w1_t, w2_t, w3_t, gammas, betas))
    ref = jax.block_until_ready(_ref_forward(x, w1_t, w2_t, w3_t, gammas, betas))

    # bf16 MXU operands / bf16 intermediates -> tolerance looser than pure f32.
    if not jnp.allclose(out, ref, atol=5e-2, rtol=5e-2):
        raise AssertionError(
            "Pallas output mismatch vs JAX reference, max abs err = "
            f"{float(jnp.max(jnp.abs(out - ref)))}")
    print("KERNEL_OK")
</pallas_src>

<mosaic_0001>
module attributes {stable_mosaic.version = 11 : i64} {
  func.func @_pointwise_kernel(%arg0: i32, %arg1: memref<512x128xf32, #tpu.memory_space<vmem>>, %arg2: memref<128x128xbf16, #tpu.memory_space<vmem>>, %arg3: memref<1x128xf32, #tpu.memory_space<vmem>>, %arg4: memref<1x128xf32, #tpu.memory_space<vmem>>, %arg5: memref<512x128xbf16, #tpu.memory_space<vmem>>, %arg6: memref<1x2x128xf32, #tpu.memory_space<vmem>>) attributes {dimension_semantics = [#tpu.dimension_semantics<parallel>], iteration_bounds = array<i64: 1>, scalar_prefetch = 0 : i64, scratch_operands = 0 : i64, tpu.core_type = #tpu.core_type<tc>, window_params = [{transform_indices = @transform_0, window_bounds = array<i64: 512, 128>}, {pipeline_mode = #tpu.pipeline_mode<synchronous>, transform_indices = @transform_1, window_bounds = array<i64: 128, 128>}, {pipeline_mode = #tpu.pipeline_mode<synchronous>, transform_indices = @transform_2, window_bounds = array<i64: 1, 128>}, {pipeline_mode = #tpu.pipeline_mode<synchronous>, transform_indices = @transform_3, window_bounds = array<i64: 1, 128>}, {transform_indices = @transform_4, window_bounds = array<i64: 512, 128>}, {transform_indices = @transform_5, window_bounds = array<i64: 1, 2, 128>}]} {
    %c0 = arith.constant 0 : index
    %c0_0 = arith.constant 0 : index
    %0 = vector.load %arg1[%c0, %c0_0] : memref<512x128xf32, #tpu.memory_space<vmem>>, vector<512x128xf32>
    %1 = arith.truncf %0 : vector<512x128xf32> to vector<512x128xbf16>
    %c0_1 = arith.constant 0 : index
    %c0_2 = arith.constant 0 : index
    %2 = vector.load %arg2[%c0_1, %c0_2] : memref<128x128xbf16, #tpu.memory_space<vmem>>, vector<128x128xbf16>
    %cst = arith.constant dense<0.000000e+00> : vector<512x128xf32>
    %3 = tpu.matmul %1, %2, %cst {dimension_numbers = #tpu.dot_dimension_numbers<[1], [0], [0], [1], [0, 0, 1, 1], [], []>} : vector<512x128xbf16>, vector<128x128xbf16>, vector<512x128xf32> -> vector<512x128xf32>
    %4 = arith.truncf %3 : vector<512x128xf32> to vector<512x128xbf16>
    %c0_3 = arith.constant 0 : index
    %c0_4 = arith.constant 0 : index
    %5 = vector.load %arg5[%c0_3, %c0_4] : memref<512x128xbf16, #tpu.memory_space<vmem>>, vector<512x128xbf16>
    tpu.vector_store %arg5[%c0_3, %c0_4], %4 {strides = array<i32>} : memref<512x128xbf16, #tpu.memory_space<vmem>>, vector<512x128xbf16>,
    %cst_5 = arith.constant dense<0.000000e+00> : vector<128xf32>
    %6 = vector.multi_reduction <add>, %3, %cst_5 [0] : vector<512x128xf32> to vector<128xf32>
    %7 = vector.shape_cast %6 : vector<128xf32> to vector<1x128xf32>
    %8 = arith.mulf %3, %3 : vector<512x128xf32>
    %cst_6 = arith.constant dense<0.000000e+00> : vector<128xf32>
    %9 = vector.multi_reduction <add>, %8, %cst_6 [0] : vector<512x128xf32> to vector<128xf32>
    %10 = vector.shape_cast %9 : vector<128xf32> to vector<1x128xf32>
    %11 = tpu.concatenate %7, %10 in 0 : vector<1x128xf32>, vector<1x128xf32> -> vector<2x128xf32>
    %12 = vector.shape_cast %11 : vector<2x128xf32> to vector<1x2x128xf32>
    %c0_7 = arith.constant 0 : index
    %c0_8 = arith.constant 0 : index
    %c0_9 = arith.constant 0 : index
    %13 = vector.load %arg6[%c0_7, %c0_8, %c0_9] : memref<1x2x128xf32, #tpu.memory_space<vmem>>, vector<1x2x128xf32>
    tpu.vector_store %arg6[%c0_7, %c0_8, %c0_9], %12 {strides = array<i32>} : memref<1x2x128xf32, #tpu.memory_space<vmem>>, vector<1x2x128xf32>,
    return
  }
  func.func @transform_0(%arg0: i32) -> (i32, i32) {
    %c0_i32 = arith.constant 0 : i32
    %c0_i32_0 = arith.constant 0 : i32
    return %arg0, %c0_i32 : i32, i32
  }
  func.func @transform_1(%arg0: i32) -> (i32, i32) {
    %c0_i32 = arith.constant 0 : i32
    %c0_i32_0 = arith.constant 0 : i32
    %c0_i32_1 = arith.constant 0 : i32
    return %c0_i32, %c0_i32_0 : i32, i32
  }
  func.func @transform_2(%arg0: i32) -> (i32, i32) {
    %c0_i32 = arith.constant 0 : i32
    %c0_i32_0 = arith.constant 0 : i32
    %c0_i32_1 = arith.constant 0 : i32
    return %c0_i32, %c0_i32_0 : i32, i32
  }
  func.func @transform_3(%arg0: i32) -> (i32, i32) {
    %c0_i32 = arith.constant 0 : i32
    %c0_i32_0 = arith.constant 0 : i32
    %c0_i32_1 = arith.constant 0 : i32
    return %c0_i32, %c0_i32_0 : i32, i32
  }
  func.func @transform_4(%arg0: i32) -> (i32, i32) {
    %c0_i32 = arith.constant 0 : i32
    %c0_i32_0 = arith.constant 0 : i32
    return %arg0, %c0_i32 : i32, i32
  }
  func.func @transform_5(%arg0: i32) -> (i32, i32, i32) {
    %c0_i32 = arith.constant 0 : i32
    %c0_i32_0 = arith.constant 0 : i32
    %c0_i32_1 = arith.constant 0 : i32
    return %arg0, %c0_i32, %c0_i32_0 : i32, i32, i32
  }
}

module attributes {stable_mosaic.version = 11 : i64} {
  func.func @_conv3x3_kernel(%arg0: i32, %arg1: memref<256x128xbf16, #tpu.memory_space<vmem>>, %arg2: memref<3x384x128xbf16, #tpu.memory_space<vmem>>, %arg3: memref<1x128xf32, #tpu.memory_space<vmem>>, %arg4: memref<1x128xf32, #tpu.memory_space<vmem>>, %arg5: memref<256x128xbf16, #tpu.memory_space<vmem>>, %arg6: memref<1x2x128xf32, #tpu.memory_space<vmem>>, %arg7: memref<18x18x128xf32, #tpu.memory_space<vmem>>) attributes {dimension_semantics = [#tpu.dimension_semantics<parallel>], iteration_bounds = array<i64: 2>, scalar_prefetch = 0 : i64, scratch_operands = 1 : i64, tpu.core_type = #tpu.core_type<tc>, window_params = [{transform_indices = @transform_0, window_bounds = array<i64: 256, 128>}, {pipeline_mode = #tpu.pipeline_mode<synchronous>, transform_indices = @transform_1, window_bounds = array<i64: 3, 384, 128>}, {pipeline_mode = #tpu.pipeline_mode<synchronous>, transform_indices = @transform_2, window_bounds = array<i64: 1, 128>}, {pipeline_mode = #tpu.pipeline_mode<synchronous>, transform_indices = @transform_3, window_bounds = array<i64: 1, 128>}, {transform_indices = @transform_4, window_bounds = array<i64: 256, 128>}, {transform_indices = @transform_5, window_bounds = array<i64: 1, 2, 128>}]} {
    %c0 = arith.constant 0 : index
    %c0_0 = arith.constant 0 : index
    %0 = vector.load %arg1[%c0, %c0_0] : memref<256x128xbf16, #tpu.memory_space<vmem>>, vector<256x128xbf16>
    %1 = arith.extf %0 : vector<256x128xbf16> to vector<256x128xf32>
    %c0_1 = arith.constant 0 : index
    %c0_2 = arith.constant 0 : index
    %2 = vector.load %arg3[%c0_1, %c0_2] : memref<1x128xf32, #tpu.memory_space<vmem>>, vector<1x128xf32>
    %3 = vector.broadcast %2 : vector<1x128xf32> to vector<256x128xf32>
    %4 = arith.mulf %1, %3 : vector<256x128xf32>
    %c0_3 = arith.constant 0 : index
    %c0_4 = arith.constant 0 : index
    %5 = vector.load %arg4[%c0_3, %c0_4] : memref<1x128xf32, #tpu.memory_space<vmem>>, vector<1x128xf32>
    %6 = vector.broadcast %5 : vector<1x128xf32> to vector<256x128xf32>
    %7 = arith.addf %4, %6 : vector<256x128xf32>
    %cst = arith.constant 0.000000e+00 : f32
    %8 = vector.broadcast %cst : f32 to vector<256x128xf32>
    %9 = arith.maximumf %7, %8 : vector<256x128xf32>
    %cst_5 = arith.constant 0.000000e+00 : f32
    %10 = vector.broadcast %cst_5 : f32 to vector<1x18x128xf32>
    %c0_6 = arith.constant 0 : index
    %c0_7 = arith.constant 0 : index
    %c0_8 = arith.constant 0 : index
    %11 = vector.load %arg7[%c0_6, %c0_7, %c0_8] : memref<18x18x128xf32, #tpu.memory_space<vmem>>, vector<1x18x128xf32>
    tpu.vector_store %arg7[%c0_6, %c0_7, %c0_8], %10 {strides = array<i32>} : memref<18x18x128xf32, #tpu.memory_space<vmem>>, vector<1x18x128xf32>,
    %c17 = arith.constant 17 : index
    %c0_9 = arith.constant 0 : index
    %c0_10 = arith.constant 0 : index
    %12 = vector.load %arg7[%c17, %c0_9, %c0_10] : memref<18x18x128xf32, #tpu.memory_space<vmem>>, vector<1x18x128xf32>
    tpu.vector_store %arg7[%c17, %c0_9, %c0_10], %10 {strides = array<i32>} : memref<18x18x128xf32, #tpu.memory_space<vmem>>, vector<1x18x128xf32>,
    %cst_11 = arith.constant 0.000000e+00 : f32
    %13 = vector.broadcast %cst_11 : f32 to vector<16x1x128xf32>
    %c1 = arith.constant 1 : index
    %c0_12 = arith.constant 0 : index
    %c0_13 = arith.constant 0 : index
    %14 = vector.load %arg7[%c1, %c0_12, %c0_13] : memref<18x18x128xf32, #tpu.memory_space<vmem>>, vector<16x1x128xf32>
    tpu.vector_store %arg7[%c1, %c0_12, %c0_13], %13 {strides = array<i32>} : memref<18x18x128xf32, #tpu.memory_space<vmem>>, vector<16x1x128xf32>,
    %c1_14 = arith.constant 1 : index
    %c17_15 = arith.constant 17 : index
    %c0_16 = arith.constant 0 : index
    %15 = vector.load %arg7[%c1_14, %c17_15, %c0_16] : memref<18x18x128xf32, #tpu.memory_space<vmem>>, vector<16x1x128xf32>
    tpu.vector_store %arg7[%c1_14, %c17_15, %c0_16], %13 {strides = array<i32>} : memref<18x18x128xf32, #tpu.memory_space<vmem>>, vector<16x1x128xf32>,
    %16 = vector.shape_cast %9 : vector<256x128xf32> to vector<16x16x128xf32>
    %c1_17 = arith.constant 1 : index
    %c1_18 = arith.constant 1 : index
    %c0_19 = arith.constant 0 : index
    %17 = vector.load %arg7[%c1_17, %c1_18, %c0_19] : memref<18x18x128xf32, #tpu.memory_space<vmem>>, vector<16x16x128xf32>
    tpu.vector_store %arg7[%c1_17, %c1_18, %c0_19], %16 {strides = array<i32>} : memref<18x18x128xf32, #tpu.memory_space<vmem>>, vector<16x16x128xf32>,
    %c0_20 = arith.constant 0 : index
    %c0_21 = arith.constant 0 : index
    %c0_22 = arith.constant 0 : index
    %18 = vector.load %arg7[%c0_20, %c0_21, %c0_22] : memref<18x18x128xf32, #tpu.memory_space<vmem>>, vector<18x18x128xf32>
    %c0_23 = arith.constant 0 : index
    %c0_24 = arith.constant 0 : index
    %c0_25 = arith.constant 0 : index
    %19 = vector.load %arg2[%c0_23, %c0_24, %c0_25] : memref<3x384x128xbf16, #tpu.memory_space<vmem>>, vector<3x384x128xbf16>
    %20 = vector.extract_strided_slice %18 {offsets = [0, 0, 0], sizes = [16, 18, 128], strides = [1, 1, 1]} : vector<18x18x128xf32> to vector<16x18x128xf32>
    %21 = vector.extract_strided_slice %20 {offsets = [0, 0, 0], sizes = [16, 16, 128], strides = [1, 1, 1]} : vector<16x18x128xf32> to vector<16x16x128xf32>
    %22 = vector.extract_strided_slice %20 {offsets = [0, 1, 0], sizes = [16, 16, 128], strides = [1, 1, 1]} : vector<16x18x128xf32> to vector<16x16x128xf32>
    %23 = vector.extract_strided_slice %20 {offsets = [0, 2, 0], sizes = [16, 16, 128], strides = [1, 1, 1]} : vector<16x18x128xf32> to vector<16x16x128xf32>
    %24 = tpu.concatenate %21, %22, %23 in 2 : vector<16x16x128xf32>, vector<16x16x128xf32>, vector<16x16x128xf32> -> vector<16x16x384xf32>
    %25 = vector.shape_cast %24 : vector<16x16x384xf32> to vector<256x384xf32>
    %26 = arith.truncf %25 : vector<256x384xf32> to vector<256x384xbf16>
    %27 = vector.extract_strided_slice %19 {offsets = [0, 0, 0], sizes = [1, 384, 128], strides = [1, 1, 1]} : vector<3x384x128xbf16> to vector<1x384x128xbf16>
    %28 = vector.shape_cast %27 : vector<1x384x128xbf16> to vector<384x128xbf16>
    %cst_26 = arith.constant dense<0.000000e+00> : vector<256x128xf32>
    %29 = tpu.matmul %26, %28, %cst_26 {dimension_numbers = #tpu.dot_dimension_numbers<[1], [0], [0], [1], [0, 0, 1, 1], [], []>} : vector<256x384xbf16>, vector<384x128xbf16>, vector<256x128xf32> -> vector<256x128xf32>
    %30 = vector.extract_strided_slice %18 {offsets = [1, 0, 0], sizes = [16, 18, 128], strides = [1, 1, 1]} : vector<18x18x128xf32> to vector<16x18x128xf32>
    %31 = vector.extract_strided_slice %30 {offsets = [0, 0, 0], sizes = [16, 16, 128], strides = [1, 1, 1]} : vector<16x18x128xf32> to vector<16x16x128xf32>
    %32 = vector.extract_strided_slice %30 {offsets = [0, 1, 0], sizes = [16, 16, 128], strides = [1, 1, 1]} : vector<16x18x128xf32> to vector<16x16x128xf32>
    %33 = vector.extract_strided_slice %30 {offsets = [0, 2, 0], sizes = [16, 16, 128], strides = [1, 1, 1]} : vector<16x18x128xf32> to vector<16x16x128xf32>
    %34 = tpu.concatenate %31, %32, %33 in 2 : vector<16x16x128xf32>, vector<16x16x128xf32>, vector<16x16x128xf32> -> vector<16x16x384xf32>
    %35 = vector.shape_cast %34 : vector<16x16x384xf32> to vector<256x384xf32>
    %36 = arith.truncf %35 : vector<256x384xf32> to vector<256x384xbf16>
    %37 = vector.extract_strided_slice %19 {offsets = [1, 0, 0], sizes = [1, 384, 128], strides = [1, 1, 1]} : vector<3x384x128xbf16> to vector<1x384x128xbf16>
    %38 = vector.shape_cast %37 : vector<1x384x128xbf16> to vector<384x128xbf16>
    %cst_27 = arith.constant dense<0.000000e+00> : vector<256x128xf32>
    %39 = tpu.matmul %36, %38, %cst_27 {dimension_numbers = #tpu.dot_dimension_numbers<[1], [0], [0], [1], [0, 0, 1, 1], [], []>} : vector<256x384xbf16>, vector<384x128xbf16>, vector<256x128xf32> -> vector<256x128xf32>
    %40 = arith.addf %29, %39 : vector<256x128xf32>
    %41 = vector.extract_strided_slice %18 {offsets = [2, 0, 0], sizes = [16, 18, 128], strides = [1, 1, 1]} : vector<18x18x128xf32> to vector<16x18x128xf32>
    %42 = vector.extract_strided_slice %41 {offsets = [0, 0, 0], sizes = [16, 16, 128], strides = [1, 1, 1]} : vector<16x18x128xf32> to vector<16x16x128xf32>
    %43 = vector.extract_strided_slice %41 {offsets = [0, 1, 0], sizes = [16, 16, 128], strides = [1, 1, 1]} : vector<16x18x128xf32> to vector<16x16x128xf32>
    %44 = vector.extract_strided_slice %41 {offsets = [0, 2, 0], sizes = [16, 16, 128], strides = [1, 1, 1]} : vector<16x18x128xf32> to vector<16x16x128xf32>
    %45 = tpu.concatenate %42, %43, %44 in 2 : vector<16x16x128xf32>, vector<16x16x128xf32>, vector<16x16x128xf32> -> vector<16x16x384xf32>
    %46 = vector.shape_cast %45 : vector<16x16x384xf32> to vector<256x384xf32>
    %47 = arith.truncf %46 : vector<256x384xf32> to vector<256x384xbf16>
    %48 = vector.extract_strided_slice %19 {offsets = [2, 0, 0], sizes = [1, 384, 128], strides = [1, 1, 1]} : vector<3x384x128xbf16> to vector<1x384x128xbf16>
    %49 = vector.shape_cast %48 : vector<1x384x128xbf16> to vector<384x128xbf16>
    %cst_28 = arith.constant dense<0.000000e+00> : vector<256x128xf32>
    %50 = tpu.matmul %47, %49, %cst_28 {dimension_numbers = #tpu.dot_dimension_numbers<[1], [0], [0], [1], [0, 0, 1, 1], [], []>} : vector<256x384xbf16>, vector<384x128xbf16>, vector<256x128xf32> -> vector<256x128xf32>
    %51 = arith.addf %40, %50 : vector<256x128xf32>
    %52 = arith.truncf %51 : vector<256x128xf32> to vector<256x128xbf16>
    %c0_29 = arith.constant 0 : index
    %c0_30 = arith.constant 0 : index
    %53 = vector.load %arg5[%c0_29, %c0_30] : memref<256x128xbf16, #tpu.memory_space<vmem>>, vector<256x128xbf16>
    tpu.vector_store %arg5[%c0_29, %c0_30], %52 {strides = array<i32>} : memref<256x128xbf16, #tpu.memory_space<vmem>>, vector<256x128xbf16>,
    %cst_31 = arith.constant dense<0.000000e+00> : vector<128xf32>
    %54 = vector.multi_reduction <add>, %51, %cst_31 [0] : vector<256x128xf32> to vector<128xf32>
    %55 = vector.shape_cast %54 : vector<128xf32> to vector<1x128xf32>
    %56 = arith.mulf %51, %51 : vector<256x128xf32>
    %cst_32 = arith.constant dense<0.000000e+00> : vector<128xf32>
    %57 = vector.multi_reduction <add>, %56, %cst_32 [0] : vector<256x128xf32> to vector<128xf32>
    %58 = vector.shape_cast %57 : vector<128xf32> to vector<1x128xf32>
    %59 = tpu.concatenate %55, %58 in 0 : vector<1x128xf32>, vector<1x128xf32> -> vector<2x128xf32>
    %60 = vector.shape_cast %59 : vector<2x128xf32> to vector<1x2x128xf32>
    %c0_33 = arith.constant 0 : index
    %c0_34 = arith.constant 0 : index
    %c0_35 = arith.constant 0 : index
    %61 = vector.load %arg6[%c0_33, %c0_34, %c0_35] : memref<1x2x128xf32, #tpu.memory_space<vmem>>, vector<1x2x128xf32>
    tpu.vector_store %arg6[%c0_33, %c0_34, %c0_35], %60 {strides = array<i32>} : memref<1x2x128xf32, #tpu.memory_space<vmem>>, vector<1x2x128xf32>,
    return
  }
  func.func @transform_0(%arg0: i32) -> (i32, i32) {
    %c0_i32 = arith.constant 0 : i32
    %c0_i32_0 = arith.constant 0 : i32
    return %arg0, %c0_i32 : i32, i32
  }
  func.func @transform_1(%arg0: i32) -> (i32, i32, i32) {
    %c0_i32 = arith.constant 0 : i32
    %c0_i32_0 = arith.constant 0 : i32
    %c0_i32_1 = arith.constant 0 : i32
    %c0_i32_2 = arith.constant 0 : i32
    return %c0_i32, %c0_i32_0, %c0_i32_1 : i32, i32, i32
  }
  func.func @transform_2(%arg0: i32) -> (i32, i32) {
    %c0_i32 = arith.constant 0 : i32
    %c0_i32_0 = arith.constant 0 : i32
    %c0_i32_1 = arith.constant 0 : i32
    return %c0_i32, %c0_i32_0 : i32, i32
  }
  func.func @transform_3(%arg0: i32) -> (i32, i32) {
    %c0_i32 = arith.constant 0 : i32
    %c0_i32_0 = arith.constant 0 : i32
    %c0_i32_1 = arith.constant 0 : i32
    return %c0_i32, %c0_i32_0 : i32, i32
  }
  func.func @transform_4(%arg0: i32) -> (i32, i32) {
    %c0_i32 = arith.constant 0 : i32
    %c0_i32_0 = arith.constant 0 : i32
    return %arg0, %c0_i32 : i32, i32
  }
  func.func @transform_5(%arg0: i32) -> (i32, i32, i32) {
    %c0_i32 = arith.constant 0 : i32
    %c0_i32_0 = arith.constant 0 : i32
    %c0_i32_1 = arith.constant 0 : i32
    return %arg0, %c0_i32, %c0_i32_0 : i32, i32, i32
  }
}

module attributes {stable_mosaic.version = 11 : i64} {
  func.func @_pointwise_kernel(%arg0: i32, %arg1: memref<512x128xbf16, #tpu.memory_space<vmem>>, %arg2: memref<128x128xbf16, #tpu.memory_space<vmem>>, %arg3: memref<1x128xf32, #tpu.memory_space<vmem>>, %arg4: memref<1x128xf32, #tpu.memory_space<vmem>>, %arg5: memref<512x128xbf16, #tpu.memory_space<vmem>>, %arg6: memref<1x2x128xf32, #tpu.memory_space<vmem>>) attributes {dimension_semantics = [#tpu.dimension_semantics<parallel>], iteration_bounds = array<i64: 1>, scalar_prefetch = 0 : i64, scratch_operands = 0 : i64, tpu.core_type = #tpu.core_type<tc>, window_params = [{transform_indices = @transform_0, window_bounds = array<i64: 512, 128>}, {pipeline_mode = #tpu.pipeline_mode<synchronous>, transform_indices = @transform_1, window_bounds = array<i64: 128, 128>}, {pipeline_mode = #tpu.pipeline_mode<synchronous>, transform_indices = @transform_2, window_bounds = array<i64: 1, 128>}, {pipeline_mode = #tpu.pipeline_mode<synchronous>, transform_indices = @transform_3, window_bounds = array<i64: 1, 128>}, {transform_indices = @transform_4, window_bounds = array<i64: 512, 128>}, {transform_indices = @transform_5, window_bounds = array<i64: 1, 2, 128>}]} {
    %c0 = arith.constant 0 : index
    %c0_0 = arith.constant 0 : index
    %0 = vector.load %arg1[%c0, %c0_0] : memref<512x128xbf16, #tpu.memory_space<vmem>>, vector<512x128xbf16>
    %1 = arith.extf %0 : vector<512x128xbf16> to vector<512x128xf32>
    %c0_1 = arith.constant 0 : index
    %c0_2 = arith.constant 0 : index
    %2 = vector.load %arg3[%c0_1, %c0_2] : memref<1x128xf32, #tpu.memory_space<vmem>>, vector<1x128xf32>
    %3 = vector.broadcast %2 : vector<1x128xf32> to vector<512x128xf32>
    %4 = arith.mulf %1, %3 : vector<512x128xf32>
    %c0_3 = arith.constant 0 : index
    %c0_4 = arith.constant 0 : index
    %5 = vector.load %arg4[%c0_3, %c0_4] : memref<1x128xf32, #tpu.memory_space<vmem>>, vector<1x128xf32>
    %6 = vector.broadcast %5 : vector<1x128xf32> to vector<512x128xf32>
    %7 = arith.addf %4, %6 : vector<512x128xf32>
    %cst = arith.constant 0.000000e+00 : f32
    %8 = vector.broadcast %cst : f32 to vector<512x128xf32>
    %9 = arith.maximumf %7, %8 : vector<512x128xf32>
    %10 = arith.truncf %9 : vector<512x128xf32> to vector<512x128xbf16>
    %c0_5 = arith.constant 0 : index
    %c0_6 = arith.constant 0 : index
    %11 = vector.load %arg2[%c0_5, %c0_6] : memref<128x128xbf16, #tpu.memory_space<vmem>>, vector<128x128xbf16>
    %cst_7 = arith.constant dense<0.000000e+00> : vector<512x128xf32>
    %12 = tpu.matmul %10, %11, %cst_7 {dimension_numbers = #tpu.dot_dimension_numbers<[1], [0], [0], [1], [0, 0, 1, 1], [], []>} : vector<512x128xbf16>, vector<128x128xbf16>, vector<512x128xf32> -> vector<512x128xf32>
    %13 = arith.truncf %12 : vector<512x128xf32> to vector<512x128xbf16>
    %c0_8 = arith.constant 0 : index
    %c0_9 = arith.constant 0 : index
    %14 = vector.load %arg5[%c0_8, %c0_9] : memref<512x128xbf16, #tpu.memory_space<vmem>>, vector<512x128xbf16>
    tpu.vector_store %arg5[%c0_8, %c0_9], %13 {strides = array<i32>} : memref<512x128xbf16, #tpu.memory_space<vmem>>, vector<512x128xbf16>,
    %cst_10 = arith.constant dense<0.000000e+00> : vector<128xf32>
    %15 = vector.multi_reduction <add>, %12, %cst_10 [0] : vector<512x128xf32> to vector<128xf32>
    %16 = vector.shape_cast %15 : vector<128xf32> to vector<1x128xf32>
    %17 = arith.mulf %12, %12 : vector<512x128xf32>
    %cst_11 = arith.constant dense<0.000000e+00> : vector<128xf32>
    %18 = vector.multi_reduction <add>, %17, %cst_11 [0] : vector<512x128xf32> to vector<128xf32>
    %19 = vector.shape_cast %18 : vector<128xf32> to vector<1x128xf32>
    %20 = tpu.concatenate %16, %19 in 0 : vector<1x128xf32>, vector<1x128xf32> -> vector<2x128xf32>
    %21 = vector.shape_cast %20 : vector<2x128xf32> to vector<1x2x128xf32>
    %c0_12 = arith.constant 0 : index
    %c0_13 = arith.constant 0 : index
    %c0_14 = arith.constant 0 : index
    %22 = vector.load %arg6[%c0_12, %c0_13, %c0_14] : memref<1x2x128xf32, #tpu.memory_space<vmem>>, vector<1x2x128xf32>
    tpu.vector_store %arg6[%c0_12, %c0_13, %c0_14], %21 {strides = array<i32>} : memref<1x2x128xf32, #tpu.memory_space<vmem>>, vector<1x2x128xf32>,
    return
  }
  func.func @transform_0(%arg0: i32) -> (i32, i32) {
    %c0_i32 = arith.constant 0 : i32
    %c0_i32_0 = arith.constant 0 : i32
    return %arg0, %c0_i32 : i32, i32
  }
  func.func @transform_1(%arg0: i32) -> (i32, i32) {
    %c0_i32 = arith.constant 0 : i32
    %c0_i32_0 = arith.constant 0 : i32
    %c0_i32_1 = arith.constant 0 : i32
    return %c0_i32, %c0_i32_0 : i32, i32
  }
  func.func @transform_2(%arg0: i32) -> (i32, i32) {
    %c0_i32 = arith.constant 0 : i32
    %c0_i32_0 = arith.constant 0 : i32
    %c0_i32_1 = arith.constant 0 : i32
    return %c0_i32, %c0_i32_0 : i32, i32
  }
  func.func @transform_3(%arg0: i32) -> (i32, i32) {
    %c0_i32 = arith.constant 0 : i32
    %c0_i32_0 = arith.constant 0 : i32
    %c0_i32_1 = arith.constant 0 : i32
    return %c0_i32, %c0_i32_0 : i32, i32
  }
  func.func @transform_4(%arg0: i32) -> (i32, i32) {
    %c0_i32 = arith.constant 0 : i32
    %c0_i32_0 = arith.constant 0 : i32
    return %arg0, %c0_i32 : i32, i32
  }
  func.func @transform_5(%arg0: i32) -> (i32, i32, i32) {
    %c0_i32 = arith.constant 0 : i32
    %c0_i32_0 = arith.constant 0 : i32
    %c0_i32_1 = arith.constant 0 : i32
    return %arg0, %c0_i32, %c0_i32_0 : i32, i32, i32
  }
}

module attributes {stable_mosaic.version = 11 : i64} {
  func.func @_residual_kernel(%arg0: i32, %arg1: memref<512x128xbf16, #tpu.memory_space<vmem>>, %arg2: memref<512x128xf32, #tpu.memory_space<vmem>>, %arg3: memref<1x128xf32, #tpu.memory_space<vmem>>, %arg4: memref<1x128xf32, #tpu.memory_space<vmem>>, %arg5: memref<512x128xf32, #tpu.memory_space<vmem>>) attributes {dimension_semantics = [#tpu.dimension_semantics<parallel>], iteration_bounds = array<i64: 1>, scalar_prefetch = 0 : i64, scratch_operands = 0 : i64, tpu.core_type = #tpu.core_type<tc>, window_params = [{transform_indices = @transform_0, window_bounds = array<i64: 512, 128>}, {transform_indices = @transform_1, window_bounds = array<i64: 512, 128>}, {pipeline_mode = #tpu.pipeline_mode<synchronous>, transform_indices = @transform_2, window_bounds = array<i64: 1, 128>}, {pipeline_mode = #tpu.pipeline_mode<synchronous>, transform_indices = @transform_3, window_bounds = array<i64: 1, 128>}, {transform_indices = @transform_4, window_bounds = array<i64: 512, 128>}]} {
    %c0 = arith.constant 0 : index
    %c0_0 = arith.constant 0 : index
    %0 = vector.load %arg1[%c0, %c0_0] : memref<512x128xbf16, #tpu.memory_space<vmem>>, vector<512x128xbf16>
    %1 = arith.extf %0 : vector<512x128xbf16> to vector<512x128xf32>
    %c0_1 = arith.constant 0 : index
    %c0_2 = arith.constant 0 : index
    %2 = vector.load %arg3[%c0_1, %c0_2] : memref<1x128xf32, #tpu.memory_space<vmem>>, vector<1x128xf32>
    %3 = vector.broadcast %2 : vector<1x128xf32> to vector<512x128xf32>
    %4 = arith.mulf %1, %3 : vector<512x128xf32>
    %c0_3 = arith.constant 0 : index
    %c0_4 = arith.constant 0 : index
    %5 = vector.load %arg4[%c0_3, %c0_4] : memref<1x128xf32, #tpu.memory_space<vmem>>, vector<1x128xf32>
    %6 = vector.broadcast %5 : vector<1x128xf32> to vector<512x128xf32>
    %7 = arith.addf %4, %6 : vector<512x128xf32>
    %c0_5 = arith.constant 0 : index
    %c0_6 = arith.constant 0 : index
    %8 = vector.load %arg2[%c0_5, %c0_6] : memref<512x128xf32, #tpu.memory_space<vmem>>, vector<512x128xf32>
    %9 = arith.addf %7, %8 : vector<512x128xf32>
    %cst = arith.constant 0.000000e+00 : f32
    %10 = vector.broadcast %cst : f32 to vector<512x128xf32>
    %11 = arith.maximumf %9, %10 : vector<512x128xf32>
    %c0_7 = arith.constant 0 : index
    %c0_8 = arith.constant 0 : index
    %12 = vector.load %arg5[%c0_7, %c0_8] : memref<512x128xf32, #tpu.memory_space<vmem>>, vector<512x128xf32>
    tpu.vector_store %arg5[%c0_7, %c0_8], %11 {strides = array<i32>} : memref<512x128xf32, #tpu.memory_space<vmem>>, vector<512x128xf32>,
    return
  }
  func.func @transform_0(%arg0: i32) -> (i32, i32) {
    %c0_i32 = arith.constant 0 : i32
    %c0_i32_0 = arith.constant 0 : i32
    return %arg0, %c0_i32 : i32, i32
  }
  func.func @transform_1(%arg0: i32) -> (i32, i32) {
    %c0_i32 = arith.constant 0 : i32
    %c0_i32_0 = arith.constant 0 : i32
    return %arg0, %c0_i32 : i32, i32
  }
  func.func @transform_2(%arg0: i32) -> (i32, i32) {
    %c0_i32 = arith.constant 0 : i32
    %c0_i32_0 = arith.constant 0 : i32
    %c0_i32_1 = arith.constant 0 : i32
    return %c0_i32, %c0_i32_0 : i32, i32
  }
  func.func @transform_3(%arg0: i32) -> (i32, i32) {
    %c0_i32 = arith.constant 0 : i32
    %c0_i32_0 = arith.constant 0 : i32
    %c0_i32_1 = arith.constant 0 : i32
    return %c0_i32, %c0_i32_0 : i32, i32
  }
  func.func @transform_4(%arg0: i32) -> (i32, i32) {
    %c0_i32 = arith.constant 0 : i32
    %c0_i32_0 = arith.constant 0 : i32
    return %arg0, %c0_i32 : i32, i32
  }
}

</mosaic_0001>

<bundles_post_ra>
// kernel: pspnet_block.6
= control target key start
LH: loop header
LB: loop body
LE: loop exit
PB: predicated region body
PF: predicated region fallthrough
CT: control target
= control target key end

     0   :  { %vm942_vm0 = vcmask 1040384   ;;  %s2044_s1 = inlined_call_operand.vmem [shape: bf16[128,128], index: 1, kind: input, shape index: {}]   ;;  %s2045_s2 = inlined_call_operand.vmem [shape: f32[1,128], index: 2, kind: input, shape index: {}]   ;;  %s2046_s3 = inlined_call_operand.vmem [shape: f32[1,128], index: 3, kind: input, shape index: {}]   ;;  %s2047_s0 = inlined_call_operand.vmem [shape: bf16[512,128], index: 0, kind: input, shape index: {}]   ;;  %s2048_s4 = inlined_call_operand.vmem [shape: bf16[512,128], index: 4, kind: output, shape index: {0}]   ;;  %s2049_s5 = inlined_call_operand.vmem [shape: f32[1,2,128], index: 5, kind: output, shape index: {1}]  }
   0x1   :  { %v992_v0 = vld [vmem:[%s2044_s1 + $0x38] sm:$0xff]  ;;  %v991_v1 = vld [vmem:[%s2044_s1 + $0x30] sm:$0xff]  ;;  %v990_v2 = vld [vmem:[%s2044_s1 + $0x28] sm:$0xff] }
   0x2   :  { %443 = vmatpush.bf16.msra.mxu0 %v992_v0  ;;  %1343 = vmatpush.bf16.msra.mxu1 %v992_v0  ;;  %v989_v3 = vld [vmem:[%s2044_s1 + $0x20] sm:$0xff]  ;;  %v988_v8 = vld [vmem:[%s2044_s1 + $0x18] sm:$0xff]  ;;  %v987_v17 = vld [vmem:[%s2044_s1 + $0x10] sm:$0xff] }
   0x3   :  { %1344 = vmatpush.bf16.msra.mxu2 %v992_v0  ;;  %1345 = vmatpush.bf16.msra.mxu3 %v992_v0  ;;  %v994_v4 = vld [vmem:[%s2047_s0] sm:$0xff]   ;;  %v986_v22 = vld [vmem:[%s2044_s1 + $0x8] sm:$0xff]  ;;  %v1282_v47 = vld [vmem:[%s2047_s0 + $0x10] sm:$0xff]  }
   0x4   :  { %v995_v5 = vunpack.c.l.bf16 %v994_v4  ;;  %v996_v6 = vunpack.c.h.bf16 %v994_v4  ;;  %v1417_v7 = vld [vmem:[%s2045_s2] ss:$0 sm:$0xff]  ;;  %v1281_v25 = vld [vmem:[%s2047_s0 + $0x8] sm:$0xff]   ;;  %v1003_v54 = vunpack.c.l.bf16 %v1282_v47  ;;  %v1004_v55 = vunpack.c.h.bf16 %v1282_v47  ;;  %v1290_v60 = vld [vmem:[%s2047_s0 + $0x50] sm:$0xff]  }
   0x5   :  { %v1288_v9 = vld [vmem:[%s2047_s0 + $0x40] sm:$0xff]   ;;  %v999_v29 = vunpack.c.l.bf16 %v1281_v25  ;;  %v1000_v30 = vunpack.c.h.bf16 %v1281_v25  ;;  %v1289_v33 = vld [vmem:[%s2047_s0 + $0x48] sm:$0xff]   ;;  %v1035_v63 = vunpack.c.l.bf16 %v1290_v60  ;;  %v1036_v0 = vunpack.c.h.bf16 %v1290_v60 }
   0x6   :  { %444 = vmatpush.bf16.msra.mxu0 %v991_v1  ;;  %1346 = vmatpush.bf16.msra.mxu1 %v991_v1  ;;  %v1027_v10 = vunpack.c.l.bf16 %v1288_v9  ;;  %v1028_v11 = vunpack.c.h.bf16 %v1288_v9  ;;  %v151_v12 = vmul.f32 %v1417_v7, %v995_v5  ;;  %v152_v13 = vmul.f32 %v1417_v7, %v996_v6  ;;  %v1430_v14 = vld [vmem:[%s2046_s3] ss:$0 sm:$0xff] }
   0x7   :  { %1347 = vmatpush.bf16.msra.mxu2 %v991_v1  ;;  %1348 = vmatpush.bf16.msra.mxu3 %v991_v1  ;;  %v985_v28 = vld [vmem:[%s2044_s1] sm:$0xff]  ;;  %v1031_v34 = vunpack.c.l.bf16 %v1289_v33  ;;  %v1032_v35 = vunpack.c.h.bf16 %v1289_v33  ;;  %v153_v36 = vmul.f32 %v1417_v7, %v999_v29  ;;  %v154_v37 = vmul.f32 %v1417_v7, %v1000_v30 }
   0x8   :  { %v167_v15 = vmul.f32 %v1417_v7, %v1027_v10  ;;  %v168_v16 = vmul.f32 %v1417_v7, %v1028_v11  ;;  %v219_v18 = vadd.f32 %v1430_v14, %v151_v12  ;;  %v220_v19 = vadd.f32 %v1430_v14, %v152_v13  ;;  %v1296_v46 = vld [vmem:[%s2047_s0 + $0x80] sm:$0xff]   ;;  %v1297_v13 = vld [vmem:[%s2047_s0 + $0x88] sm:$0xff]  }
   0x9   :  { %v169_v38 = vmul.f32 %v1417_v7, %v1031_v34  ;;  %v170_v39 = vmul.f32 %v1417_v7, %v1032_v35  ;;  %v221_v40 = vadd.f32 %v1430_v14, %v153_v36  ;;  %v222_v41 = vadd.f32 %v1430_v14, %v154_v37  ;;  %v1304_v47 = vld [vmem:[%s2047_s0 + $0xc0] sm:$0xff]  }
   0xa   :  { %445 = vmatpush.bf16.msra.mxu0 %v990_v2  ;;  %1349 = vmatpush.bf16.msra.mxu1 %v990_v2  ;;  %v235_v20 = vadd.f32 %v1430_v14, %v167_v15  ;;  %v236_v21 = vadd.f32 %v1430_v14, %v168_v16  ;;  %v283_v23 = vmax.f32 %v219_v18, 0.0  ;;  %v284_v24 = vmax.f32 %v220_v19, 0.0  ;;  %v1283_v15 = vld [vmem:[%s2047_s0 + $0x18] sm:$0xff]  }
   0xb   :  { %1350 = vmatpush.bf16.msra.mxu2 %v990_v2  ;;  %1351 = vmatpush.bf16.msra.mxu3 %v990_v2  ;;  %v237_v42 = vadd.f32 %v1430_v14, %v169_v38  ;;  %v238_v43 = vadd.f32 %v1430_v14, %v170_v39  ;;  %v285_v44 = vmax.f32 %v221_v40, 0.0  ;;  %v286_v45 = vmax.f32 %v222_v41, 0.0 }
   0xc   :  { %v299_v26 = vmax.f32 %v235_v20, 0.0  ;;  %v300_v27 = vmax.f32 %v236_v21, 0.0  ;;  %v347_v31 = vpack.c.bf16 %v284_v24, %v283_v23  ;;  %v1059_v50 = vunpack.c.l.bf16 %v1296_v46 }
   0xd   :  { %v301_v48 = vmax.f32 %v237_v42, 0.0  ;;  %v302_v49 = vmax.f32 %v238_v43, 0.0  ;;  %v1060_v51 = vunpack.c.h.bf16 %v1296_v46  ;;  %v348_v56 = vpack.c.bf16 %v286_v45, %v285_v44  ;;  %v1298_v46 = vld [vmem:[%s2047_s0 + $0x90] sm:$0xff]  }
   0xe   :  { %446 = vmatpush.bf16.msra.mxu0 %v989_v3  ;;  %1352 = vmatpush.bf16.msra.mxu1 %v989_v3  ;;  %v355_v32 = vpack.c.bf16 %v300_v27, %v299_v26  ;;  %v183_v52 = vmul.f32 %v1417_v7, %v1059_v50  ;;  %v155_v1 = vmul.f32 %v1417_v7, %v1003_v54  ;;  %v1063_v18 = vunpack.c.l.bf16 %v1297_v13 }
   0xf   :  { %1353 = vmatpush.bf16.msra.mxu2 %v989_v3  ;;  %1354 = vmatpush.bf16.msra.mxu3 %v989_v3  ;;  %v184_v53 = vmul.f32 %v1417_v7, %v1060_v51  ;;  %v356_v57 = vpack.c.bf16 %v302_v49, %v301_v48  ;;  %v156_v2 = vmul.f32 %v1417_v7, %v1004_v55  ;;  %v1064_v19 = vunpack.c.h.bf16 %v1297_v13  ;;  %v1284_v48 = vld [vmem:[%s2047_s0 + $0x20] sm:$0xff]  }
  0x10   :  { %v251_v58 = vadd.f32 %v1430_v14, %v183_v52  ;;  %v171_v4 = vmul.f32 %v1417_v7, %v1035_v63  ;;  %v172_v5 = vmul.f32 %v1417_v7, %v1036_v0  ;;  %v223_v6 = vadd.f32 %v1430_v14, %v155_v1  ;;  %v1292_v1 = vld [vmem:[%s2047_s0 + $0x60] sm:$0xff]  }
  0x11   :  { %v252_v59 = vadd.f32 %v1430_v14, %v184_v53  ;;  %v185_v20 = vmul.f32 %v1417_v7, %v1063_v18  ;;  %v186_v21 = vmul.f32 %v1417_v7, %v1064_v19  ;;  %v1008_v23 = vunpack.c.h.bf16 %v1283_v15 }
  0x12   :  { %447 = vmatpush.bf16.msra.mxu0 %v988_v8  ;;  %1355 = vmatpush.bf16.msra.mxu1 %v988_v8  ;;  %v315_v61 = vmax.f32 %v251_v58, 0.0  ;;  %v239_v9 = vadd.f32 %v1430_v14, %v171_v4  ;;  %v240_v10 = vadd.f32 %v1430_v14, %v172_v5  ;;  %v287_v11 = vmax.f32 %v223_v6, 0.0 }
  0x13   :  { %1356 = vmatpush.bf16.msra.mxu2 %v988_v8  ;;  %1357 = vmatpush.bf16.msra.mxu3 %v988_v8  ;;  %v316_v62 = vmax.f32 %v252_v59, 0.0  ;;  %v224_v8 = vadd.f32 %v1430_v14, %v156_v2  ;;  %v253_v26 = vadd.f32 %v1430_v14, %v185_v20  ;;  %v254_v27 = vadd.f32 %v1430_v14, %v186_v21 }
  0x14   :  { %v303_v16 = vmax.f32 %v239_v9, 0.0  ;;  %v158_v34 = vmul.f32 %v1417_v7, %v1008_v23  ;;  %v1067_v49 = vunpack.c.l.bf16 %v1298_v46  ;;  %v1068_v50 = vunpack.c.h.bf16 %v1298_v46 }
  0x15   :  { %v363_v3 = vpack.c.bf16 %v316_v62, %v315_v61  ;;  %v288_v12 = vmax.f32 %v224_v8, 0.0  ;;  %v317_v29 = vmax.f32 %v253_v26, 0.0  ;;  %v318_v30 = vmax.f32 %v254_v27, 0.0  ;;  %v1285_v26 = vld [vmem:[%s2047_s0 + $0x28] sm:$0xff]  }
  0x16   :  { %448 = vmatpush.bf16.msra.mxu0 %v987_v17  ;;  %1358 = vmatpush.bf16.msra.mxu1 %v987_v17  ;;  %v226_v39 = vadd.f32 %v1430_v14, %v158_v34  ;;  %v1091_v51 = vunpack.c.l.bf16 %v1304_v47  ;;  %v1092_v52 = vunpack.c.h.bf16 %v1304_v47  ;;  %v187_v53 = vmul.f32 %v1417_v7, %v1067_v49 }
  0x17   :  { %1359 = vmatpush.bf16.msra.mxu2 %v987_v17  ;;  %1360 = vmatpush.bf16.msra.mxu3 %v987_v17  ;;  %v304_v17 = vmax.f32 %v240_v10, 0.0  ;;  %v349_v24 = vpack.c.bf16 %v288_v12, %v287_v11  ;;  %v364_v35 = vpack.c.bf16 %v318_v30, %v317_v29  ;;  %v188_v54 = vmul.f32 %v1417_v7, %v1068_v50 }
  0x18   :  { %v290_v43 = vmax.f32 %v226_v39, 0.0  ;;  %v199_v55 = vmul.f32 %v1417_v7, %v1091_v51  ;;  %v1011_v58 = vunpack.c.l.bf16 %v1284_v48  ;;  %v1012_v59 = vunpack.c.h.bf16 %v1284_v48 }
  0x19   :  { %v357_v25 = vpack.c.bf16 %v304_v17, %v303_v16  ;;  %v255_v61 = vadd.f32 %v1430_v14, %v187_v53  ;;  %v256_v62 = vadd.f32 %v1430_v14, %v188_v54  ;;  %v1043_v9 = vunpack.c.l.bf16 %v1292_v1 }
  0x1a   :  { %449 = vmatpush.bf16.msra.mxu0 %v986_v22  ;;  %1361 = vmatpush.bf16.msra.mxu1 %v986_v22  ;;  %v267_v63 = vadd.f32 %v1430_v14, %v199_v55  ;;  %v159_v6 = vmul.f32 %v1417_v7, %v1011_v58  ;;  %v160_v8 = vmul.f32 %v1417_v7, %v1012_v59  ;;  %v1044_v10 = vunpack.c.h.bf16 %v1292_v1  ;;  %v1306_v1 = vld [vmem:[%s2047_s0 + $0xd0] sm:$0xff]  }
  0x1b   :  { %1362 = vmatpush.bf16.msra.mxu2 %v986_v22  ;;  %1363 = vmatpush.bf16.msra.mxu3 %v986_v22  ;;  %v1007_v22 = vunpack.c.l.bf16 %v1283_v15  ;;  %v319_v2 = vmax.f32 %v255_v61, 0.0  ;;  %v175_v13 = vmul.f32 %v1417_v7, %v1043_v9 }
  0x1c   :  { %v331_v4 = vmax.f32 %v267_v63, 0.0  ;;  %v176_v15 = vmul.f32 %v1417_v7, %v1044_v10  ;;  %v227_v16 = vadd.f32 %v1430_v14, %v159_v6  ;;  %v228_v17 = vadd.f32 %v1430_v14, %v160_v8 }
  0x1d   :  { %v157_v33 = vmul.f32 %v1417_v7, %v1007_v22  ;;  %v243_v18 = vadd.f32 %v1430_v14, %v175_v13  ;;  %v1100_v6 = vunpack.c.h.bf16 %v1306_v1 }
  0x1e   :  { %450 = vmatpush.bf16.msra.mxu0 %v985_v28  ;;  %1364 = vmatpush.bf16.msra.mxu1 %v985_v28  ;;  %v244_v19 = vadd.f32 %v1430_v14, %v176_v15  ;;  %v291_v20 = vmax.f32 %v227_v16, 0.0  ;;  %v292_v21 = vmax.f32 %v228_v17, 0.0 }
  0x1f   :  { %1365 = vmatpush.bf16.msra.mxu2 %v985_v28  ;;  %1366 = vmatpush.bf16.msra.mxu3 %v985_v28  ;;  %v1291_v28 = vld [vmem:[%s2047_s0 + $0x58] sm:$0xff]   ;;  %v225_v38 = vadd.f32 %v1430_v14, %v157_v33  ;;  %v307_v22 = vmax.f32 %v243_v18, 0.0 }
  0x20   :  { %v308_v23 = vmax.f32 %v244_v19, 0.0 }
  0x21   :  { %451 = vmatmul.bf16.vlgmr.msra.gmra.mxu0 %v347_v31  ;;  %491 = vmatmul.bf16.vlgmr.msra.gmra.mxu1 %v355_v32  ;;  %v1039_v31 = vunpack.c.l.bf16 %v1291_v28  ;;  %v1040_v32 = vunpack.c.h.bf16 %v1291_v28  ;;  %v289_v42 = vmax.f32 %v225_v38, 0.0 }
  0x22   :  { %531 = vmatmul.bf16.vlgmr.msra.gmra.mxu2 %v363_v3  ;;  %v320_v3 = vmax.f32 %v256_v62, 0.0  ;;  %v359_v38 = vpack.c.bf16 %v308_v23, %v307_v22 }
  0x23   :  { %v173_v36 = vmul.f32 %v1417_v7, %v1039_v31  ;;  %v174_v37 = vmul.f32 %v1417_v7, %v1040_v32 }
  0x24   :  { %v365_v11 = vpack.c.bf16 %v320_v3, %v319_v2  ;;  %v1286_v2 = vld [vmem:[%s2047_s0 + $0x30] sm:$0xff]  }
  0x25   :  { %v241_v40 = vadd.f32 %v1430_v14, %v173_v36  ;;  %v242_v41 = vadd.f32 %v1430_v14, %v174_v37  ;;  %v1015_v36 = vunpack.c.l.bf16 %v1285_v26  ;;  %v1016_v37 = vunpack.c.h.bf16 %v1285_v26 }
  0x26   :  { %v1019_v13 = vunpack.c.l.bf16 %v1286_v2  ;;  %v1020_v15 = vunpack.c.h.bf16 %v1286_v2 }
  0x27   :  { %v305_v44 = vmax.f32 %v241_v40, 0.0  ;;  %v306_v45 = vmax.f32 %v242_v41, 0.0  ;;  %v161_v48 = vmul.f32 %v1417_v7, %v1015_v36  ;;  %v162_v49 = vmul.f32 %v1417_v7, %v1016_v37 }
  0x28   :  { %v163_v26 = vmul.f32 %v1417_v7, %v1019_v13 }
  0x29   :  { %v358_v60 = vpack.c.bf16 %v306_v45, %v305_v44 }
  0x31   :  { %456 = vmatmul.bf16.gmra.mxu0 %v348_v56  ;;  %496 = vmatmul.bf16.gmra.mxu1 %v356_v57  ;;  %v200_v56 = vmul.f32 %v1417_v7, %v1092_v52  ;;  %v350_v57 = vpack.c.bf16 %v290_v43, %v289_v42  ;;  %v1293_v43 = vld [vmem:[%s2047_s0 + $0x68] sm:$0xff]  }
  0x32   :  { %536 = vmatmul.bf16.gmra.mxu2 %v364_v35  ;;  %v351_v35 = vpack.c.bf16 %v292_v21, %v291_v20  ;;  %v1047_v50 = vunpack.c.l.bf16 %v1293_v43  ;;  %v1048_v51 = vunpack.c.h.bf16 %v1293_v43  ;;  %v1294_v21 = vld [vmem:[%s2047_s0 + $0x70] sm:$0xff]   ;;  %v1307_v43 = vld [vmem:[%s2047_s0 + $0xd8] sm:$0xff]  }
  0x33   :  { %v268_v0 = vadd.f32 %v1430_v14, %v200_v56  ;;  %v229_v56 = vadd.f32 %v1430_v14, %v161_v48  ;;  %v1104_v48 = vunpack.c.h.bf16 %v1307_v43 }
  0x34   :  { %v177_v54 = vmul.f32 %v1417_v7, %v1047_v50  ;;  %v178_v55 = vmul.f32 %v1417_v7, %v1048_v51 }
  0x35   :  { %v332_v5 = vmax.f32 %v268_v0, 0.0  ;;  %v1300_v0 = vld [vmem:[%s2047_s0 + $0xa0] sm:$0xff]  }
  0x36   :  { %v245_v58 = vadd.f32 %v1430_v14, %v177_v54  ;;  %v246_v59 = vadd.f32 %v1430_v14, %v178_v55  ;;  %v1075_v3 = vunpack.c.l.bf16 %v1300_v0 }
  0x37   :  { %v371_v12 = vpack.c.bf16 %v332_v5, %v331_v4  ;;  %v1076_v4 = vunpack.c.h.bf16 %v1300_v0  ;;  %v1099_v5 = vunpack.c.l.bf16 %v1306_v1 }
  0x38   :  { %v309_v62 = vmax.f32 %v245_v58, 0.0  ;;  %v310_v63 = vmax.f32 %v246_v59, 0.0  ;;  %v191_v8 = vmul.f32 %v1417_v7, %v1075_v3 }
  0x39   :  { %571 = vmatmul.bf16.vlgmr.msra.gmra.mxu3 %v371_v12  ;;  %v192_v9 = vmul.f32 %v1417_v7, %v1076_v4  ;;  %v203_v10 = vmul.f32 %v1417_v7, %v1099_v5 }
  0x3a   :  { %v360_v16 = vpack.c.bf16 %v310_v63, %v309_v62  ;;  %v259_v17 = vadd.f32 %v1430_v14, %v191_v8 }
  0x3b   :  { %v260_v18 = vadd.f32 %v1430_v14, %v192_v9  ;;  %v271_v19 = vadd.f32 %v1430_v14, %v203_v10 }
  0x3c   :  { %v323_v22 = vmax.f32 %v259_v17, 0.0 }
  0x3d   :  { %v324_v23 = vmax.f32 %v260_v18, 0.0 }
  0x41   :  { %461 = vmatmul.bf16.gmra.mxu0 %v349_v24  ;;  %501 = vmatmul.bf16.gmra.mxu1 %v357_v25  ;;  %v1299_v24 = vld [vmem:[%s2047_s0 + $0x98] sm:$0xff]   ;;  %v1305_v25 = vld [vmem:[%s2047_s0 + $0xc8] sm:$0xff]  }
  0x42   :  { %541 = vmatmul.bf16.gmra.mxu2 %v365_v11  ;;  %v1071_v27 = vunpack.c.l.bf16 %v1299_v24  ;;  %v1072_v28 = vunpack.c.h.bf16 %v1299_v24  ;;  %v1095_v29 = vunpack.c.l.bf16 %v1305_v25  ;;  %v1096_v30 = vunpack.c.h.bf16 %v1305_v25 }
  0x43   :  { %v204_v11 = vmul.f32 %v1417_v7, %v1100_v6  ;;  %v335_v24 = vmax.f32 %v271_v19, 0.0 }
  0x44   :  { %v189_v31 = vmul.f32 %v1417_v7, %v1071_v27  ;;  %v190_v32 = vmul.f32 %v1417_v7, %v1072_v28  ;;  %v201_v33 = vmul.f32 %v1417_v7, %v1095_v29  ;;  %v202_v34 = vmul.f32 %v1417_v7, %v1096_v30 }
  0x45   :  { %v272_v20 = vadd.f32 %v1430_v14, %v204_v11  ;;  %v164_v27 = vmul.f32 %v1417_v7, %v1020_v15  ;;  %v1051_v28 = vunpack.c.l.bf16 %v1294_v21  ;;  %v1052_v29 = vunpack.c.h.bf16 %v1294_v21  ;;  %v1308_v21 = vld [vmem:[%s2047_s0 + $0xe0] sm:$0xff]  }
  0x46   :  { %v257_v39 = vadd.f32 %v1430_v14, %v189_v31  ;;  %v258_v40 = vadd.f32 %v1430_v14, %v190_v32  ;;  %v269_v41 = vadd.f32 %v1430_v14, %v201_v33  ;;  %v270_v42 = vadd.f32 %v1430_v14, %v202_v34 }
  0x47   :  { %v336_v25 = vmax.f32 %v272_v20, 0.0  ;;  %v367_v30 = vpack.c.bf16 %v324_v23, %v323_v22  ;;  %v179_v32 = vmul.f32 %v1417_v7, %v1051_v28  ;;  %v180_v33 = vmul.f32 %v1417_v7, %v1052_v29  ;;  %v1302_v20 = vld [vmem:[%s2047_s0 + $0xb0] sm:$0xff]  }
  0x48   :  { %v321_v44 = vmax.f32 %v257_v39, 0.0  ;;  %v322_v45 = vmax.f32 %v258_v40, 0.0  ;;  %v333_v46 = vmax.f32 %v269_v41, 0.0  ;;  %v334_v47 = vmax.f32 %v270_v42, 0.0  ;;  %v1301_v42 = vld [vmem:[%s2047_s0 + $0xa8] sm:$0xff]  }
  0x49   :  { %v373_v31 = vpack.c.bf16 %v336_v25, %v335_v24  ;;  %v231_v34 = vadd.f32 %v1430_v14, %v163_v26  ;;  %v247_v36 = vadd.f32 %v1430_v14, %v179_v32  ;;  %v248_v37 = vadd.f32 %v1430_v14, %v180_v33 }
  0x4a   :  { %v366_v52 = vpack.c.bf16 %v322_v45, %v321_v44  ;;  %v372_v53 = vpack.c.bf16 %v334_v47, %v333_v46  ;;  %v1287_v44 = vld [vmem:[%s2047_s0 + $0x38] sm:$0xff]   ;;  %v1079_v45 = vunpack.c.l.bf16 %v1301_v42  ;;  %v1080_v46 = vunpack.c.h.bf16 %v1301_v42 }
  0x4b   :  { %v311_v40 = vmax.f32 %v247_v36, 0.0  ;;  %v312_v41 = vmax.f32 %v248_v37, 0.0  ;;  %v1103_v47 = vunpack.c.l.bf16 %v1307_v43  ;;  %v1023_v54 = vunpack.c.l.bf16 %v1287_v44  ;;  %v1303_v42 = vld [vmem:[%s2047_s0 + $0xb8] sm:$0xff]   ;;  %v1309_v43 = vld [vmem:[%s2047_s0 + $0xe8] sm:$0xff]  }
  0x4c   :  { %576 = vmatmul.bf16.gmra.mxu3 %v372_v53  ;;  %v194_v50 = vmul.f32 %v1417_v7, %v1080_v46  ;;  %v1024_v55 = vunpack.c.h.bf16 %v1287_v44  ;;  %v1083_v22 = vunpack.c.l.bf16 %v1302_v20  ;;  %v1084_v23 = vunpack.c.h.bf16 %v1302_v20 }
  0x4d   :  { %v205_v51 = vmul.f32 %v1417_v7, %v1103_v47  ;;  %v165_v2 = vmul.f32 %v1417_v7, %v1023_v54  ;;  %v1107_v24 = vunpack.c.l.bf16 %v1308_v21  ;;  %v1108_v25 = vunpack.c.h.bf16 %v1308_v21 }
  0x4e   :  { %v262_v58 = vadd.f32 %v1430_v14, %v194_v50  ;;  %v166_v3 = vmul.f32 %v1417_v7, %v1024_v55  ;;  %v195_v26 = vmul.f32 %v1417_v7, %v1083_v22  ;;  %v1087_v44 = vunpack.c.l.bf16 %v1303_v42 }
  0x4f   :  { %v273_v59 = vadd.f32 %v1430_v14, %v205_v51  ;;  %v233_v11 = vadd.f32 %v1430_v14, %v165_v2  ;;  %v207_v28 = vmul.f32 %v1417_v7, %v1107_v24  ;;  %v208_v29 = vmul.f32 %v1417_v7, %v1108_v25 }
  0x50   :  { %v326_v63 = vmax.f32 %v262_v58, 0.0  ;;  %v263_v32 = vadd.f32 %v1430_v14, %v195_v26  ;;  %v1111_v46 = vunpack.c.l.bf16 %v1309_v43  ;;  %v1112_v47 = vunpack.c.h.bf16 %v1309_v43 }
  0x51   :  { %466 = vmatmul.bf16.gmra.mxu0 %v350_v57  ;;  %506 = vmatmul.bf16.gmra.mxu1 %v358_v60  ;;  %v230_v57 = vadd.f32 %v1430_v14, %v162_v49  ;;  %v293_v60 = vmax.f32 %v229_v56, 0.0  ;;  %v193_v49 = vmul.f32 %v1417_v7, %v1079_v45  ;;  %v361_v56 = vpack.c.bf16 %v312_v41, %v311_v40 }
  0x52   :  { %546 = vmatmul.bf16.gmra.mxu2 %v366_v52  ;;  %v206_v52 = vmul.f32 %v1417_v7, %v1104_v48  ;;  %v337_v0 = vmax.f32 %v273_v59, 0.0  ;;  %v327_v36 = vmax.f32 %v263_v32, 0.0  ;;  %v1088_v45 = vunpack.c.h.bf16 %v1303_v42  ;;  %v1311_v32 = vld [vmem:[%s2047_s0 + $0xf8] sm:$0xff]  }
  0x53   :  { %v294_v61 = vmax.f32 %v230_v57, 0.0  ;;  %v261_v57 = vadd.f32 %v1430_v14, %v193_v49  ;;  %v197_v48 = vmul.f32 %v1417_v7, %v1087_v44  ;;  %v209_v50 = vmul.f32 %v1417_v7, %v1111_v46 }
  0x54   :  { %v198_v49 = vmul.f32 %v1417_v7, %v1088_v45  ;;  %v210_v51 = vmul.f32 %v1417_v7, %v1112_v47 }
  0x55   :  { %v352_v12 = vpack.c.bf16 %v294_v61, %v293_v60  ;;  %v274_v60 = vadd.f32 %v1430_v14, %v206_v52  ;;  %v1295_v61 = vld [vmem:[%s2047_s0 + $0x78] sm:$0xff]   ;;  %v325_v62 = vmax.f32 %v261_v57, 0.0  ;;  %v265_v52 = vadd.f32 %v1430_v14, %v197_v48 }
  0x56   :  { %v1055_v4 = vunpack.c.l.bf16 %v1295_v61  ;;  %v1056_v5 = vunpack.c.h.bf16 %v1295_v61  ;;  %v277_v54 = vadd.f32 %v1430_v14, %v209_v50  ;;  %v278_v55 = vadd.f32 %v1430_v14, %v210_v51 }
  0x57   :  { %v338_v1 = vmax.f32 %v274_v60, 0.0  ;;  %v368_v6 = vpack.c.bf16 %v326_v63, %v325_v62  ;;  %v329_v58 = vmax.f32 %v265_v52, 0.0 }
  0x58   :  { %v181_v9 = vmul.f32 %v1417_v7, %v1055_v4  ;;  %v182_v10 = vmul.f32 %v1417_v7, %v1056_v5  ;;  %v341_v60 = vmax.f32 %v277_v54, 0.0  ;;  %v342_v61 = vmax.f32 %v278_v55, 0.0 }
  0x59   :  { %v374_v8 = vpack.c.bf16 %v338_v1, %v337_v0 }
  0x5a   :  { %v249_v13 = vadd.f32 %v1430_v14, %v181_v9  ;;  %v250_v15 = vadd.f32 %v1430_v14, %v182_v10  ;;  %v376_v63 = vpack.c.bf16 %v342_v61, %v341_v60 }
  0x5c   :  { %581 = vmatmul.bf16.gmra.mxu3 %v373_v31  ;;  %v313_v18 = vmax.f32 %v249_v13, 0.0  ;;  %v314_v19 = vmax.f32 %v250_v15, 0.0 }
  0x5e   :  { %v362_v31 = vpack.c.bf16 %v314_v19, %v313_v18 }
  0x61   :  { %471 = vmatmul.bf16.gmra.mxu0 %v351_v35  ;;  %511 = vmatmul.bf16.gmra.mxu1 %v359_v38  ;;  %v232_v35 = vadd.f32 %v1430_v14, %v164_v27  ;;  %v295_v38 = vmax.f32 %v231_v34, 0.0  ;;  %v196_v27 = vmul.f32 %v1417_v7, %v1084_v23  ;;  %v275_v34 = vadd.f32 %v1430_v14, %v207_v28 }
  0x62   :  { %551 = vmatmul.bf16.gmra.mxu2 %v367_v30 }
  0x63   :  { %v296_v39 = vmax.f32 %v232_v35, 0.0  ;;  %v264_v33 = vadd.f32 %v1430_v14, %v196_v27  ;;  %v276_v35 = vadd.f32 %v1430_v14, %v208_v29 }
  0x65   :  { %v353_v53 = vpack.c.bf16 %v296_v39, %v295_v38  ;;  %v328_v37 = vmax.f32 %v264_v33, 0.0  ;;  %v339_v38 = vmax.f32 %v275_v34, 0.0  ;;  %v340_v39 = vmax.f32 %v276_v35, 0.0 }
  0x66   :  { %v1119_v34 = vunpack.c.l.bf16 %v1311_v32  ;;  %v1120_v35 = vunpack.c.h.bf16 %v1311_v32 }
  0x67   :  { %v369_v40 = vpack.c.bf16 %v328_v37, %v327_v36  ;;  %v375_v41 = vpack.c.bf16 %v340_v39, %v339_v38 }
  0x68   :  { %v213_v36 = vmul.f32 %v1417_v7, %v1119_v34  ;;  %v214_v37 = vmul.f32 %v1417_v7, %v1120_v35 }
  0x6a   :  { %v281_v38 = vadd.f32 %v1430_v14, %v213_v36  ;;  %v282_v39 = vadd.f32 %v1430_v14, %v214_v37 }
  0x6c   :  { %586 = vmatmul.bf16.gmra.mxu3 %v374_v8  ;;  %v1310_v8 = vld [vmem:[%s2047_s0 + $0xf0] sm:$0xff]   ;;  %v345_v45 = vmax.f32 %v281_v38, 0.0  ;;  %v346_v47 = vmax.f32 %v282_v39, 0.0 }
  0x6d   :  { %v1115_v10 = vunpack.c.l.bf16 %v1310_v8 }
  0x71   :  { %476 = vmatmul.bf16.gmra.mxu0 %v352_v12  ;;  %516 = vmatmul.bf16.gmra.mxu1 %v360_v16  ;;  %v234_v12 = vadd.f32 %v1430_v14, %v166_v3  ;;  %v297_v16 = vmax.f32 %v233_v11, 0.0  ;;  %v1116_v11 = vunpack.c.h.bf16 %v1310_v8 }
  0x72   :  { %556 = vmatmul.bf16.gmra.mxu2 %v368_v6 }
  0x73   :  { %v298_v17 = vmax.f32 %v234_v12, 0.0  ;;  %v211_v12 = vmul.f32 %v1417_v7, %v1115_v10  ;;  %v212_v13 = vmul.f32 %v1417_v7, %v1116_v11  ;;  %v378_v7 = vpack.c.bf16 %v346_v47, %v345_v45 }
  0x75   :  { %v354_v30 = vpack.c.bf16 %v298_v17, %v297_v16  ;;  %v279_v15 = vadd.f32 %v1430_v14, %v211_v12  ;;  %v280_v16 = vadd.f32 %v1430_v14, %v212_v13 }
  0x77   :  { %v343_v21 = vmax.f32 %v279_v15, 0.0  ;;  %v344_v22 = vmax.f32 %v280_v16, 0.0 }
  0x79   :  { %v377_v24 = vpack.c.bf16 %v344_v22, %v343_v21 }
  0x7c   :  { %591 = vmatmul.bf16.gmra.mxu3 %v375_v41 }
  0x81   :  { %481 = vmatmul.bf16.gmra.mxu0 %v353_v53  ;;  %521 = vmatmul.bf16.gmra.mxu1 %v361_v56  ;;  %v266_v53 = vadd.f32 %v1430_v14, %v198_v49 }
  0x82   :  { %561 = vmatmul.bf16.gmra.mxu2 %v369_v40 }
  0x83   :  { %v330_v59 = vmax.f32 %v266_v53, 0.0 }
  0x85   :  { %v370_v62 = vpack.c.bf16 %v330_v59, %v329_v58 }
  0x8c   :  { %596 = vmatmul.bf16.gmra.mxu3 %v376_v63 }
  0x91   :  { %486 = vmatmul.bf16.gmra.mxu0 %v354_v30  ;;  %526 = vmatmul.bf16.gmra.mxu1 %v362_v31 }
  0x92   :  { %566 = vmatmul.bf16.gmra.mxu2 %v370_v62 }
  0x9c   :  { %601 = vmatmul.bf16.gmra.mxu3 %v377_v24 }
  0x9e   :  { %v452_v56 = vpop.f32.mrf.mxu0  ;;  %v1643_v57 = vpop.f32.mrf.mxu1 }
  0x9f   :  { %v809_v0 = vmul.f32 %v452_v56, %v452_v56 }
  0xa5   :  { %v1668_v31 = vpop.f32.mrf.mxu2 }
  0xa6   :  { %v454_v1 = vpop.f32.mrf.mxu0  ;;  %v1645_v2 = vpop.f32.mrf.mxu1 }
  0xa7   :  { %v1124_v3 = vpack.c.bf16 %v454_v1, %v452_v56  ;;  %v740_v4 = vadd.f32 %v454_v1, %v452_v56  ;;  %v810_v5 = vmul.f32 %v454_v1, %v454_v1  ;;  %v1164_v6 = vpack.c.bf16 %v1645_v2, %v1643_v57 }
  0xa9   :  { %1125 = vst [vmem:[%s2048_s4] sm:$0xff] %v1124_v3   ;;  %v873_v9 = vadd.f32 %v810_v5, %v809_v0 }
  0xaa   :  { %1319 = vst [vmem:[%s2048_s4 + $0x40] sm:$0xff] %v1164_v6  }
  0xac   :  { %606 = vmatmul.bf16.gmra.mxu3 %v378_v7 }
  0xad   :  { %v1687_v44 = vpop.f32.mrf.mxu2 }
  0xae   :  { %v457_v17 = vpop.f32.mrf.mxu0  ;;  %v1662_v18 = vpop.f32.mrf.mxu1  ;;  %v1204_v46 = vpack.c.bf16 %v1687_v44, %v1668_v31 }
  0xaf   :  { %v741_v19 = vadd.f32 %v740_v4, %v457_v17  ;;  %v811_v20 = vmul.f32 %v457_v17, %v457_v17 }
  0xb0   :  { %1327 = vst [vmem:[%s2048_s4 + $0x80] sm:$0xff] %v1204_v46  }
  0xb1   :  { %v874_v23 = vadd.f32 %v873_v9, %v811_v20 }
  0xb5   :  { %v1700_v52 = vpop.f32.mrf.mxu2 }
  0xb6   :  { %v459_v25 = vpop.f32.mrf.mxu0  ;;  %v1664_v26 = vpop.f32.mrf.mxu1 }
  0xb7   :  { %v1129_v27 = vpack.c.bf16 %v459_v25, %v457_v17  ;;  %v742_v28 = vadd.f32 %v741_v19, %v459_v25  ;;  %v812_v29 = vmul.f32 %v459_v25, %v459_v25  ;;  %v1169_v30 = vpack.c.bf16 %v1664_v26, %v1662_v18 }
  0xb9   :  { %1312 = vst [vmem:[%s2048_s4 + $0x8] sm:$0xff] %v1129_v27   ;;  %v875_v33 = vadd.f32 %v874_v23, %v812_v29 }
  0xba   :  { %1320 = vst [vmem:[%s2048_s4 + $0x48] sm:$0xff] %v1169_v30  }
  0xbc   :  { %v1723_v63 = vpop.f32.mrf.mxu3 }
  0xbd   :  { %v1710_v55 = vpop.f32.mrf.mxu2 }
  0xbe   :  { %v462_v40 = vpop.f32.mrf.mxu0  ;;  %v1683_v41 = vpop.f32.mrf.mxu1  ;;  %v1209_v56 = vpack.c.bf16 %v1710_v55, %v1700_v52 }
  0xbf   :  { %v1685_v42 = vadd.f32 %v742_v28, %v462_v40  ;;  %v813_v43 = vmul.f32 %v462_v40, %v462_v40 }
  0xc0   :  { %1328 = vst [vmem:[%s2048_s4 + $0x88] sm:$0xff] %v1209_v56  }
  0xc1   :  { %v1691_v48 = vadd.f32 %v875_v33, %v813_v43 }
  0xc4   :  { %v1735_v4 = vpop.f32.mrf.mxu3 }
  0xc5   :  { %v1721_v62 = vpop.f32.mrf.mxu2  ;;  %v1244_v6 = vpack.c.bf16 %v1735_v4, %v1723_v63 }
  0xc6   :  { %v464_v14 = vpop.f32.mrf.mxu0  ;;  %v1696_v49 = vpop.f32.mrf.mxu1 }
  0xc7   :  { %v1134_v50 = vpack.c.bf16 %v464_v14, %v462_v40  ;;  %v1174_v51 = vpack.c.bf16 %v1696_v49, %v1683_v41  ;;  %1335 = vst [vmem:[%s2048_s4 + $0xc0] sm:$0xff] %v1244_v6   ;;  %v814_v34 = vmul.f32 %v464_v14, %v464_v14  ;;  %v744_v38 = vadd.f32 %v1685_v42, %v464_v14 }
  0xc9   :  { %1313 = vst [vmem:[%s2048_s4 + $0x10] sm:$0xff] %v1134_v50   ;;  %v877_v39 = vadd.f32 %v1691_v48, %v814_v34 }
  0xca   :  { %1321 = vst [vmem:[%s2048_s4 + $0x50] sm:$0xff] %v1174_v51  }
  0xcd   :  { %v1733_v3 = vpop.f32.mrf.mxu2 }
  0xce   :  { %v467_v53 = vpop.f32.mrf.mxu0  ;;  %v1708_v54 = vpop.f32.mrf.mxu1  ;;  %v1214_v5 = vpack.c.bf16 %v1733_v3, %v1721_v62 }
  0xcf   :  { %v1753_v13 = vpop.f32.mrf.mxu3  ;;  %v815_v37 = vmul.f32 %v467_v53, %v467_v53  ;;  %v745_v43 = vadd.f32 %v744_v38, %v467_v53 }
  0xd0   :  { %1329 = vst [vmem:[%s2048_s4 + $0x90] sm:$0xff] %v1214_v5  }
  0xd1   :  { %v878_v45 = vadd.f32 %v877_v39, %v815_v37 }
  0xd5   :  { %v1751_v12 = vpop.f32.mrf.mxu2 }
  0xd6   :  { %v469_v58 = vpop.f32.mrf.mxu0  ;;  %v1717_v59 = vpop.f32.mrf.mxu1 }
  0xd7   :  { %v1139_v60 = vpack.c.bf16 %v469_v58, %v467_v53  ;;  %v1179_v61 = vpack.c.bf16 %v1717_v59, %v1708_v54  ;;  %v1765_v19 = vpop.f32.mrf.mxu3  ;;  %v816_v40 = vmul.f32 %v469_v58, %v469_v58  ;;  %v746_v50 = vadd.f32 %v745_v43, %v469_v58 }
  0xd8   :  { %v1249_v21 = vpack.c.bf16 %v1765_v19, %v1753_v13 }
  0xd9   :  { %1314 = vst [vmem:[%s2048_s4 + $0x18] sm:$0xff] %v1139_v60   ;;  %v879_v14 = vadd.f32 %v878_v45, %v816_v40 }
  0xda   :  { %1322 = vst [vmem:[%s2048_s4 + $0x58] sm:$0xff] %v1179_v61  }
  0xdb   :  { %1336 = vst [vmem:[%s2048_s4 + $0xc8] sm:$0xff] %v1249_v21  }
  0xdd   :  { %v1763_v17 = vpop.f32.mrf.mxu2 }
  0xde   :  { %v472_v0 = vpop.f32.mrf.mxu0  ;;  %v1731_v1 = vpop.f32.mrf.mxu1  ;;  %v1219_v20 = vpack.c.bf16 %v1763_v17, %v1751_v12 }
  0xdf   :  { %v1783_v28 = vpop.f32.mrf.mxu3  ;;  %v817_v46 = vmul.f32 %v472_v0, %v472_v0  ;;  %v747_v5 = vadd.f32 %v746_v50, %v472_v0 }
  0xe0   :  { %1330 = vst [vmem:[%s2048_s4 + $0x98] sm:$0xff] %v1219_v20  }
  0xe1   :  { %v880_v48 = vadd.f32 %v879_v14, %v817_v46 }
  0xe5   :  { %v1781_v27 = vpop.f32.mrf.mxu2 }
  0xe6   :  { %v474_v8 = vpop.f32.mrf.mxu0  ;;  %v1747_v9 = vpop.f32.mrf.mxu1 }
  0xe7   :  { %v1144_v10 = vpack.c.bf16 %v474_v8, %v472_v0  ;;  %v1184_v11 = vpack.c.bf16 %v1747_v9, %v1731_v1  ;;  %v1795_v33 = vpop.f32.mrf.mxu3  ;;  %v818_v61 = vmul.f32 %v474_v8, %v474_v8  ;;  %v748_v58 = vadd.f32 %v747_v5, %v474_v8 }
  0xe8   :  { %v1254_v36 = vpack.c.bf16 %v1795_v33, %v1783_v28 }
  0xe9   :  { %1315 = vst [vmem:[%s2048_s4 + $0x20] sm:$0xff] %v1144_v10   ;;  %v881_v6 = vadd.f32 %v880_v48, %v818_v61 }
  0xea   :  { %1323 = vst [vmem:[%s2048_s4 + $0x60] sm:$0xff] %v1184_v11  }
  0xeb   :  { %1337 = vst [vmem:[%s2048_s4 + $0xd0] sm:$0xff] %v1254_v36  }
  0xed   :  { %v1793_v32 = vpop.f32.mrf.mxu2 }
  0xee   :  { %v477_v15 = vpop.f32.mrf.mxu0  ;;  %v1761_v16 = vpop.f32.mrf.mxu1  ;;  %v1224_v35 = vpack.c.bf16 %v1793_v32, %v1781_v27 }
  0xef   :  { %v1815_v42 = vpop.f32.mrf.mxu3  ;;  %v819_v53 = vmul.f32 %v477_v15, %v477_v15  ;;  %v749_v11 = vadd.f32 %v748_v58, %v477_v15 }
  0xf0   :  { %1331 = vst [vmem:[%s2048_s4 + $0xa0] sm:$0xff] %v1224_v35  }
  0xf1   :  { %v882_v20 = vadd.f32 %v881_v6, %v819_v53  ;;  %v826_v6 = vmul.f32 %v1645_v2, %v1645_v2 }
  0xf5   :  { %v1813_v60 = vpop.f32.mrf.mxu2 }
  0xf6   :  { %v479_v22 = vpop.f32.mrf.mxu0  ;;  %v1777_v23 = vpop.f32.mrf.mxu1 }
  0xf7   :  { %v1149_v24 = vpack.c.bf16 %v479_v22, %v477_v15  ;;  %v1189_v25 = vpack.c.bf16 %v1777_v23, %v1761_v16  ;;  %v820_v10 = vmul.f32 %v479_v22, %v479_v22  ;;  %v750_v0 = vadd.f32 %v749_v11, %v479_v22  ;;  %v1827_v35 = vpop.f32.mrf.mxu3 }
  0xf8   :  { %v1259_v8 = vpack.c.bf16 %v1827_v35, %v1815_v42 }
  0xf9   :  { %1316 = vst [vmem:[%s2048_s4 + $0x28] sm:$0xff] %v1149_v24   ;;  %v883_v36 = vadd.f32 %v882_v20, %v820_v10  ;;  %v827_v20 = vmul.f32 %v1662_v18, %v1662_v18 }
  0xfa   :  { %1324 = vst [vmem:[%s2048_s4 + $0x68] sm:$0xff] %v1189_v25  }
  0xfb   :  { %1338 = vst [vmem:[%s2048_s4 + $0xd8] sm:$0xff] %v1259_v8  }
  0xfd   :  { %v1825_v34 = vpop.f32.mrf.mxu2 }
  0xfe   :  { %v482_v29 = vpop.f32.mrf.mxu0  ;;  %v1791_v30 = vpop.f32.mrf.mxu1  ;;  %v1229_v38 = vpack.c.bf16 %v1825_v34, %v1813_v60 }
  0xff   :  { %v821_v21 = vmul.f32 %v482_v29, %v482_v29  ;;  %v751_v39 = vadd.f32 %v750_v0, %v482_v29  ;;  %v1845_v48 = vpop.f32.mrf.mxu3 }
 0x100   :  { %1332 = vst [vmem:[%s2048_s4 + $0xa8] sm:$0xff] %v1229_v38  }
 0x101   :  { %v884_v15 = vadd.f32 %v883_v36, %v821_v21 }
 0x105   :  { %v1843_v5 = vpop.f32.mrf.mxu2 }
 0x106   :  { %v484_v47 = vpop.f32.mrf.mxu0  ;;  %v1809_v7 = vpop.f32.mrf.mxu1 }
 0x107   :  { %v1154_v51 = vpack.c.bf16 %v484_v47, %v482_v29  ;;  %v1194_v56 = vpack.c.bf16 %v1809_v7, %v1791_v30  ;;  %v822_v37 = vmul.f32 %v484_v47, %v484_v47  ;;  %v752_v22 = vadd.f32 %v751_v39, %v484_v47  ;;  %v1867_v38 = vpop.f32.mrf.mxu3 }
 0x108   :  { %v825_v47 = vmul.f32 %v1643_v57, %v1643_v57  ;;  %v1264_v8 = vpack.c.bf16 %v1867_v38, %v1845_v48 }
 0x109   :  { %1317 = vst [vmem:[%s2048_s4 + $0x30] sm:$0xff] %v1154_v51   ;;  %v885_v43 = vadd.f32 %v884_v15, %v822_v37 }
 0x10a   :  { %1325 = vst [vmem:[%s2048_s4 + $0x70] sm:$0xff] %v1194_v56  }
 0x10b   :  { %1339 = vst [vmem:[%s2048_s4 + $0xe0] sm:$0xff] %v1264_v8   ;;  %v838_v8 = vmul.f32 %v1809_v7, %v1809_v7 }
 0x10d   :  { %v1865_v37 = vpop.f32.mrf.mxu2 }
 0x10e   :  { %v487_v24 = vpop.f32.mrf.mxu0  ;;  %v1823_v25 = vpop.f32.mrf.mxu1 }
 0x10f   :  { %v823_v40 = vmul.f32 %v487_v24, %v487_v24  ;;  %v753_v45 = vadd.f32 %v752_v22, %v487_v24 }
 0x111   :  { %v886_v46 = vadd.f32 %v885_v43, %v823_v40  ;;  %v831_v43 = vmul.f32 %v1708_v54, %v1708_v54 }
 0x116   :  { %v489_v50 = vpop.f32.mrf.mxu0  ;;  %v1839_v51 = vpop.f32.mrf.mxu1 }
 0x117   :  { %v1159_v56 = vpack.c.bf16 %v489_v50, %v487_v24  ;;  %v754_v14 = vadd.f32 %v753_v45, %v489_v50  ;;  %v824_v29 = vmul.f32 %v489_v50, %v489_v50  ;;  %v1199_v61 = vpack.c.bf16 %v1839_v51, %v1823_v25 }
 0x119   :  { %1318 = vst [vmem:[%s2048_s4 + $0x38] sm:$0xff] %v1159_v56   ;;  %v755_v53 = vadd.f32 %v754_v14, %v1643_v57  ;;  %v887_v58 = vadd.f32 %v886_v46, %v824_v29  ;;  %v828_v57 = vmul.f32 %v1664_v26, %v1664_v26  ;;  %v832_v46 = vmul.f32 %v1717_v59, %v1717_v59  ;;  %v1891_v14 = vpop.f32.mrf.mxu2 }
 0x11a   :  { %1326 = vst [vmem:[%s2048_s4 + $0x78] sm:$0xff] %v1199_v61   ;;  %v833_v29 = vmul.f32 %v1731_v1, %v1731_v1 }
 0x11b   :  { %v756_v10 = vadd.f32 %v755_v53, %v1645_v2  ;;  %v888_v11 = vadd.f32 %v887_v58, %v825_v47  ;;  %v1234_v2 = vpack.c.bf16 %v1865_v37, %v1843_v5  ;;  %v834_v53 = vmul.f32 %v1747_v9, %v1747_v9 }
 0x11d   :  { %v757_v21 = vadd.f32 %v756_v10, %v1662_v18  ;;  %v889_v24 = vadd.f32 %v888_v11, %v826_v6  ;;  %v829_v18 = vmul.f32 %v1683_v41, %v1683_v41  ;;  %1333 = vst [vmem:[%s2048_s4 + $0xb0] sm:$0xff] %v1234_v2   ;;  %v836_v11 = vmul.f32 %v1777_v23, %v1777_v23 }
 0x11f   :  { %v758_v0 = vadd.f32 %v757_v21, %v1664_v26  ;;  %v890_v36 = vadd.f32 %v889_v24, %v827_v20  ;;  %v830_v26 = vmul.f32 %v1696_v49, %v1696_v49 }
 0x121   :  { %v759_v39 = vadd.f32 %v758_v0, %v1683_v41  ;;  %v891_v15 = vadd.f32 %v890_v36, %v828_v57 }
 0x123   :  { %v760_v40 = vadd.f32 %v759_v39, %v1696_v49  ;;  %v892_v22 = vadd.f32 %v891_v15, %v829_v18  ;;  %v1893_v49 = vpop.f32.mrf.mxu3 }
 0x125   :  { %v893_v45 = vadd.f32 %v892_v22, %v830_v26  ;;  %v761_v41 = vadd.f32 %v760_v40, %v1708_v54  ;;  %v840_v40 = vmul.f32 %v1839_v51, %v1839_v51 }
 0x127   :  { %v762_v50 = vadd.f32 %v761_v41, %v1717_v59  ;;  %v894_v56 = vadd.f32 %v893_v45, %v831_v43  ;;  %v835_v59 = vmul.f32 %v1761_v16, %v1761_v16  ;;  %v842_v41 = vmul.f32 %v1687_v44, %v1687_v44 }
 0x129   :  { %v763_v61 = vadd.f32 %v762_v50, %v1731_v1  ;;  %v895_v47 = vadd.f32 %v894_v56, %v832_v46  ;;  %v1907_v1 = vpop.f32.mrf.mxu2  ;;  %v843_v50 = vmul.f32 %v1700_v52, %v1700_v52 }
 0x12b   :  { %v764_v54 = vadd.f32 %v763_v61, %v1747_v9  ;;  %v896_v58 = vadd.f32 %v895_v47, %v833_v29  ;;  %v1909_v24 = vpop.f32.mrf.mxu3  ;;  %v1239_v9 = vpack.c.bf16 %v1907_v1, %v1891_v14  ;;  %v844_v29 = vmul.f32 %v1710_v55, %v1710_v55 }
 0x12c   :  { %v1269_v57 = vpack.c.bf16 %v1909_v24, %v1893_v49 }
 0x12d   :  { %v765_v6 = vadd.f32 %v764_v54, %v1761_v16  ;;  %v897_v10 = vadd.f32 %v896_v58, %v834_v53  ;;  %v837_v16 = vmul.f32 %v1791_v30, %v1791_v30  ;;  %1334 = vst [vmem:[%s2048_s4 + $0xb8] sm:$0xff] %v1239_v9  }
 0x12e   :  { %1340 = vst [vmem:[%s2048_s4 + $0xe8] sm:$0xff] %v1269_v57   ;;  %v849_v57 = vmul.f32 %v1781_v27, %v1781_v27 }
 0x12f   :  { %v766_v20 = vadd.f32 %v765_v6, %v1777_v23  ;;  %v898_v21 = vadd.f32 %v897_v10, %v835_v59  ;;  %v847_v6 = vmul.f32 %v1751_v12, %v1751_v12 }
 0x131   :  { %v767_v0 = vadd.f32 %v766_v20, %v1791_v30  ;;  %v899_v36 = vadd.f32 %v898_v21, %v836_v11  ;;  %v839_v30 = vmul.f32 %v1823_v25, %v1823_v25 }
 0x133   :  { %v900_v23 = vadd.f32 %v899_v36, %v837_v16  ;;  %v768_v2 = vadd.f32 %v767_v0, %v1809_v7  ;;  %v1933_v22 = vpop.f32.mrf.mxu3  ;;  %v841_v7 = vmul.f32 %v1668_v31, %v1668_v31  ;;  %v850_v16 = vmul.f32 %v1793_v32, %v1793_v32 }
 0x135   :  { %v901_v18 = vadd.f32 %v900_v23, %v838_v8  ;;  %v769_v39 = vadd.f32 %v768_v2, %v1823_v25  ;;  %v851_v23 = vmul.f32 %v1813_v60, %v1813_v60 }
 0x137   :  { %v902_v15 = vadd.f32 %v901_v18, %v839_v30  ;;  %v770_v26 = vadd.f32 %v769_v39, %v1839_v51  ;;  %v852_v18 = vmul.f32 %v1825_v34, %v1825_v34 }
 0x139   :  { %v771_v43 = vadd.f32 %v770_v26, %v1668_v31  ;;  %v903_v45 = vadd.f32 %v902_v15, %v840_v40 }
 0x13b   :  { %v772_v46 = vadd.f32 %v771_v43, %v1687_v44  ;;  %v904_v25 = vadd.f32 %v903_v45, %v841_v7  ;;  %v1947_v31 = vpop.f32.mrf.mxu3  ;;  %v845_v44 = vmul.f32 %v1721_v62, %v1721_v62  ;;  %v855_v45 = vmul.f32 %v1891_v14, %v1891_v14 }
 0x13c   :  { %v1274_v53 = vpack.c.bf16 %v1947_v31, %v1933_v22 }
 0x13d   :  { %v773_v56 = vadd.f32 %v772_v46, %v1700_v52  ;;  %v905_v51 = vadd.f32 %v904_v25, %v842_v41  ;;  %v846_v52 = vmul.f32 %v1733_v3, %v1733_v3  ;;  %v857_v25 = vmul.f32 %v1723_v63, %v1723_v63 }
 0x13e   :  { %1341 = vst [vmem:[%s2048_s4 + $0xf0] sm:$0xff] %v1274_v53  }
 0x13f   :  { %v774_v61 = vadd.f32 %v773_v56, %v1710_v55  ;;  %v906_v47 = vadd.f32 %v905_v51, %v843_v50 }
 0x141   :  { %v775_v54 = vadd.f32 %v774_v61, %v1721_v62  ;;  %v907_v58 = vadd.f32 %v906_v47, %v844_v29  ;;  %v848_v62 = vmul.f32 %v1763_v17, %v1763_v17 }
 0x143   :  { %v776_v55 = vadd.f32 %v775_v54, %v1733_v3  ;;  %v908_v59 = vadd.f32 %v907_v58, %v845_v44  ;;  %v1966_v9 = vpop.f32.mrf.mxu3 }
 0x145   :  { %v909_v10 = vadd.f32 %v908_v59, %v846_v52  ;;  %v777_v11 = vadd.f32 %v776_v55, %v1751_v12 }
 0x147   :  { %v778_v20 = vadd.f32 %v777_v11, %v1763_v17  ;;  %v910_v21 = vadd.f32 %v909_v10, %v847_v6 }
 0x149   :  { %v779_v3 = vadd.f32 %v778_v20, %v1781_v27  ;;  %v911_v0 = vadd.f32 %v910_v21, %v848_v62 }
 0x14b   :  { %v780_v36 = vadd.f32 %v779_v3, %v1793_v32  ;;  %v912_v12 = vadd.f32 %v911_v0, %v849_v57  ;;  %v609_v27 = vpop.f32.mrf.mxu3  ;;  %v853_v32 = vmul.f32 %v1843_v5, %v1843_v5 }
 0x14c   :  { %v1279_v30 = vpack.c.bf16 %v609_v27, %v1966_v9 }
 0x14d   :  { %v781_v17 = vadd.f32 %v780_v36, %v1813_v60  ;;  %v913_v2 = vadd.f32 %v912_v12, %v850_v16  ;;  %v868_v16 = vmul.f32 %v1909_v24, %v1909_v24 }
 0x14e   :  { %1342 = vst [vmem:[%s2048_s4 + $0xf8] sm:$0xff] %v1279_v30   ;;  %v872_v30 = vmul.f32 %v609_v27, %v609_v27 }
 0x14f   :  { %v782_v8 = vadd.f32 %v781_v17, %v1825_v34  ;;  %v914_v39 = vadd.f32 %v913_v2, %v851_v23  ;;  %v854_v34 = vmul.f32 %v1865_v37, %v1865_v37  ;;  %v869_v23 = vmul.f32 %v1933_v22, %v1933_v22 }
 0x150   :  { %v870_v2 = vmul.f32 %v1947_v31, %v1947_v31 }
 0x151   :  { %v915_v15 = vadd.f32 %v914_v39, %v852_v18  ;;  %v783_v26 = vadd.f32 %v782_v8, %v1843_v5  ;;  %v856_v5 = vmul.f32 %v1907_v1, %v1907_v1  ;;  %v871_v18 = vmul.f32 %v1966_v9, %v1966_v9 }
 0x153   :  { %v916_v60 = vadd.f32 %v915_v15, %v853_v32  ;;  %v784_v40 = vadd.f32 %v783_v26, %v1865_v37  ;;  %v858_v37 = vmul.f32 %v1735_v4, %v1735_v4 }
 0x155   :  { %v917_v7 = vadd.f32 %v916_v60, %v854_v34  ;;  %v785_v43 = vadd.f32 %v784_v40, %v1891_v14  ;;  %v859_v14 = vmul.f32 %v1753_v13, %v1753_v13 }
 0x157   :  { %v918_v41 = vadd.f32 %v917_v7, %v855_v45  ;;  %v786_v46 = vadd.f32 %v785_v43, %v1907_v1  ;;  %v860_v1 = vmul.f32 %v1765_v19, %v1765_v19 }
 0x159   :  { %v787_v50 = vadd.f32 %v786_v46, %v1723_v63  ;;  %v919_v56 = vadd.f32 %v918_v41, %v856_v5  ;;  %v861_v63 = vmul.f32 %v1783_v28, %v1783_v28 }
 0x15b   :  { %v788_v51 = vadd.f32 %v787_v50, %v1735_v4  ;;  %v920_v29 = vadd.f32 %v919_v56, %v857_v25  ;;  %v862_v4 = vmul.f32 %v1795_v33, %v1795_v33 }
 0x15d   :  { %v789_v61 = vadd.f32 %v788_v51, %v1753_v13  ;;  %v921_v47 = vadd.f32 %v920_v29, %v858_v37  ;;  %v863_v13 = vmul.f32 %v1815_v42, %v1815_v42 }
 0x15f   :  { %v790_v53 = vadd.f32 %v789_v61, %v1765_v19  ;;  %v922_v44 = vadd.f32 %v921_v47, %v859_v14  ;;  %v864_v19 = vmul.f32 %v1827_v35, %v1827_v35 }
 0x161   :  { %v791_v54 = vadd.f32 %v790_v53, %v1783_v28  ;;  %v923_v58 = vadd.f32 %v922_v44, %v860_v1  ;;  %v865_v28 = vmul.f32 %v1845_v48, %v1845_v48 }
 0x163   :  { %v792_v52 = vadd.f32 %v791_v54, %v1795_v33  ;;  %v924_v55 = vadd.f32 %v923_v58, %v861_v63  ;;  %v866_v33 = vmul.f32 %v1867_v38, %v1867_v38 }
 0x165   :  { %v925_v59 = vadd.f32 %v924_v55, %v862_v4  ;;  %v793_v6 = vadd.f32 %v792_v52, %v1815_v42  ;;  %v867_v42 = vmul.f32 %v1893_v49, %v1893_v49 }
 0x167   :  { %v794_v10 = vadd.f32 %v793_v6, %v1827_v35  ;;  %v926_v11 = vadd.f32 %v925_v59, %v863_v13 }
 0x169   :  { %v795_v62 = vadd.f32 %v794_v10, %v1845_v48  ;;  %v927_v20 = vadd.f32 %v926_v11, %v864_v19 }
 0x16b   :  { %v796_v21 = vadd.f32 %v795_v62, %v1867_v38  ;;  %v928_v57 = vadd.f32 %v927_v20, %v865_v28 }
 0x16d   :  { %v797_v3 = vadd.f32 %v796_v21, %v1893_v49  ;;  %v929_v0 = vadd.f32 %v928_v57, %v866_v33 }
 0x16f   :  { %v798_v35 = vadd.f32 %v797_v3, %v1909_v24  ;;  %v930_v36 = vadd.f32 %v929_v0, %v867_v42 }
 0x171   :  { %v931_v48 = vadd.f32 %v930_v36, %v868_v16  ;;  %v799_v12 = vadd.f32 %v798_v35, %v1933_v22 }
 0x173   :  { %v932_v38 = vadd.f32 %v931_v48, %v869_v23  ;;  %v800_v17 = vadd.f32 %v799_v12, %v1947_v31 }
 0x175   :  { %v933_v49 = vadd.f32 %v932_v38, %v870_v2  ;;  %v801_v8 = vadd.f32 %v800_v17, %v1966_v9 }
 0x177   :  { %v934_v24 = vadd.f32 %v933_v49, %v871_v18  ;;  %v802_v39 = vadd.f32 %v801_v8, %v609_v27 }
 0x179   :  { %v803_v15 = vrot.slane %v802_v39, 4  ;;  %v935_v26 = vadd.f32 %v934_v24, %v872_v30 }
 0x17b   :  { %v804_v32 = vadd.f32 %v803_v15, %v802_v39  ;;  %v936_v60 = vrot.slane %v935_v26, 4 }
 0x17d   :  { %v805_v22 = vrot.slane %v804_v32, 2  ;;  %v937_v40 = vadd.f32 %v936_v60, %v935_v26 }
 0x17f   :  { %v806_v34 = vadd.f32 %v805_v22, %v804_v32  ;;  %v938_v7 = vrot.slane %v937_v40, 2 }
 0x181   :  { %v807_v43 = vrot.slane %v806_v34, 1  ;;  %v939_v45 = vadd.f32 %v938_v7, %v937_v40 }
 0x183   :  { %v940_v31 = vrot.slane %v939_v45, 1  ;;  %v808_v41 = vadd.f32 %v807_v43, %v806_v34 }
 0x185   :  { %v941_v46 = vadd.f32 %v940_v31, %v939_v45 }
 0x187   :  { %v943_v5 = vsel %vm942_vm0, %v808_v41, %v941_v46 }
 0x188   :  { %944 = vst [vmem:[%s2049_s5] sm:$0x3] %v943_v5 }

// kernel: pspnet_block.4
= control target key start
LH: loop header
LB: loop body
LE: loop exit
PB: predicated region body
PF: predicated region fallthrough
CT: control target
= control target key end

     0   :  { %vm678_vm0 = vcmask 1040384   ;;  %s1577_s1 = inlined_call_operand.vmem [shape: bf16[128,128], index: 1, kind: input, shape index: {}]   ;;  %s1578_s2 = inlined_call_operand.vmem [shape: f32[1,128], index: 2, kind: input, shape index: {}]   ;;  %s1579_s3 = inlined_call_operand.vmem [shape: f32[1,128], index: 3, kind: input, shape index: {}]   ;;  %s1580_s0 = inlined_call_operand.vmem [shape: f32[512,128], index: 0, kind: input, shape index: {}]   ;;  %s1581_s4 = inlined_call_operand.vmem [shape: bf16[512,128], index: 4, kind: output, shape index: {0}]   ;;  %s1582_s5 = inlined_call_operand.vmem [shape: f32[1,2,128], index: 5, kind: output, shape index: {1}]  }
   0x1   :  { %v728_v0 = vld [vmem:[%s1577_s1 + $0x38] sm:$0xff]  ;;  %v727_v1 = vld [vmem:[%s1577_s1 + $0x30] sm:$0xff]  ;;  %v726_v2 = vld [vmem:[%s1577_s1 + $0x28] sm:$0xff] }
   0x2   :  { %179 = vmatpush.bf16.msra.mxu0 %v728_v0  ;;  %920 = vmatpush.bf16.msra.mxu1 %v728_v0  ;;  %v725_v3 = vld [vmem:[%s1577_s1 + $0x20] sm:$0xff]  ;;  %v724_v4 = vld [vmem:[%s1577_s1 + $0x18] sm:$0xff]  ;;  %v723_v5 = vld [vmem:[%s1577_s1 + $0x10] sm:$0xff] }
   0x3   :  { %921 = vmatpush.bf16.msra.mxu2 %v728_v0  ;;  %922 = vmatpush.bf16.msra.mxu3 %v728_v0  ;;  %v722_v6 = vld [vmem:[%s1577_s1 + $0x8] sm:$0xff]  ;;  %v721_v7 = vld [vmem:[%s1577_s1] sm:$0xff]  ;;  %v21_v14 = vld [vmem:[%s1580_s0 + $0x10] sm:$0xff] }
   0x4   :  { %v19_v8 = vld [vmem:[%s1580_s0] sm:$0xff]  ;;  %v20_v9 = vld [vmem:[%s1580_s0 + $0x8] sm:$0xff]  ;;  %v22_v15 = vld [vmem:[%s1580_s0 + $0x18] sm:$0xff] }
   0x5   :  { %v35_v10 = vld [vmem:[%s1580_s0 + $0x80] sm:$0xff]  ;;  %v36_v11 = vld [vmem:[%s1580_s0 + $0x88] sm:$0xff]  ;;  %v83_v12 = vpack.c.bf16 %v20_v9, %v19_v8  ;;  %v37_v16 = vld [vmem:[%s1580_s0 + $0x90] sm:$0xff]  ;;  %v84_v18 = vpack.c.bf16 %v22_v15, %v21_v14 }
   0x6   :  { %180 = vmatpush.bf16.msra.mxu0 %v727_v1  ;;  %923 = vmatpush.bf16.msra.mxu1 %v727_v1  ;;  %v91_v13 = vpack.c.bf16 %v36_v11, %v35_v10  ;;  %v38_v17 = vld [vmem:[%s1580_s0 + $0x98] sm:$0xff]  ;;  %v51_v20 = vld [vmem:[%s1580_s0 + $0x100] sm:$0xff]  ;;  %v52_v21 = vld [vmem:[%s1580_s0 + $0x108] sm:$0xff] }
   0x7   :  { %924 = vmatpush.bf16.msra.mxu2 %v727_v1  ;;  %925 = vmatpush.bf16.msra.mxu3 %v727_v1  ;;  %v92_v19 = vpack.c.bf16 %v38_v17, %v37_v16  ;;  %v99_v22 = vpack.c.bf16 %v52_v21, %v51_v20  ;;  %v23_v23 = vld [vmem:[%s1580_s0 + $0x20] sm:$0xff]  ;;  %v24_v24 = vld [vmem:[%s1580_s0 + $0x28] sm:$0xff]  ;;  %v53_v29 = vld [vmem:[%s1580_s0 + $0x110] sm:$0xff] }
   0x8   :  { %v39_v25 = vld [vmem:[%s1580_s0 + $0xa0] sm:$0xff]  ;;  %v40_v26 = vld [vmem:[%s1580_s0 + $0xa8] sm:$0xff]  ;;  %v85_v27 = vpack.c.bf16 %v24_v24, %v23_v23  ;;  %v54_v30 = vld [vmem:[%s1580_s0 + $0x118] sm:$0xff] }
   0x9   :  { %v93_v28 = vpack.c.bf16 %v40_v26, %v39_v25  ;;  %v100_v31 = vpack.c.bf16 %v54_v30, %v53_v29  ;;  %v25_v32 = vld [vmem:[%s1580_s0 + $0x30] sm:$0xff]  ;;  %v26_v33 = vld [vmem:[%s1580_s0 + $0x38] sm:$0xff]  ;;  %v55_v38 = vld [vmem:[%s1580_s0 + $0x120] sm:$0xff] }
   0xa   :  { %181 = vmatpush.bf16.msra.mxu0 %v726_v2  ;;  %926 = vmatpush.bf16.msra.mxu1 %v726_v2  ;;  %v41_v34 = vld [vmem:[%s1580_s0 + $0xb0] sm:$0xff]  ;;  %v42_v35 = vld [vmem:[%s1580_s0 + $0xb8] sm:$0xff]  ;;  %v86_v36 = vpack.c.bf16 %v26_v33, %v25_v32  ;;  %v56_v39 = vld [vmem:[%s1580_s0 + $0x128] sm:$0xff] }
   0xb   :  { %927 = vmatpush.bf16.msra.mxu2 %v726_v2  ;;  %928 = vmatpush.bf16.msra.mxu3 %v726_v2  ;;  %v94_v37 = vpack.c.bf16 %v42_v35, %v41_v34  ;;  %v67_v40 = vld [vmem:[%s1580_s0 + $0x180] sm:$0xff]  ;;  %v101_v41 = vpack.c.bf16 %v56_v39, %v55_v38  ;;  %v68_v42 = vld [vmem:[%s1580_s0 + $0x188] sm:$0xff]  ;;  %v57_v50 = vld [vmem:[%s1580_s0 + $0x130] sm:$0xff] }
   0xc   :  { %v107_v43 = vpack.c.bf16 %v68_v42, %v67_v40  ;;  %v27_v44 = vld [vmem:[%s1580_s0 + $0x40] sm:$0xff]  ;;  %v28_v45 = vld [vmem:[%s1580_s0 + $0x48] sm:$0xff]  ;;  %v58_v51 = vld [vmem:[%s1580_s0 + $0x138] sm:$0xff] }
   0xd   :  { %v43_v46 = vld [vmem:[%s1580_s0 + $0xc0] sm:$0xff]  ;;  %v44_v47 = vld [vmem:[%s1580_s0 + $0xc8] sm:$0xff]  ;;  %v87_v48 = vpack.c.bf16 %v28_v45, %v27_v44  ;;  %v69_v52 = vld [vmem:[%s1580_s0 + $0x190] sm:$0xff]  ;;  %v102_v53 = vpack.c.bf16 %v58_v51, %v57_v50 }
   0xe   :  { %182 = vmatpush.bf16.msra.mxu0 %v725_v3  ;;  %929 = vmatpush.bf16.msra.mxu1 %v725_v3  ;;  %v95_v49 = vpack.c.bf16 %v44_v47, %v43_v46  ;;  %v70_v54 = vld [vmem:[%s1580_s0 + $0x198] sm:$0xff]  ;;  %v29_v56 = vld [vmem:[%s1580_s0 + $0x50] sm:$0xff]  ;;  %v59_v62 = vld [vmem:[%s1580_s0 + $0x140] sm:$0xff] }
   0xf   :  { %930 = vmatpush.bf16.msra.mxu2 %v725_v3  ;;  %931 = vmatpush.bf16.msra.mxu3 %v725_v3  ;;  %v108_v55 = vpack.c.bf16 %v70_v54, %v69_v52  ;;  %v30_v57 = vld [vmem:[%s1580_s0 + $0x58] sm:$0xff]  ;;  %v45_v58 = vld [vmem:[%s1580_s0 + $0xd0] sm:$0xff]  ;;  %v60_v63 = vld [vmem:[%s1580_s0 + $0x148] sm:$0xff] }
  0x10   :  { %v46_v59 = vld [vmem:[%s1580_s0 + $0xd8] sm:$0xff]  ;;  %v88_v60 = vpack.c.bf16 %v30_v57, %v29_v56  ;;  %v71_v0 = vld [vmem:[%s1580_s0 + $0x1a0] sm:$0xff]  ;;  %v103_v1 = vpack.c.bf16 %v60_v63, %v59_v62  ;;  %v72_v2 = vld [vmem:[%s1580_s0 + $0x1a8] sm:$0xff] }
  0x11   :  { %v96_v61 = vpack.c.bf16 %v46_v59, %v45_v58  ;;  %v109_v3 = vpack.c.bf16 %v72_v2, %v71_v0  ;;  %v61_v10 = vld [vmem:[%s1580_s0 + $0x150] sm:$0xff]  ;;  %v62_v11 = vld [vmem:[%s1580_s0 + $0x158] sm:$0xff]  ;;  %v64_v23 = vld [vmem:[%s1580_s0 + $0x168] sm:$0xff] }
  0x12   :  { %183 = vmatpush.bf16.msra.mxu0 %v724_v4  ;;  %932 = vmatpush.bf16.msra.mxu1 %v724_v4  ;;  %v74_v14 = vld [vmem:[%s1580_s0 + $0x1b8] sm:$0xff]  ;;  %v33_v16 = vld [vmem:[%s1580_s0 + $0x70] sm:$0xff]  ;;  %v75_v24 = vld [vmem:[%s1580_s0 + $0x1c0] sm:$0xff] }
  0x13   :  { %933 = vmatpush.bf16.msra.mxu2 %v724_v4  ;;  %934 = vmatpush.bf16.msra.mxu3 %v724_v4  ;;  %v31_v4 = vld [vmem:[%s1580_s0 + $0x60] sm:$0xff]  ;;  %v34_v17 = vld [vmem:[%s1580_s0 + $0x78] sm:$0xff]  ;;  %v76_v26 = vld [vmem:[%s1580_s0 + $0x1c8] sm:$0xff] }
  0x14   :  { %v90_v20 = vpack.c.bf16 %v34_v17, %v33_v16  ;;  %v65_v30 = vld [vmem:[%s1580_s0 + $0x170] sm:$0xff]  ;;  %v78_v34 = vld [vmem:[%s1580_s0 + $0x1d8] sm:$0xff] }
  0x15   :  { %v77_v32 = vld [vmem:[%s1580_s0 + $0x1d0] sm:$0xff] }
  0x16   :  { %184 = vmatpush.bf16.msra.mxu0 %v723_v5  ;;  %935 = vmatpush.bf16.msra.mxu1 %v723_v5  ;;  %v112_v35 = vpack.c.bf16 %v78_v34, %v77_v32  ;;  %v81_v2 = vld [vmem:[%s1580_s0 + $0x1f0] sm:$0xff] }
  0x17   :  { %936 = vmatpush.bf16.msra.mxu2 %v723_v5  ;;  %937 = vmatpush.bf16.msra.mxu3 %v723_v5  ;;  %v32_v5 = vld [vmem:[%s1580_s0 + $0x68] sm:$0xff] }
  0x18   :  { %v89_v8 = vpack.c.bf16 %v32_v5, %v31_v4 }
  0x1a   :  { %185 = vmatpush.bf16.msra.mxu0 %v722_v6  ;;  %938 = vmatpush.bf16.msra.mxu1 %v722_v6 }
  0x1b   :  { %939 = vmatpush.bf16.msra.mxu2 %v722_v6  ;;  %940 = vmatpush.bf16.msra.mxu3 %v722_v6  ;;  %v47_v6 = vld [vmem:[%s1580_s0 + $0xe0] sm:$0xff] }
  0x1e   :  { %186 = vmatpush.bf16.msra.mxu0 %v721_v7  ;;  %941 = vmatpush.bf16.msra.mxu1 %v721_v7 }
  0x1f   :  { %942 = vmatpush.bf16.msra.mxu2 %v721_v7  ;;  %943 = vmatpush.bf16.msra.mxu3 %v721_v7  ;;  %v48_v7 = vld [vmem:[%s1580_s0 + $0xe8] sm:$0xff] }
  0x20   :  { %v97_v9 = vpack.c.bf16 %v48_v7, %v47_v6 }
  0x21   :  { %187 = vmatmul.bf16.vlgmr.msra.gmra.mxu0 %v83_v12  ;;  %227 = vmatmul.bf16.vlgmr.msra.gmra.mxu1 %v91_v13  ;;  %v73_v12 = vld [vmem:[%s1580_s0 + $0x1b0] sm:$0xff]  ;;  %v104_v13 = vpack.c.bf16 %v62_v11, %v61_v10 }
  0x22   :  { %267 = vmatmul.bf16.vlgmr.msra.gmra.mxu2 %v99_v22  ;;  %307 = vmatmul.bf16.vlgmr.msra.gmra.mxu3 %v107_v43  ;;  %v110_v15 = vpack.c.bf16 %v74_v14, %v73_v12  ;;  %v63_v22 = vld [vmem:[%s1580_s0 + $0x160] sm:$0xff] }
  0x23   :  { %v105_v25 = vpack.c.bf16 %v64_v23, %v63_v22 }
  0x31   :  { %192 = vmatmul.bf16.gmra.mxu0 %v84_v18  ;;  %232 = vmatmul.bf16.gmra.mxu1 %v92_v19  ;;  %v49_v18 = vld [vmem:[%s1580_s0 + $0xf0] sm:$0xff]  ;;  %v50_v19 = vld [vmem:[%s1580_s0 + $0xf8] sm:$0xff] }
  0x32   :  { %272 = vmatmul.bf16.gmra.mxu2 %v100_v31  ;;  %312 = vmatmul.bf16.gmra.mxu3 %v108_v55  ;;  %v98_v21 = vpack.c.bf16 %v50_v19, %v49_v18  ;;  %v66_v31 = vld [vmem:[%s1580_s0 + $0x178] sm:$0xff] }
  0x33   :  { %v106_v33 = vpack.c.bf16 %v66_v31, %v65_v30 }
  0x41   :  { %197 = vmatmul.bf16.gmra.mxu0 %v85_v27  ;;  %237 = vmatmul.bf16.gmra.mxu1 %v93_v28  ;;  %v111_v27 = vpack.c.bf16 %v76_v26, %v75_v24 }
  0x42   :  { %277 = vmatmul.bf16.gmra.mxu2 %v101_v41  ;;  %317 = vmatmul.bf16.gmra.mxu3 %v109_v3  ;;  %v82_v3 = vld [vmem:[%s1580_s0 + $0x1f8] sm:$0xff] }
  0x43   :  { %v114_v5 = vpack.c.bf16 %v82_v3, %v81_v2 }
  0x51   :  { %202 = vmatmul.bf16.gmra.mxu0 %v86_v36  ;;  %242 = vmatmul.bf16.gmra.mxu1 %v94_v37 }
  0x52   :  { %282 = vmatmul.bf16.gmra.mxu2 %v102_v53  ;;  %322 = vmatmul.bf16.gmra.mxu3 %v110_v15 }
  0x61   :  { %207 = vmatmul.bf16.gmra.mxu0 %v87_v48  ;;  %247 = vmatmul.bf16.gmra.mxu1 %v95_v49  ;;  %v79_v48 = vld [vmem:[%s1580_s0 + $0x1e0] sm:$0xff]  ;;  %v80_v49 = vld [vmem:[%s1580_s0 + $0x1e8] sm:$0xff] }
  0x62   :  { %287 = vmatmul.bf16.gmra.mxu2 %v103_v1  ;;  %327 = vmatmul.bf16.gmra.mxu3 %v111_v27  ;;  %v113_v51 = vpack.c.bf16 %v80_v49, %v79_v48 }
  0x71   :  { %212 = vmatmul.bf16.gmra.mxu0 %v88_v60  ;;  %252 = vmatmul.bf16.gmra.mxu1 %v96_v61 }
  0x72   :  { %292 = vmatmul.bf16.gmra.mxu2 %v104_v13  ;;  %332 = vmatmul.bf16.gmra.mxu3 %v112_v35 }
  0x81   :  { %217 = vmatmul.bf16.gmra.mxu0 %v89_v8  ;;  %257 = vmatmul.bf16.gmra.mxu1 %v97_v9 }
  0x82   :  { %297 = vmatmul.bf16.gmra.mxu2 %v105_v25  ;;  %337 = vmatmul.bf16.gmra.mxu3 %v113_v51 }
  0x91   :  { %222 = vmatmul.bf16.gmra.mxu0 %v90_v20  ;;  %262 = vmatmul.bf16.gmra.mxu1 %v98_v21 }
  0x92   :  { %302 = vmatmul.bf16.gmra.mxu2 %v106_v33  ;;  %342 = vmatmul.bf16.gmra.mxu3 %v114_v5 }
  0x9e   :  { %v188_v28 = vpop.f32.mrf.mxu0  ;;  %v1166_v29 = vpop.f32.mrf.mxu1 }
  0x9f   :  { %v545_v36 = vmul.f32 %v188_v28, %v188_v28 }
  0xa5   :  { %v1202_v58 = vpop.f32.mrf.mxu2  ;;  %v1256_v20 = vpop.f32.mrf.mxu3 }
  0xa6   :  { %v190_v37 = vpop.f32.mrf.mxu0  ;;  %v1180_v38 = vpop.f32.mrf.mxu1 }
  0xa7   :  { %v732_v39 = vpack.c.bf16 %v190_v37, %v188_v28  ;;  %v476_v40 = vadd.f32 %v190_v37, %v188_v28  ;;  %v546_v41 = vmul.f32 %v190_v37, %v190_v37  ;;  %v772_v42 = vpack.c.bf16 %v1180_v38, %v1166_v29 }
  0xa9   :  { %733 = vst [vmem:[%s1581_s4] sm:$0xff] %v732_v39   ;;  %v609_v43 = vadd.f32 %v546_v41, %v545_v36 }
  0xaa   :  { %896 = vst [vmem:[%s1581_s4 + $0x40] sm:$0xff] %v772_v42  }
  0xad   :  { %v1214_v0 = vpop.f32.mrf.mxu2  ;;  %v1268_v24 = vpop.f32.mrf.mxu3 }
  0xae   :  { %v193_v44 = vpop.f32.mrf.mxu0  ;;  %v1190_v45 = vpop.f32.mrf.mxu1  ;;  %v812_v1 = vpack.c.bf16 %v1214_v0, %v1202_v58  ;;  %v852_v26 = vpack.c.bf16 %v1268_v24, %v1256_v20 }
  0xaf   :  { %v477_v46 = vadd.f32 %v476_v40, %v193_v44  ;;  %v547_v47 = vmul.f32 %v193_v44, %v193_v44 }
  0xb0   :  { %904 = vst [vmem:[%s1581_s4 + $0x80] sm:$0xff] %v812_v1  }
  0xb1   :  { %v610_v50 = vadd.f32 %v609_v43, %v547_v47  ;;  %912 = vst [vmem:[%s1581_s4 + $0xc0] sm:$0xff] %v852_v26  }
  0xb5   :  { %v1233_v10 = vpop.f32.mrf.mxu2  ;;  %v1286_v33 = vpop.f32.mrf.mxu3 }
  0xb6   :  { %v195_v52 = vpop.f32.mrf.mxu0  ;;  %v1198_v53 = vpop.f32.mrf.mxu1 }
  0xb7   :  { %v737_v54 = vpack.c.bf16 %v195_v52, %v193_v44  ;;  %v478_v55 = vadd.f32 %v477_v46, %v195_v52  ;;  %v548_v56 = vmul.f32 %v195_v52, %v195_v52  ;;  %v777_v57 = vpack.c.bf16 %v1198_v53, %v1190_v45 }
  0xb9   :  { %889 = vst [vmem:[%s1581_s4 + $0x8] sm:$0xff] %v737_v54   ;;  %v611_v59 = vadd.f32 %v610_v50, %v548_v56 }
  0xba   :  { %897 = vst [vmem:[%s1581_s4 + $0x48] sm:$0xff] %v777_v57  }
  0xbd   :  { %v1243_v13 = vpop.f32.mrf.mxu2  ;;  %v1298_v37 = vpop.f32.mrf.mxu3 }
  0xbe   :  { %v198_v60 = vpop.f32.mrf.mxu0  ;;  %v1210_v61 = vpop.f32.mrf.mxu1  ;;  %v817_v14 = vpack.c.bf16 %v1243_v13, %v1233_v10  ;;  %v857_v40 = vpack.c.bf16 %v1298_v37, %v1286_v33 }
  0xbf   :  { %v1212_v62 = vadd.f32 %v478_v55, %v198_v60  ;;  %v549_v63 = vmul.f32 %v198_v60, %v198_v60 }
  0xc0   :  { %905 = vst [vmem:[%s1581_s4 + $0x88] sm:$0xff] %v817_v14  }
  0xc1   :  { %v1224_v4 = vadd.f32 %v611_v59, %v549_v63  ;;  %913 = vst [vmem:[%s1581_s4 + $0xc8] sm:$0xff] %v857_v40  }
  0xc5   :  { %v1254_v19 = vpop.f32.mrf.mxu2  ;;  %v1316_v47 = vpop.f32.mrf.mxu3 }
  0xc6   :  { %v200_v6 = vpop.f32.mrf.mxu0  ;;  %v1229_v7 = vpop.f32.mrf.mxu1 }
  0xc7   :  { %v742_v8 = vpack.c.bf16 %v200_v6, %v198_v60  ;;  %v782_v9 = vpack.c.bf16 %v1229_v7, %v1210_v61  ;;  %v550_v52 = vmul.f32 %v200_v6, %v200_v6  ;;  %v480_v57 = vadd.f32 %v1212_v62, %v200_v6 }
  0xc9   :  { %890 = vst [vmem:[%s1581_s4 + $0x10] sm:$0xff] %v742_v8   ;;  %v613_v59 = vadd.f32 %v1224_v4, %v550_v52 }
  0xca   :  { %898 = vst [vmem:[%s1581_s4 + $0x50] sm:$0xff] %v782_v9  }
  0xcd   :  { %v1266_v23 = vpop.f32.mrf.mxu2  ;;  %v1328_v51 = vpop.f32.mrf.mxu3 }
  0xce   :  { %v203_v11 = vpop.f32.mrf.mxu0  ;;  %v1241_v12 = vpop.f32.mrf.mxu1  ;;  %v822_v25 = vpack.c.bf16 %v1266_v23, %v1254_v19  ;;  %v862_v55 = vpack.c.bf16 %v1328_v51, %v1316_v47 }
  0xcf   :  { %v551_v56 = vmul.f32 %v203_v11, %v203_v11  ;;  %v481_v63 = vadd.f32 %v480_v57, %v203_v11 }
  0xd0   :  { %906 = vst [vmem:[%s1581_s4 + $0x90] sm:$0xff] %v822_v25  }
  0xd1   :  { %914 = vst [vmem:[%s1581_s4 + $0xd0] sm:$0xff] %v862_v55   ;;  %v614_v1 = vadd.f32 %v613_v59, %v551_v56 }
  0xd5   :  { %v1284_v32 = vpop.f32.mrf.mxu2  ;;  %v1348_v62 = vpop.f32.mrf.mxu3 }
  0xd6   :  { %v205_v15 = vpop.f32.mrf.mxu0  ;;  %v1250_v16 = vpop.f32.mrf.mxu1 }
  0xd7   :  { %v747_v17 = vpack.c.bf16 %v205_v15, %v203_v11  ;;  %v787_v18 = vpack.c.bf16 %v1250_v16, %v1241_v12  ;;  %v552_v60 = vmul.f32 %v205_v15, %v205_v15  ;;  %v482_v8 = vadd.f32 %v481_v63, %v205_v15 }
  0xd9   :  { %891 = vst [vmem:[%s1581_s4 + $0x18] sm:$0xff] %v747_v17   ;;  %v615_v6 = vadd.f32 %v614_v1, %v552_v60 }
  0xda   :  { %899 = vst [vmem:[%s1581_s4 + $0x58] sm:$0xff] %v787_v18  }
  0xdd   :  { %v1296_v36 = vpop.f32.mrf.mxu2 }
  0xde   :  { %v208_v21 = vpop.f32.mrf.mxu0  ;;  %v1264_v22 = vpop.f32.mrf.mxu1  ;;  %v827_v39 = vpack.c.bf16 %v1296_v36, %v1284_v32 }
  0xdf   :  { %v553_v2 = vmul.f32 %v208_v21, %v208_v21  ;;  %v483_v25 = vadd.f32 %v482_v8, %v208_v21 }
  0xe0   :  { %907 = vst [vmem:[%s1581_s4 + $0x98] sm:$0xff] %v827_v39  }
  0xe1   :  { %v616_v4 = vadd.f32 %v615_v6, %v553_v2 }
  0xe5   :  { %v1314_v46 = vpop.f32.mrf.mxu2 }
  0xe6   :  { %v210_v27 = vpop.f32.mrf.mxu0  ;;  %v1280_v28 = vpop.f32.mrf.mxu1 }
  0xe7   :  { %v752_v30 = vpack.c.bf16 %v210_v27, %v208_v21  ;;  %v792_v31 = vpack.c.bf16 %v1280_v28, %v1264_v22  ;;  %v554_v18 = vmul.f32 %v210_v27, %v210_v27  ;;  %v484_v15 = vadd.f32 %v483_v25, %v210_v27 }
  0xe9   :  { %892 = vst [vmem:[%s1581_s4 + $0x20] sm:$0xff] %v752_v30   ;;  %v617_v26 = vadd.f32 %v616_v4, %v554_v18 }
  0xea   :  { %900 = vst [vmem:[%s1581_s4 + $0x60] sm:$0xff] %v792_v31  }
  0xed   :  { %v1326_v50 = vpop.f32.mrf.mxu2 }
  0xee   :  { %v213_v34 = vpop.f32.mrf.mxu0  ;;  %v1294_v35 = vpop.f32.mrf.mxu1  ;;  %v832_v54 = vpack.c.bf16 %v1326_v50, %v1314_v46 }
  0xef   :  { %v555_v11 = vmul.f32 %v213_v34, %v213_v34  ;;  %v485_v31 = vadd.f32 %v484_v15, %v213_v34 }
  0xf0   :  { %908 = vst [vmem:[%s1581_s4 + $0xa0] sm:$0xff] %v832_v54   ;;  %v1360_v54 = vpop.f32.mrf.mxu3 }
  0xf1   :  { %v618_v39 = vadd.f32 %v617_v26, %v555_v11  ;;  %v867_v27 = vpack.c.bf16 %v1360_v54, %v1348_v62  ;;  %v562_v26 = vmul.f32 %v1180_v38, %v1180_v38 }
  0xf3   :  { %915 = vst [vmem:[%s1581_s4 + $0xd8] sm:$0xff] %v867_v27  }
  0xf5   :  { %v1346_v17 = vpop.f32.mrf.mxu2 }
  0xf6   :  { %v215_v41 = vpop.f32.mrf.mxu0  ;;  %v1310_v42 = vpop.f32.mrf.mxu1 }
  0xf7   :  { %v757_v43 = vpack.c.bf16 %v215_v41, %v213_v34  ;;  %v797_v44 = vpack.c.bf16 %v1310_v42, %v1294_v35  ;;  %v556_v30 = vmul.f32 %v215_v41, %v215_v41  ;;  %v486_v21 = vadd.f32 %v485_v31, %v215_v41 }
  0xf8   :  { %v1378_v4 = vpop.f32.mrf.mxu3 }
  0xf9   :  { %893 = vst [vmem:[%s1581_s4 + $0x28] sm:$0xff] %v757_v43   ;;  %v619_v55 = vadd.f32 %v618_v39, %v556_v30  ;;  %v563_v39 = vmul.f32 %v1190_v45, %v1190_v45 }
  0xfa   :  { %901 = vst [vmem:[%s1581_s4 + $0x68] sm:$0xff] %v797_v44  }
  0xfd   :  { %v1358_v52 = vpop.f32.mrf.mxu2 }
  0xfe   :  { %v218_v48 = vpop.f32.mrf.mxu0  ;;  %v1324_v49 = vpop.f32.mrf.mxu1  ;;  %v837_v57 = vpack.c.bf16 %v1358_v52, %v1346_v17 }
  0xff   :  { %v557_v40 = vmul.f32 %v218_v48, %v218_v48  ;;  %v487_v59 = vadd.f32 %v486_v21, %v218_v48 }
 0x100   :  { %909 = vst [vmem:[%s1581_s4 + $0xa8] sm:$0xff] %v837_v57   ;;  %v1400_v57 = vpop.f32.mrf.mxu3 }
 0x101   :  { %v620_v34 = vadd.f32 %v619_v55, %v557_v40  ;;  %v872_v27 = vpack.c.bf16 %v1400_v57, %v1378_v4 }
 0x103   :  { %916 = vst [vmem:[%s1581_s4 + $0xe0] sm:$0xff] %v872_v27  }
 0x105   :  { %v1376_v25 = vpop.f32.mrf.mxu2 }
 0x106   :  { %v220_v3 = vpop.f32.mrf.mxu0  ;;  %v1342_v5 = vpop.f32.mrf.mxu1 }
 0x107   :  { %v762_v9 = vpack.c.bf16 %v220_v3, %v218_v48  ;;  %v802_v14 = vpack.c.bf16 %v1342_v5, %v1324_v49  ;;  %v558_v56 = vmul.f32 %v220_v3, %v220_v3  ;;  %v488_v41 = vadd.f32 %v487_v59, %v220_v3 }
 0x108   :  { %v561_v3 = vmul.f32 %v1166_v29, %v1166_v29  ;;  %v574_v27 = vmul.f32 %v1342_v5, %v1342_v5 }
 0x109   :  { %894 = vst [vmem:[%s1581_s4 + $0x30] sm:$0xff] %v762_v9   ;;  %v621_v63 = vadd.f32 %v620_v34, %v558_v56 }
 0x10a   :  { %902 = vst [vmem:[%s1581_s4 + $0x70] sm:$0xff] %v802_v14  }
 0x10d   :  { %v1398_v56 = vpop.f32.mrf.mxu2 }
 0x10e   :  { %v223_v43 = vpop.f32.mrf.mxu0  ;;  %v1356_v44 = vpop.f32.mrf.mxu1 }
 0x10f   :  { %v559_v60 = vmul.f32 %v223_v43, %v223_v43  ;;  %v489_v1 = vadd.f32 %v488_v41, %v223_v43 }
 0x111   :  { %v622_v2 = vadd.f32 %v621_v63, %v559_v60  ;;  %v567_v63 = vmul.f32 %v1241_v12, %v1241_v12 }
 0x116   :  { %v225_v8 = vpop.f32.mrf.mxu0  ;;  %v1372_v9 = vpop.f32.mrf.mxu1 }
 0x117   :  { %v767_v14 = vpack.c.bf16 %v225_v8, %v223_v43  ;;  %v490_v6 = vadd.f32 %v489_v1, %v225_v8  ;;  %v560_v48 = vmul.f32 %v225_v8, %v225_v8  ;;  %v807_v18 = vpack.c.bf16 %v1372_v9, %v1356_v44 }
 0x119   :  { %895 = vst [vmem:[%s1581_s4 + $0x38] sm:$0xff] %v767_v14   ;;  %v491_v11 = vadd.f32 %v490_v6, %v1166_v29  ;;  %v623_v15 = vadd.f32 %v622_v2, %v560_v48  ;;  %v564_v29 = vmul.f32 %v1198_v53, %v1198_v53  ;;  %v568_v2 = vmul.f32 %v1250_v16, %v1250_v16  ;;  %v1424_v6 = vpop.f32.mrf.mxu2 }
 0x11a   :  { %903 = vst [vmem:[%s1581_s4 + $0x78] sm:$0xff] %v807_v18   ;;  %v569_v48 = vmul.f32 %v1264_v22, %v1264_v22 }
 0x11b   :  { %v492_v30 = vadd.f32 %v491_v11, %v1180_v38  ;;  %v624_v31 = vadd.f32 %v623_v15, %v561_v3  ;;  %v842_v38 = vpack.c.bf16 %v1398_v56, %v1376_v25  ;;  %v570_v11 = vmul.f32 %v1280_v28, %v1280_v28 }
 0x11d   :  { %v493_v40 = vadd.f32 %v492_v30, %v1190_v45  ;;  %v625_v43 = vadd.f32 %v624_v31, %v562_v26  ;;  %v565_v45 = vmul.f32 %v1210_v61, %v1210_v61  ;;  %910 = vst [vmem:[%s1581_s4 + $0xb0] sm:$0xff] %v842_v38   ;;  %v572_v31 = vmul.f32 %v1310_v42, %v1310_v42 }
 0x11f   :  { %v494_v21 = vadd.f32 %v493_v40, %v1198_v53  ;;  %v626_v55 = vadd.f32 %v625_v43, %v563_v39  ;;  %v566_v53 = vmul.f32 %v1229_v7, %v1229_v7 }
 0x121   :  { %v495_v59 = vadd.f32 %v494_v21, %v1210_v61  ;;  %v627_v34 = vadd.f32 %v626_v55, %v564_v29 }
 0x123   :  { %v496_v60 = vadd.f32 %v495_v59, %v1229_v7  ;;  %v628_v41 = vadd.f32 %v627_v34, %v565_v45  ;;  %v1426_v7 = vpop.f32.mrf.mxu3 }
 0x125   :  { %v629_v1 = vadd.f32 %v628_v41, %v566_v53  ;;  %v497_v61 = vadd.f32 %v496_v60, %v1241_v12  ;;  %v576_v60 = vmul.f32 %v1372_v9, %v1372_v9 }
 0x127   :  { %v498_v8 = vadd.f32 %v497_v61, %v1250_v16  ;;  %v630_v14 = vadd.f32 %v629_v1, %v567_v63  ;;  %v571_v16 = vmul.f32 %v1294_v35, %v1294_v35  ;;  %v578_v61 = vmul.f32 %v1214_v0, %v1214_v0 }
 0x129   :  { %v499_v18 = vadd.f32 %v498_v8, %v1264_v22  ;;  %v631_v3 = vadd.f32 %v630_v14, %v568_v2  ;;  %v1440_v22 = vpop.f32.mrf.mxu2  ;;  %v579_v8 = vmul.f32 %v1233_v10, %v1233_v10 }
 0x12b   :  { %v500_v12 = vadd.f32 %v499_v18, %v1280_v28  ;;  %v632_v15 = vadd.f32 %v631_v3, %v569_v48  ;;  %v1442_v43 = vpop.f32.mrf.mxu3  ;;  %v847_v28 = vpack.c.bf16 %v1440_v22, %v1424_v6  ;;  %v580_v48 = vmul.f32 %v1243_v13, %v1243_v13 }
 0x12c   :  { %v877_v29 = vpack.c.bf16 %v1442_v43, %v1426_v7 }
 0x12d   :  { %v501_v26 = vadd.f32 %v500_v12, %v1294_v35  ;;  %v633_v30 = vadd.f32 %v632_v15, %v570_v11  ;;  %v573_v35 = vmul.f32 %v1324_v49, %v1324_v49  ;;  %911 = vst [vmem:[%s1581_s4 + $0xb8] sm:$0xff] %v847_v28  }
 0x12e   :  { %917 = vst [vmem:[%s1581_s4 + $0xe8] sm:$0xff] %v877_v29   ;;  %v585_v29 = vmul.f32 %v1314_v46, %v1314_v46 }
 0x12f   :  { %v502_v39 = vadd.f32 %v501_v26, %v1310_v42  ;;  %v634_v40 = vadd.f32 %v633_v30, %v571_v16  ;;  %v583_v26 = vmul.f32 %v1284_v32, %v1284_v32 }
 0x131   :  { %v503_v21 = vadd.f32 %v502_v39, %v1324_v49  ;;  %v635_v55 = vadd.f32 %v634_v40, %v572_v31  ;;  %v575_v49 = vmul.f32 %v1356_v44, %v1356_v44 }
 0x133   :  { %v636_v42 = vadd.f32 %v635_v55, %v573_v35  ;;  %v504_v38 = vadd.f32 %v503_v21, %v1342_v5  ;;  %v1466_v41 = vpop.f32.mrf.mxu3  ;;  %v577_v5 = vmul.f32 %v1202_v58, %v1202_v58  ;;  %v586_v35 = vmul.f32 %v1326_v50, %v1326_v50 }
 0x135   :  { %v637_v45 = vadd.f32 %v636_v42, %v574_v27  ;;  %v505_v59 = vadd.f32 %v504_v38, %v1356_v44  ;;  %v587_v42 = vmul.f32 %v1346_v17, %v1346_v17 }
 0x137   :  { %v638_v34 = vadd.f32 %v637_v45, %v575_v49  ;;  %v506_v53 = vadd.f32 %v505_v59, %v1372_v9  ;;  %v588_v45 = vmul.f32 %v1358_v52, %v1358_v52 }
 0x139   :  { %v507_v63 = vadd.f32 %v506_v53, %v1202_v58  ;;  %v639_v1 = vadd.f32 %v638_v34, %v576_v60 }
 0x13b   :  { %v508_v2 = vadd.f32 %v507_v63, %v1214_v0  ;;  %v640_v44 = vadd.f32 %v639_v1, %v577_v5  ;;  %v1480_v58 = vpop.f32.mrf.mxu3  ;;  %v581_v0 = vmul.f32 %v1254_v19, %v1254_v19  ;;  %v591_v1 = vmul.f32 %v1424_v6, %v1424_v6 }
 0x13c   :  { %v882_v11 = vpack.c.bf16 %v1480_v58, %v1466_v41 }
 0x13d   :  { %v509_v14 = vadd.f32 %v508_v2, %v1233_v10  ;;  %v641_v9 = vadd.f32 %v640_v44, %v578_v61  ;;  %v582_v10 = vmul.f32 %v1266_v23, %v1266_v23  ;;  %v593_v44 = vmul.f32 %v1256_v20, %v1256_v20 }
 0x13e   :  { %918 = vst [vmem:[%s1581_s4 + $0xf0] sm:$0xff] %v882_v11  }
 0x13f   :  { %v510_v18 = vadd.f32 %v509_v14, %v1243_v13  ;;  %v642_v3 = vadd.f32 %v641_v9, %v579_v8 }
 0x141   :  { %v511_v12 = vadd.f32 %v510_v18, %v1254_v19  ;;  %v643_v15 = vadd.f32 %v642_v3, %v580_v48  ;;  %v584_v19 = vmul.f32 %v1296_v36, %v1296_v36 }
 0x143   :  { %v512_v13 = vadd.f32 %v511_v12, %v1266_v23  ;;  %v644_v16 = vadd.f32 %v643_v15, %v581_v0  ;;  %v1499_v28 = vpop.f32.mrf.mxu3 }
 0x145   :  { %v645_v30 = vadd.f32 %v644_v16, %v582_v10  ;;  %v513_v31 = vadd.f32 %v512_v13, %v1284_v32 }
 0x147   :  { %v514_v39 = vadd.f32 %v513_v31, %v1296_v36  ;;  %v646_v40 = vadd.f32 %v645_v30, %v583_v26 }
 0x149   :  { %v515_v23 = vadd.f32 %v514_v39, %v1314_v46  ;;  %v647_v21 = vadd.f32 %v646_v40, %v584_v19 }
 0x14b   :  { %v516_v55 = vadd.f32 %v515_v23, %v1326_v50  ;;  %v648_v32 = vadd.f32 %v647_v21, %v585_v29  ;;  %v345_v46 = vpop.f32.mrf.mxu3  ;;  %v589_v50 = vmul.f32 %v1376_v25, %v1376_v25 }
 0x14c   :  { %v887_v49 = vpack.c.bf16 %v345_v46, %v1499_v28 }
 0x14d   :  { %v517_v36 = vadd.f32 %v516_v55, %v1346_v17  ;;  %v649_v38 = vadd.f32 %v648_v32, %v586_v35  ;;  %v604_v35 = vmul.f32 %v1442_v43, %v1442_v43 }
 0x14e   :  { %919 = vst [vmem:[%s1581_s4 + $0xf8] sm:$0xff] %v887_v49   ;;  %v608_v49 = vmul.f32 %v345_v46, %v345_v46 }
 0x14f   :  { %v518_v27 = vadd.f32 %v517_v36, %v1358_v52  ;;  %v650_v59 = vadd.f32 %v649_v38, %v587_v42  ;;  %v590_v52 = vmul.f32 %v1398_v56, %v1398_v56  ;;  %v605_v42 = vmul.f32 %v1466_v41, %v1466_v41 }
 0x150   :  { %v606_v38 = vmul.f32 %v1480_v58, %v1480_v58 }
 0x151   :  { %v651_v34 = vadd.f32 %v650_v59, %v588_v45  ;;  %v519_v53 = vadd.f32 %v518_v27, %v1376_v25  ;;  %v592_v25 = vmul.f32 %v1440_v22, %v1440_v22  ;;  %v607_v45 = vmul.f32 %v1499_v28, %v1499_v28 }
 0x153   :  { %v652_v17 = vadd.f32 %v651_v34, %v589_v50  ;;  %v520_v60 = vadd.f32 %v519_v53, %v1398_v56  ;;  %v594_v56 = vmul.f32 %v1268_v24, %v1268_v24 }
 0x155   :  { %v653_v5 = vadd.f32 %v652_v17, %v590_v52  ;;  %v521_v63 = vadd.f32 %v520_v60, %v1424_v6  ;;  %v595_v6 = vmul.f32 %v1286_v33, %v1286_v33 }
 0x157   :  { %v654_v61 = vadd.f32 %v653_v5, %v591_v1  ;;  %v522_v2 = vadd.f32 %v521_v63, %v1440_v22  ;;  %v596_v22 = vmul.f32 %v1298_v37, %v1298_v37 }
 0x159   :  { %v523_v8 = vadd.f32 %v522_v2, %v1256_v20  ;;  %v655_v14 = vadd.f32 %v654_v61, %v592_v25  ;;  %v597_v20 = vmul.f32 %v1316_v47, %v1316_v47 }
 0x15b   :  { %v524_v9 = vadd.f32 %v523_v8, %v1268_v24  ;;  %v656_v48 = vadd.f32 %v655_v14, %v593_v44  ;;  %v598_v24 = vmul.f32 %v1328_v51, %v1328_v51 }
 0x15d   :  { %v525_v18 = vadd.f32 %v524_v9, %v1286_v33  ;;  %v657_v3 = vadd.f32 %v656_v48, %v594_v56  ;;  %v599_v33 = vmul.f32 %v1348_v62, %v1348_v62 }
 0x15f   :  { %v526_v11 = vadd.f32 %v525_v18, %v1298_v37  ;;  %v658_v0 = vadd.f32 %v657_v3, %v595_v6  ;;  %v600_v37 = vmul.f32 %v1360_v54, %v1360_v54 }
 0x161   :  { %v527_v12 = vadd.f32 %v526_v11, %v1316_v47  ;;  %v659_v15 = vadd.f32 %v658_v0, %v596_v22  ;;  %v601_v47 = vmul.f32 %v1378_v4, %v1378_v4 }
 0x163   :  { %v528_v10 = vadd.f32 %v527_v12, %v1328_v51  ;;  %v660_v13 = vadd.f32 %v659_v15, %v597_v20  ;;  %v602_v51 = vmul.f32 %v1400_v57, %v1400_v57 }
 0x165   :  { %v661_v16 = vadd.f32 %v660_v13, %v598_v24  ;;  %v529_v26 = vadd.f32 %v528_v10, %v1348_v62  ;;  %v603_v62 = vmul.f32 %v1426_v7, %v1426_v7 }
 0x167   :  { %v530_v30 = vadd.f32 %v529_v26, %v1360_v54  ;;  %v662_v31 = vadd.f32 %v661_v16, %v599_v33 }
 0x169   :  { %v531_v19 = vadd.f32 %v530_v30, %v1378_v4  ;;  %v663_v39 = vadd.f32 %v662_v31, %v600_v37 }
 0x16b   :  { %v532_v40 = vadd.f32 %v531_v19, %v1400_v57  ;;  %v664_v29 = vadd.f32 %v663_v39, %v601_v47 }
 0x16d   :  { %v533_v23 = vadd.f32 %v532_v40, %v1426_v7  ;;  %v665_v21 = vadd.f32 %v664_v29, %v602_v51 }
 0x16f   :  { %v534_v54 = vadd.f32 %v533_v23, %v1442_v43  ;;  %v666_v55 = vadd.f32 %v665_v21, %v603_v62 }
 0x171   :  { %v667_v4 = vadd.f32 %v666_v55, %v604_v35  ;;  %v535_v32 = vadd.f32 %v534_v54, %v1466_v41 }
 0x173   :  { %v668_v57 = vadd.f32 %v667_v4, %v605_v42  ;;  %v536_v36 = vadd.f32 %v535_v32, %v1480_v58 }
 0x175   :  { %v669_v7 = vadd.f32 %v668_v57, %v606_v38  ;;  %v537_v27 = vadd.f32 %v536_v36, %v1499_v28 }
 0x177   :  { %v670_v43 = vadd.f32 %v669_v7, %v607_v45  ;;  %v538_v59 = vadd.f32 %v537_v27, %v345_v46 }
 0x179   :  { %v539_v34 = vrot.slane %v538_v59, 4  ;;  %v671_v53 = vadd.f32 %v670_v43, %v608_v49 }
 0x17b   :  { %v540_v50 = vadd.f32 %v539_v34, %v538_v59  ;;  %v672_v17 = vrot.slane %v671_v53, 4 }
 0x17d   :  { %v541_v41 = vrot.slane %v540_v50, 2  ;;  %v673_v60 = vadd.f32 %v672_v17, %v671_v53 }
 0x17f   :  { %v542_v52 = vadd.f32 %v541_v41, %v540_v50  ;;  %v674_v5 = vrot.slane %v673_v60, 2 }
 0x181   :  { %v543_v63 = vrot.slane %v542_v52, 1  ;;  %v675_v1 = vadd.f32 %v674_v5, %v673_v60 }
 0x183   :  { %v676_v58 = vrot.slane %v675_v1, 1  ;;  %v544_v61 = vadd.f32 %v543_v63, %v542_v52 }
 0x185   :  { %v677_v2 = vadd.f32 %v676_v58, %v675_v1 }
 0x187   :  { %v679_v25 = vsel %vm678_vm0, %v544_v61, %v677_v2 }
 0x188   :  { %680 = vst [vmem:[%s1582_s5] sm:$0x3] %v679_v25 }

// kernel: pspnet_block.7
= control target key start
LH: loop header
LB: loop body
LE: loop exit
PB: predicated region body
PF: predicated region fallthrough
CT: control target
= control target key end

     0   :  { %s1203_s0 = inlined_call_operand.vmem [shape: bf16[512,128], index: 0, kind: input, shape index: {}]   ;;  %s1204_s1 = inlined_call_operand.vmem [shape: f32[512,128], index: 1, kind: input, shape index: {}]   ;;  %s1205_s2 = inlined_call_operand.vmem [shape: f32[1,128], index: 2, kind: input, shape index: {}]   ;;  %s1206_s3 = inlined_call_operand.vmem [shape: f32[1,128], index: 3, kind: input, shape index: {}]   ;;  %s1207_s4 = inlined_call_operand.hbm [shape: f32[512,128], index: 4, kind: output, shape index: {}]  }
   0x1   :  { %v557_v0 = vld [vmem:[%s1203_s0] sm:$0xff]   ;;  %v684_v5 = vld [vmem:[%s1203_s0 + $0x8] sm:$0xff]   ;;  %v685_v10 = vld [vmem:[%s1203_s0 + $0x10] sm:$0xff]  }
   0x2   :  { %v780_v1 = vld [vmem:[%s1205_s2] ss:$0 sm:$0xff]  ;;  %v558_v2 = vunpack.c.l.bf16 %v557_v0  ;;  %v559_v4 = vunpack.c.h.bf16 %v557_v0  ;;  %v562_v8 = vunpack.c.l.bf16 %v684_v5  ;;  %v563_v9 = vunpack.c.h.bf16 %v684_v5  ;;  %v283_v12 = vld [vmem:[%s1204_s1 + $0x8] sm:$0xff]  ;;  %v686_v15 = vld [vmem:[%s1203_s0 + $0x18] sm:$0xff]  }
   0x3   :  { %v785_v3 = vld [vmem:[%s1206_s3] ss:$0 sm:$0xff]  ;;  %v566_v13 = vunpack.c.l.bf16 %v685_v10  ;;  %v567_v14 = vunpack.c.h.bf16 %v685_v10  ;;  %v284_v20 = vld [vmem:[%s1204_s1 + $0x10] sm:$0xff]  ;;  %v285_v21 = vld [vmem:[%s1204_s1 + $0x18] sm:$0xff]  ;;  %v570_v24 = vunpack.c.l.bf16 %v686_v15  ;;  %v571_v25 = vunpack.c.h.bf16 %v686_v15 }
   0x4   :  { %v150_v6 = vmul.f32 %v780_v1, %v558_v2  ;;  %v151_v7 = vmul.f32 %v780_v1, %v559_v4  ;;  %v282_v11 = vld [vmem:[%s1204_s1] sm:$0xff]  ;;  %v152_v18 = vmul.f32 %v780_v1, %v562_v8  ;;  %v153_v19 = vmul.f32 %v780_v1, %v563_v9  ;;  %v287_v31 = vld [vmem:[%s1204_s1 + $0x28] sm:$0xff]  ;;  %v288_v41 = vld [vmem:[%s1204_s1 + $0x30] sm:$0xff] }
   0x5   :  { %v154_v22 = vmul.f32 %v780_v1, %v566_v13  ;;  %v155_v23 = vmul.f32 %v780_v1, %v567_v14  ;;  %v286_v30 = vld [vmem:[%s1204_s1 + $0x20] sm:$0xff]  ;;  %v156_v34 = vmul.f32 %v780_v1, %v570_v24  ;;  %v157_v35 = vmul.f32 %v780_v1, %v571_v25  ;;  %v289_v42 = vld [vmem:[%s1204_s1 + $0x38] sm:$0xff]  ;;  %v688_v47 = vld [vmem:[%s1203_s0 + $0x28] sm:$0xff]  }
   0x6   :  { %v218_v16 = vadd.f32 %v785_v3, %v150_v6  ;;  %v219_v17 = vadd.f32 %v785_v3, %v151_v7  ;;  %v220_v28 = vadd.f32 %v785_v3, %v152_v18  ;;  %v221_v29 = vadd.f32 %v785_v3, %v153_v19  ;;  %v687_v36 = vld [vmem:[%s1203_s0 + $0x20] sm:$0xff]   ;;  %v689_v52 = vld [vmem:[%s1203_s0 + $0x30] sm:$0xff]   ;;  %v690_v61 = vld [vmem:[%s1203_s0 + $0x38] sm:$0xff]  }
   0x7   :  { %v222_v32 = vadd.f32 %v785_v3, %v154_v22  ;;  %v223_v33 = vadd.f32 %v785_v3, %v155_v23  ;;  %v224_v45 = vadd.f32 %v785_v3, %v156_v34  ;;  %v225_v46 = vadd.f32 %v785_v3, %v157_v35  ;;  %v290_v0 = vld [vmem:[%s1204_s1 + $0x40] sm:$0xff]  ;;  %v291_v2 = vld [vmem:[%s1204_s1 + $0x48] sm:$0xff]  ;;  %v292_v10 = vld [vmem:[%s1204_s1 + $0x50] sm:$0xff] }
   0x8   :  { %v346_v26 = vadd.f32 %v282_v11, %v218_v16  ;;  %v347_v27 = vadd.f32 %v283_v12, %v219_v17  ;;  %v348_v39 = vadd.f32 %v284_v20, %v220_v28  ;;  %v349_v40 = vadd.f32 %v285_v21, %v221_v29  ;;  %v293_v11 = vld [vmem:[%s1204_s1 + $0x58] sm:$0xff]  ;;  %v294_v20 = vld [vmem:[%s1204_s1 + $0x60] sm:$0xff]  ;;  %v295_v21 = vld [vmem:[%s1204_s1 + $0x68] sm:$0xff] }
   0x9   :  { %v350_v43 = vadd.f32 %v286_v30, %v222_v32  ;;  %v351_v44 = vadd.f32 %v287_v31, %v223_v33  ;;  %v574_v50 = vunpack.c.l.bf16 %v687_v36  ;;  %v575_v51 = vunpack.c.h.bf16 %v687_v36  ;;  %v296_v31 = vld [vmem:[%s1204_s1 + $0x70] sm:$0xff]  ;;  %v297_v32 = vld [vmem:[%s1204_s1 + $0x78] sm:$0xff] }
   0xa   :  { %v410_v37 = vmax.f32 %v346_v26, 0.0  ;;  %v411_v38 = vmax.f32 %v347_v27, 0.0  ;;  %v412_v48 = vmax.f32 %v348_v39, 0.0  ;;  %v413_v49 = vmax.f32 %v349_v40, 0.0  ;;  %v691_v26 = vld [vmem:[%s1203_s0 + $0x40] sm:$0xff]  }
   0xb   :  { %v414_v53 = vmax.f32 %v350_v43, 0.0  ;;  %v415_v54 = vmax.f32 %v351_v44, 0.0  ;;  %v352_v55 = vadd.f32 %v288_v41, %v224_v45  ;;  %v353_v56 = vadd.f32 %v289_v42, %v225_v46  ;;  %v693_v42 = vld [vmem:[%s1203_s0 + $0x50] sm:$0xff]  }
   0xc   :  { %474 = vst [vmem:[#allocation2] sm:$0xff] %v410_v37  ;;  %v158_v57 = vmul.f32 %v780_v1, %v574_v50  ;;  %v159_v58 = vmul.f32 %v780_v1, %v575_v51  ;;  %v578_v59 = vunpack.c.l.bf16 %v688_v47  ;;  %v579_v60 = vunpack.c.h.bf16 %v688_v47  ;;  %v692_v37 = vld [vmem:[%s1203_s0 + $0x48] sm:$0xff]  }
   0xd   :  { %475 = vst [vmem:[#allocation2 + $0x8] sm:$0xff] %v411_v38  ;;  %v416_v62 = vmax.f32 %v352_v55, 0.0  ;;  %v417_v63 = vmax.f32 %v353_v56, 0.0  ;;  %v582_v4 = vunpack.c.l.bf16 %v689_v52  ;;  %v583_v5 = vunpack.c.h.bf16 %v689_v52 }
   0xe   :  { %476 = vst [vmem:[#allocation2 + $0x10] sm:$0xff] %v412_v48  ;;  %v226_v6 = vadd.f32 %v785_v3, %v158_v57  ;;  %v227_v7 = vadd.f32 %v785_v3, %v159_v58  ;;  %v160_v8 = vmul.f32 %v780_v1, %v578_v59  ;;  %v161_v9 = vmul.f32 %v780_v1, %v579_v60 }
   0xf   :  { %477 = vst [vmem:[#allocation2 + $0x18] sm:$0xff] %v413_v49  ;;  %v162_v12 = vmul.f32 %v780_v1, %v582_v4  ;;  %v163_v13 = vmul.f32 %v780_v1, %v583_v5  ;;  %v586_v14 = vunpack.c.l.bf16 %v690_v61  ;;  %v587_v15 = vunpack.c.h.bf16 %v690_v61 }
  0x10   :  { %478 = vst [vmem:[#allocation2 + $0x20] sm:$0xff] %v414_v53  ;;  %v354_v16 = vadd.f32 %v290_v0, %v226_v6  ;;  %v355_v17 = vadd.f32 %v291_v2, %v227_v7  ;;  %v228_v18 = vadd.f32 %v785_v3, %v160_v8  ;;  %v229_v19 = vadd.f32 %v785_v3, %v161_v9 }
  0x11   :  { %479 = vst [vmem:[#allocation2 + $0x28] sm:$0xff] %v415_v54  ;;  %v230_v22 = vadd.f32 %v785_v3, %v162_v12  ;;  %v231_v23 = vadd.f32 %v785_v3, %v163_v13  ;;  %v164_v24 = vmul.f32 %v780_v1, %v586_v14  ;;  %v165_v25 = vmul.f32 %v780_v1, %v587_v15 }
  0x12   :  { %480 = vst [vmem:[#allocation2 + $0x30] sm:$0xff] %v416_v62  ;;  %v418_v27 = vmax.f32 %v354_v16, 0.0  ;;  %v419_v28 = vmax.f32 %v355_v17, 0.0  ;;  %v356_v29 = vadd.f32 %v292_v10, %v228_v18  ;;  %v357_v30 = vadd.f32 %v293_v11, %v229_v19 }
  0x13   :  { %481 = vst [vmem:[#allocation2 + $0x38] sm:$0xff] %v417_v63  ;;  %v358_v33 = vadd.f32 %v294_v20, %v230_v22  ;;  %v359_v34 = vadd.f32 %v295_v21, %v231_v23  ;;  %v232_v35 = vadd.f32 %v785_v3, %v164_v24  ;;  %v233_v36 = vadd.f32 %v785_v3, %v165_v25 }
  0x14   :  { %482 = vst [vmem:[#allocation2 + $0x40] sm:$0xff] %v418_v27  ;;  %v420_v38 = vmax.f32 %v356_v29, 0.0  ;;  %v421_v39 = vmax.f32 %v357_v30, 0.0  ;;  %v590_v40 = vunpack.c.l.bf16 %v691_v26  ;;  %v591_v41 = vunpack.c.h.bf16 %v691_v26 }
  0x15   :  { %483 = vst [vmem:[#allocation2 + $0x48] sm:$0xff] %v419_v28  ;;  %v422_v43 = vmax.f32 %v358_v33, 0.0  ;;  %v423_v44 = vmax.f32 %v359_v34, 0.0  ;;  %v360_v45 = vadd.f32 %v296_v31, %v232_v35  ;;  %v361_v46 = vadd.f32 %v297_v32, %v233_v36 }
  0x16   :  { %9 = vsyncpa [#allocation3], 0  ;;  %484 = vst [vmem:[#allocation2 + $0x50] sm:$0xff] %v420_v38  ;;  %v166_v47 = vmul.f32 %v780_v1, %v590_v40  ;;  %v167_v48 = vmul.f32 %v780_v1, %v591_v41  ;;  %v594_v49 = vunpack.c.l.bf16 %v692_v37  ;;  %v595_v50 = vunpack.c.h.bf16 %v692_v37  ;;  %v694_v51 = vld [vmem:[%s1203_s0 + $0x58] sm:$0xff]   ;;  %v298_v54 = vld [vmem:[%s1204_s1 + $0x80] sm:$0xff]  ;;  %s746_s14 = smov [#allocation2]  }
  0x17   :  { %485 = vst [vmem:[#allocation2 + $0x58] sm:$0xff] %v421_v39  ;;  %v424_v52 = vmax.f32 %v360_v45, 0.0  ;;  %v425_v53 = vmax.f32 %v361_v46, 0.0  ;;  %v299_v55 = vld [vmem:[%s1204_s1 + $0x88] sm:$0xff]  ;;  %v598_v56 = vunpack.c.l.bf16 %v693_v42  ;;  %v599_v57 = vunpack.c.h.bf16 %v693_v42  ;;  %v300_v62 = vld [vmem:[%s1204_s1 + $0x90] sm:$0xff]  ;;  %v301_v63 = vld [vmem:[%s1204_s1 + $0x98] sm:$0xff] }
  0x18   :  { %486 = vst [vmem:[#allocation2 + $0x60] sm:$0xff] %v422_v43  ;;  %v234_v58 = vadd.f32 %v785_v3, %v166_v47  ;;  %v235_v59 = vadd.f32 %v785_v3, %v167_v48  ;;  %v168_v60 = vmul.f32 %v780_v1, %v594_v49  ;;  %v169_v61 = vmul.f32 %v780_v1, %v595_v50  ;;  %v302_v10 = vld [vmem:[%s1204_s1 + $0xa0] sm:$0xff]  ;;  %v303_v11 = vld [vmem:[%s1204_s1 + $0xa8] sm:$0xff]  ;;  %v304_v21 = vld [vmem:[%s1204_s1 + $0xb0] sm:$0xff]  ;;  %s542_s15 = sshll.u32 %s746_s14, 4  ;;  %s747_s18 = smov 128   ;;  %s543_s15 = int_to_ptr.vmem [resolvable:$true] %s542_s15 }
  0x19   :  { %487 = vst [vmem:[#allocation2 + $0x68] sm:$0xff] %v423_v44  ;;  %v170_v0 = vmul.f32 %v780_v1, %v598_v56  ;;  %v171_v2 = vmul.f32 %v780_v1, %v599_v57  ;;  %v602_v4 = vunpack.c.l.bf16 %v694_v51  ;;  %v603_v5 = vunpack.c.h.bf16 %v694_v51  ;;  %v695_v16 = vld [vmem:[%s1203_s0 + $0x60] sm:$0xff]   ;;  %v305_v22 = vld [vmem:[%s1204_s1 + $0xb8] sm:$0xff]  ;;  %v696_v27 = vld [vmem:[%s1203_s0 + $0x68] sm:$0xff]   ;;  %s748_s19 = smov 8  }
  0x1a   :  { %488 = vst [vmem:[#allocation2 + $0x70] sm:$0xff] %v424_v52  ;;  %v362_v6 = vadd.f32 %v298_v54, %v234_v58  ;;  %v363_v7 = vadd.f32 %v299_v55, %v235_v59  ;;  %v236_v8 = vadd.f32 %v785_v3, %v168_v60  ;;  %v237_v9 = vadd.f32 %v785_v3, %v169_v61  ;;  %v697_v32 = vld [vmem:[%s1203_s0 + $0x70] sm:$0xff]   ;;  %v698_v41 = vld [vmem:[%s1203_s0 + $0x78] sm:$0xff]   ;;  %v306_v44 = vld [vmem:[%s1204_s1 + $0xc0] sm:$0xff] }
  0x1b   :  { %489 = vst [vmem:[#allocation2 + $0x78] sm:$0xff] %v425_v53  ;;  %v238_v12 = vadd.f32 %v785_v3, %v170_v0  ;;  %v239_v13 = vadd.f32 %v785_v3, %v171_v2  ;;  %v172_v14 = vmul.f32 %v780_v1, %v602_v4  ;;  %v173_v15 = vmul.f32 %v780_v1, %v603_v5  ;;  %v307_v45 = vld [vmem:[%s1204_s1 + $0xc8] sm:$0xff]  ;;  %v308_v52 = vld [vmem:[%s1204_s1 + $0xd0] sm:$0xff]  ;;  %v309_v53 = vld [vmem:[%s1204_s1 + $0xd8] sm:$0xff] }
  0x1c   :  { %v426_v17 = vmax.f32 %v362_v6, 0.0  ;;  %v427_v18 = vmax.f32 %v363_v7, 0.0  ;;  %v364_v19 = vadd.f32 %v300_v62, %v236_v8  ;;  %v365_v20 = vadd.f32 %v301_v63, %v237_v9  ;;  %v310_v62 = vld [vmem:[%s1204_s1 + $0xe0] sm:$0xff]  ;;  %v311_v63 = vld [vmem:[%s1204_s1 + $0xe8] sm:$0xff] }
  0x1d   :  { %v366_v23 = vadd.f32 %v302_v10, %v238_v12  ;;  %v367_v24 = vadd.f32 %v303_v11, %v239_v13  ;;  %v240_v25 = vadd.f32 %v785_v3, %v172_v14  ;;  %v241_v26 = vadd.f32 %v785_v3, %v173_v15  ;;  %v699_v6 = vld [vmem:[%s1203_s0 + $0x80] sm:$0xff]   ;;  %v312_v11 = vld [vmem:[%s1204_s1 + $0xf0] sm:$0xff]  ;;  %v313_v12 = vld [vmem:[%s1204_s1 + $0xf8] sm:$0xff] }
  0x1e   :  { %490 = vst [vmem:[#allocation2 + $0x80] sm:$0xff] %v426_v17  ;;  %v428_v28 = vmax.f32 %v364_v19, 0.0  ;;  %v429_v29 = vmax.f32 %v365_v20, 0.0  ;;  %v606_v30 = vunpack.c.l.bf16 %v695_v16  ;;  %v607_v31 = vunpack.c.h.bf16 %v695_v16  ;;  %v700_v17 = vld [vmem:[%s1203_s0 + $0x88] sm:$0xff]  }
  0x1f   :  { %491 = vst [vmem:[#allocation2 + $0x88] sm:$0xff] %v427_v18  ;;  %v430_v33 = vmax.f32 %v366_v23, 0.0  ;;  %v431_v34 = vmax.f32 %v367_v24, 0.0  ;;  %v368_v35 = vadd.f32 %v304_v21, %v240_v25  ;;  %v369_v36 = vadd.f32 %v305_v22, %v241_v26  ;;  %v701_v22 = vld [vmem:[%s1203_s0 + $0x90] sm:$0xff]  }
  0x20   :  { %492 = vst [vmem:[#allocation2 + $0x90] sm:$0xff] %v428_v28  ;;  %v174_v37 = vmul.f32 %v780_v1, %v606_v30  ;;  %v175_v38 = vmul.f32 %v780_v1, %v607_v31  ;;  %v610_v39 = vunpack.c.l.bf16 %v696_v27  ;;  %v611_v40 = vunpack.c.h.bf16 %v696_v27  ;;  %v702_v31 = vld [vmem:[%s1203_s0 + $0x98] sm:$0xff]  }
  0x21   :  { %493 = vst [vmem:[#allocation2 + $0x98] sm:$0xff] %v429_v29  ;;  %v432_v42 = vmax.f32 %v368_v35, 0.0  ;;  %v433_v43 = vmax.f32 %v369_v36, 0.0  ;;  %v614_v46 = vunpack.c.l.bf16 %v697_v32  ;;  %v615_v47 = vunpack.c.h.bf16 %v697_v32  ;;  %v315_v35 = vld [vmem:[%s1204_s1 + $0x108] sm:$0xff] }
  0x22   :  { %494 = vst [vmem:[#allocation2 + $0xa0] sm:$0xff] %v430_v33  ;;  %v242_v48 = vadd.f32 %v785_v3, %v174_v37  ;;  %v243_v49 = vadd.f32 %v785_v3, %v175_v38  ;;  %v176_v50 = vmul.f32 %v780_v1, %v610_v39  ;;  %v177_v51 = vmul.f32 %v780_v1, %v611_v40 }
  0x23   :  { %495 = vst [vmem:[#allocation2 + $0xa8] sm:$0xff] %v431_v34  ;;  %v178_v54 = vmul.f32 %v780_v1, %v614_v46  ;;  %v179_v55 = vmul.f32 %v780_v1, %v615_v47  ;;  %v618_v56 = vunpack.c.l.bf16 %v698_v41  ;;  %v619_v57 = vunpack.c.h.bf16 %v698_v41  ;;  %v314_v34 = vld [vmem:[%s1204_s1 + $0x100] sm:$0xff] }
  0x24   :  { %496 = vst [vmem:[#allocation2 + $0xb0] sm:$0xff] %v432_v42  ;;  %v370_v58 = vadd.f32 %v306_v44, %v242_v48  ;;  %v371_v59 = vadd.f32 %v307_v45, %v243_v49  ;;  %v244_v60 = vadd.f32 %v785_v3, %v176_v50  ;;  %v245_v61 = vadd.f32 %v785_v3, %v177_v51  ;;  %v316_v42 = vld [vmem:[%s1204_s1 + $0x110] sm:$0xff] }
  0x25   :  { %497 = vst [vmem:[#allocation2 + $0xb8] sm:$0xff] %v433_v43  ;;  %v246_v0 = vadd.f32 %v785_v3, %v178_v54  ;;  %v247_v2 = vadd.f32 %v785_v3, %v179_v55  ;;  %v180_v4 = vmul.f32 %v780_v1, %v618_v56  ;;  %v181_v5 = vmul.f32 %v780_v1, %v619_v57  ;;  %v317_v43 = vld [vmem:[%s1204_s1 + $0x118] sm:$0xff] }
  0x26   :  { %v434_v7 = vmax.f32 %v370_v58, 0.0  ;;  %v435_v8 = vmax.f32 %v371_v59, 0.0  ;;  %v372_v9 = vadd.f32 %v308_v52, %v244_v60  ;;  %v373_v10 = vadd.f32 %v309_v53, %v245_v61  ;;  %v318_v52 = vld [vmem:[%s1204_s1 + $0x120] sm:$0xff]  ;;  %v319_v53 = vld [vmem:[%s1204_s1 + $0x128] sm:$0xff] }
  0x27   :  { %v374_v13 = vadd.f32 %v310_v62, %v246_v0  ;;  %v375_v14 = vadd.f32 %v311_v63, %v247_v2  ;;  %v248_v15 = vadd.f32 %v785_v3, %v180_v4  ;;  %v249_v16 = vadd.f32 %v785_v3, %v181_v5  ;;  %v703_v58 = vld [vmem:[%s1203_s0 + $0xa0] sm:$0xff]   ;;  %v320_v63 = vld [vmem:[%s1204_s1 + $0x130] sm:$0xff]  ;;  %v321_v0 = vld [vmem:[%s1204_s1 + $0x138] sm:$0xff] }
  0x28   :  { %498 = vst [vmem:[#allocation2 + $0xc0] sm:$0xff] %v434_v7  ;;  %v436_v18 = vmax.f32 %v372_v9, 0.0  ;;  %v437_v19 = vmax.f32 %v373_v10, 0.0  ;;  %v622_v20 = vunpack.c.l.bf16 %v699_v6  ;;  %v623_v21 = vunpack.c.h.bf16 %v699_v6  ;;  %v704_v7 = vld [vmem:[%s1203_s0 + $0xa8] sm:$0xff]  }
  0x29   :  { %499 = vst [vmem:[#allocation2 + $0xc8] sm:$0xff] %v435_v8  ;;  %v438_v23 = vmax.f32 %v374_v13, 0.0  ;;  %v439_v24 = vmax.f32 %v375_v14, 0.0  ;;  %v376_v25 = vadd.f32 %v312_v11, %v248_v15  ;;  %v377_v26 = vadd.f32 %v313_v12, %v249_v16  ;;  %v705_v12 = vld [vmem:[%s1203_s0 + $0xb0] sm:$0xff]  }
  0x2a   :  { %500 = vst [vmem:[#allocation2 + $0xd0] sm:$0xff] %v436_v18  ;;  %v182_v27 = vmul.f32 %v780_v1, %v622_v20  ;;  %v183_v28 = vmul.f32 %v780_v1, %v623_v21  ;;  %v626_v29 = vunpack.c.l.bf16 %v700_v17  ;;  %v627_v30 = vunpack.c.h.bf16 %v700_v17  ;;  %v706_v21 = vld [vmem:[%s1203_s0 + $0xb8] sm:$0xff]  }
  0x2b   :  { %501 = vst [vmem:[#allocation2 + $0xd8] sm:$0xff] %v437_v19  ;;  %v440_v32 = vmax.f32 %v376_v25, 0.0  ;;  %v441_v33 = vmax.f32 %v377_v26, 0.0  ;;  %v630_v36 = vunpack.c.l.bf16 %v701_v22  ;;  %v631_v37 = vunpack.c.h.bf16 %v701_v22  ;;  %v323_v25 = vld [vmem:[%s1204_s1 + $0x148] sm:$0xff] }
  0x2c   :  { %502 = vst [vmem:[#allocation2 + $0xe0] sm:$0xff] %v438_v23  ;;  %v250_v38 = vadd.f32 %v785_v3, %v182_v27  ;;  %v251_v39 = vadd.f32 %v785_v3, %v183_v28  ;;  %v184_v40 = vmul.f32 %v780_v1, %v626_v29  ;;  %v185_v41 = vmul.f32 %v780_v1, %v627_v30 }
  0x2d   :  { %503 = vst [vmem:[#allocation2 + $0xe8] sm:$0xff] %v439_v24  ;;  %v186_v44 = vmul.f32 %v780_v1, %v630_v36  ;;  %v187_v45 = vmul.f32 %v780_v1, %v631_v37  ;;  %v634_v46 = vunpack.c.l.bf16 %v702_v31  ;;  %v635_v47 = vunpack.c.h.bf16 %v702_v31  ;;  %v322_v24 = vld [vmem:[%s1204_s1 + $0x140] sm:$0xff] }
  0x2e   :  { %504 = vst [vmem:[#allocation2 + $0xf0] sm:$0xff] %v440_v32  ;;  %v378_v48 = vadd.f32 %v314_v34, %v250_v38  ;;  %v379_v49 = vadd.f32 %v315_v35, %v251_v39  ;;  %v252_v50 = vadd.f32 %v785_v3, %v184_v40  ;;  %v253_v51 = vadd.f32 %v785_v3, %v185_v41  ;;  %v324_v32 = vld [vmem:[%s1204_s1 + $0x150] sm:$0xff] }
  0x2f   :  { %505 = vst [vmem:[#allocation2 + $0xf8] sm:$0xff] %v441_v33  ;;  %v254_v54 = vadd.f32 %v785_v3, %v186_v44  ;;  %v255_v55 = vadd.f32 %v785_v3, %v187_v45  ;;  %v188_v56 = vmul.f32 %v780_v1, %v634_v46  ;;  %v189_v57 = vmul.f32 %v780_v1, %v635_v47  ;;  %v325_v33 = vld [vmem:[%s1204_s1 + $0x158] sm:$0xff] }
  0x30   :  { %v442_v59 = vmax.f32 %v378_v48, 0.0  ;;  %v443_v60 = vmax.f32 %v379_v49, 0.0  ;;  %v380_v61 = vadd.f32 %v316_v42, %v252_v50  ;;  %v381_v62 = vadd.f32 %v317_v43, %v253_v51  ;;  %v326_v42 = vld [vmem:[%s1204_s1 + $0x160] sm:$0xff]  ;;  %v327_v43 = vld [vmem:[%s1204_s1 + $0x168] sm:$0xff] }
  0x31   :  { %v382_v2 = vadd.f32 %v318_v52, %v254_v54  ;;  %v383_v4 = vadd.f32 %v319_v53, %v255_v55  ;;  %v256_v5 = vadd.f32 %v785_v3, %v188_v56  ;;  %v257_v6 = vadd.f32 %v785_v3, %v189_v57  ;;  %v707_v48 = vld [vmem:[%s1203_s0 + $0xc0] sm:$0xff]   ;;  %v328_v53 = vld [vmem:[%s1204_s1 + $0x170] sm:$0xff]  ;;  %v329_v54 = vld [vmem:[%s1204_s1 + $0x178] sm:$0xff] }
  0x32   :  { %506 = vst [vmem:[#allocation2 + $0x100] sm:$0xff] %v442_v59  ;;  %v444_v8 = vmax.f32 %v380_v61, 0.0  ;;  %v445_v9 = vmax.f32 %v381_v62, 0.0  ;;  %v638_v10 = vunpack.c.l.bf16 %v703_v58  ;;  %v639_v11 = vunpack.c.h.bf16 %v703_v58  ;;  %v708_v59 = vld [vmem:[%s1203_s0 + $0xc8] sm:$0xff]  }
  0x33   :  { %507 = vst [vmem:[#allocation2 + $0x108] sm:$0xff] %v443_v60  ;;  %v446_v13 = vmax.f32 %v382_v2, 0.0  ;;  %v447_v14 = vmax.f32 %v383_v4, 0.0  ;;  %v384_v15 = vadd.f32 %v320_v63, %v256_v5  ;;  %v385_v16 = vadd.f32 %v321_v0, %v257_v6  ;;  %v709_v0 = vld [vmem:[%s1203_s0 + $0xd0] sm:$0xff]  }
  0x34   :  { %508 = vst [vmem:[#allocation2 + $0x110] sm:$0xff] %v444_v8  ;;  %v190_v17 = vmul.f32 %v780_v1, %v638_v10  ;;  %v191_v18 = vmul.f32 %v780_v1, %v639_v11  ;;  %v642_v19 = vunpack.c.l.bf16 %v704_v7  ;;  %v643_v20 = vunpack.c.h.bf16 %v704_v7  ;;  %v710_v11 = vld [vmem:[%s1203_s0 + $0xd8] sm:$0xff]  }
  0x35   :  { %509 = vst [vmem:[#allocation2 + $0x118] sm:$0xff] %v445_v9  ;;  %v448_v22 = vmax.f32 %v384_v15, 0.0  ;;  %v449_v23 = vmax.f32 %v385_v16, 0.0  ;;  %v646_v26 = vunpack.c.l.bf16 %v705_v12  ;;  %v647_v27 = vunpack.c.h.bf16 %v705_v12  ;;  %v331_v15 = vld [vmem:[%s1204_s1 + $0x188] sm:$0xff] }
  0x36   :  { %510 = vst [vmem:[#allocation2 + $0x120] sm:$0xff] %v446_v13  ;;  %v258_v28 = vadd.f32 %v785_v3, %v190_v17  ;;  %v259_v29 = vadd.f32 %v785_v3, %v191_v18  ;;  %v192_v30 = vmul.f32 %v780_v1, %v642_v19  ;;  %v193_v31 = vmul.f32 %v780_v1, %v643_v20 }
  0x37   :  { %511 = vst [vmem:[#allocation2 + $0x128] sm:$0xff] %v447_v14  ;;  %v194_v34 = vmul.f32 %v780_v1, %v646_v26  ;;  %v195_v35 = vmul.f32 %v780_v1, %v647_v27  ;;  %v650_v36 = vunpack.c.l.bf16 %v706_v21  ;;  %v651_v37 = vunpack.c.h.bf16 %v706_v21  ;;  %v330_v14 = vld [vmem:[%s1204_s1 + $0x180] sm:$0xff] }
  0x38   :  { %512 = vst [vmem:[#allocation2 + $0x130] sm:$0xff] %v448_v22  ;;  %v386_v38 = vadd.f32 %v322_v24, %v258_v28  ;;  %v387_v39 = vadd.f32 %v323_v25, %v259_v29  ;;  %v260_v40 = vadd.f32 %v785_v3, %v192_v30  ;;  %v261_v41 = vadd.f32 %v785_v3, %v193_v31  ;;  %v332_v22 = vld [vmem:[%s1204_s1 + $0x190] sm:$0xff] }
  0x39   :  { %513 = vst [vmem:[#allocation2 + $0x138] sm:$0xff] %v449_v23  ;;  %v262_v44 = vadd.f32 %v785_v3, %v194_v34  ;;  %v263_v45 = vadd.f32 %v785_v3, %v195_v35  ;;  %v196_v46 = vmul.f32 %v780_v1, %v650_v36  ;;  %v197_v47 = vmul.f32 %v780_v1, %v651_v37  ;;  %v333_v23 = vld [vmem:[%s1204_s1 + $0x198] sm:$0xff] }
  0x3a   :  { %v450_v49 = vmax.f32 %v386_v38, 0.0  ;;  %v451_v50 = vmax.f32 %v387_v39, 0.0  ;;  %v388_v51 = vadd.f32 %v324_v32, %v260_v40  ;;  %v389_v52 = vadd.f32 %v325_v33, %v261_v41  ;;  %v334_v32 = vld [vmem:[%s1204_s1 + $0x1a0] sm:$0xff]  ;;  %v335_v33 = vld [vmem:[%s1204_s1 + $0x1a8] sm:$0xff] }
  0x3b   :  { %v390_v55 = vadd.f32 %v326_v42, %v262_v44  ;;  %v391_v56 = vadd.f32 %v327_v43, %v263_v45  ;;  %v264_v57 = vadd.f32 %v785_v3, %v196_v46  ;;  %v265_v58 = vadd.f32 %v785_v3, %v197_v47  ;;  %v711_v38 = vld [vmem:[%s1203_s0 + $0xe0] sm:$0xff]   ;;  %v336_v43 = vld [vmem:[%s1204_s1 + $0x1b0] sm:$0xff]  ;;  %v337_v44 = vld [vmem:[%s1204_s1 + $0x1b8] sm:$0xff] }
  0x3c   :  { %514 = vst [vmem:[#allocation2 + $0x140] sm:$0xff] %v450_v49  ;;  %v452_v60 = vmax.f32 %v388_v51, 0.0  ;;  %v453_v61 = vmax.f32 %v389_v52, 0.0  ;;  %v654_v62 = vunpack.c.l.bf16 %v707_v48  ;;  %v655_v63 = vunpack.c.h.bf16 %v707_v48  ;;  %v712_v49 = vld [vmem:[%s1203_s0 + $0xe8] sm:$0xff]  }
  0x3d   :  { %515 = vst [vmem:[#allocation2 + $0x148] sm:$0xff] %v451_v50  ;;  %v454_v2 = vmax.f32 %v390_v55, 0.0  ;;  %v455_v4 = vmax.f32 %v391_v56, 0.0  ;;  %v392_v5 = vadd.f32 %v328_v53, %v264_v57  ;;  %v393_v6 = vadd.f32 %v329_v54, %v265_v58  ;;  %v713_v54 = vld [vmem:[%s1203_s0 + $0xf0] sm:$0xff]  }
  0x3e   :  { %516 = vst [vmem:[#allocation2 + $0x150] sm:$0xff] %v452_v60  ;;  %v198_v7 = vmul.f32 %v780_v1, %v654_v62  ;;  %v199_v8 = vmul.f32 %v780_v1, %v655_v63  ;;  %v658_v9 = vunpack.c.l.bf16 %v708_v59  ;;  %v659_v10 = vunpack.c.h.bf16 %v708_v59  ;;  %v714_v63 = vld [vmem:[%s1203_s0 + $0xf8] sm:$0xff]  }
  0x3f   :  { %517 = vst [vmem:[#allocation2 + $0x158] sm:$0xff] %v453_v61  ;;  %v456_v12 = vmax.f32 %v392_v5, 0.0  ;;  %v457_v13 = vmax.f32 %v393_v6, 0.0  ;;  %v662_v16 = vunpack.c.l.bf16 %v709_v0  ;;  %v663_v17 = vunpack.c.h.bf16 %v709_v0  ;;  %v339_v5 = vld [vmem:[%s1204_s1 + $0x1c8] sm:$0xff] }
  0x40   :  { %518 = vst [vmem:[#allocation2 + $0x160] sm:$0xff] %v454_v2  ;;  %v266_v18 = vadd.f32 %v785_v3, %v198_v7  ;;  %v267_v19 = vadd.f32 %v785_v3, %v199_v8  ;;  %v200_v20 = vmul.f32 %v780_v1, %v658_v9  ;;  %v201_v21 = vmul.f32 %v780_v1, %v659_v10 }
  0x41   :  { %519 = vst [vmem:[#allocation2 + $0x168] sm:$0xff] %v455_v4  ;;  %v202_v24 = vmul.f32 %v780_v1, %v662_v16  ;;  %v203_v25 = vmul.f32 %v780_v1, %v663_v17  ;;  %v666_v26 = vunpack.c.l.bf16 %v710_v11  ;;  %v667_v27 = vunpack.c.h.bf16 %v710_v11  ;;  %v338_v4 = vld [vmem:[%s1204_s1 + $0x1c0] sm:$0xff] }
  0x42   :  { %520 = vst [vmem:[#allocation2 + $0x170] sm:$0xff] %v456_v12  ;;  %v394_v28 = vadd.f32 %v330_v14, %v266_v18  ;;  %v395_v29 = vadd.f32 %v331_v15, %v267_v19  ;;  %v268_v30 = vadd.f32 %v785_v3, %v200_v20  ;;  %v269_v31 = vadd.f32 %v785_v3, %v201_v21  ;;  %v340_v12 = vld [vmem:[%s1204_s1 + $0x1d0] sm:$0xff] }
  0x43   :  { %521 = vst [vmem:[#allocation2 + $0x178] sm:$0xff] %v457_v13  ;;  %v270_v34 = vadd.f32 %v785_v3, %v202_v24  ;;  %v271_v35 = vadd.f32 %v785_v3, %v203_v25  ;;  %v204_v36 = vmul.f32 %v780_v1, %v666_v26  ;;  %v205_v37 = vmul.f32 %v780_v1, %v667_v27  ;;  %v341_v13 = vld [vmem:[%s1204_s1 + $0x1d8] sm:$0xff] }
  0x44   :  { %v458_v39 = vmax.f32 %v394_v28, 0.0  ;;  %v459_v40 = vmax.f32 %v395_v29, 0.0  ;;  %v396_v41 = vadd.f32 %v332_v22, %v268_v30  ;;  %v397_v42 = vadd.f32 %v333_v23, %v269_v31  ;;  %v342_v22 = vld [vmem:[%s1204_s1 + $0x1e0] sm:$0xff]  ;;  %v343_v23 = vld [vmem:[%s1204_s1 + $0x1e8] sm:$0xff] }
  0x45   :  { %v398_v45 = vadd.f32 %v334_v32, %v270_v34  ;;  %v399_v46 = vadd.f32 %v335_v33, %v271_v35  ;;  %v272_v47 = vadd.f32 %v785_v3, %v204_v36  ;;  %v273_v48 = vadd.f32 %v785_v3, %v205_v37  ;;  %v344_v32 = vld [vmem:[%s1204_s1 + $0x1f0] sm:$0xff]  ;;  %v345_v33 = vld [vmem:[%s1204_s1 + $0x1f8] sm:$0xff]  ;;  %s544_s1 = sshll.u32 %s1207_s4, 4  ;;  %s545_s1 = int_to_ptr.hbm [resolvable:$true] %s544_s1 }
  0x46   :  { %522 = vst [vmem:[#allocation2 + $0x180] sm:$0xff] %v458_v39  ;;  %v460_v50 = vmax.f32 %v396_v41, 0.0  ;;  %v461_v51 = vmax.f32 %v397_v42, 0.0  ;;  %v670_v52 = vunpack.c.l.bf16 %v711_v38  ;;  %v671_v53 = vunpack.c.h.bf16 %v711_v38 }
  0x47   :  { %523 = vst [vmem:[#allocation2 + $0x188] sm:$0xff] %v459_v40  ;;  %v462_v55 = vmax.f32 %v398_v45, 0.0  ;;  %v463_v56 = vmax.f32 %v399_v46, 0.0  ;;  %v400_v57 = vadd.f32 %v336_v43, %v272_v47  ;;  %v401_v58 = vadd.f32 %v337_v44, %v273_v48 }
  0x48   :  { %524 = vst [vmem:[#allocation2 + $0x190] sm:$0xff] %v460_v50  ;;  %v206_v59 = vmul.f32 %v780_v1, %v670_v52  ;;  %v207_v60 = vmul.f32 %v780_v1, %v671_v53  ;;  %v674_v61 = vunpack.c.l.bf16 %v712_v49  ;;  %v675_v62 = vunpack.c.h.bf16 %v712_v49 }
  0x49   :  { %525 = vst [vmem:[#allocation2 + $0x198] sm:$0xff] %v461_v51  ;;  %v464_v0 = vmax.f32 %v400_v57, 0.0  ;;  %v465_v2 = vmax.f32 %v401_v58, 0.0  ;;  %v678_v6 = vunpack.c.l.bf16 %v713_v54  ;;  %v679_v7 = vunpack.c.h.bf16 %v713_v54 }
  0x4a   :  { %526 = vst [vmem:[#allocation2 + $0x1a0] sm:$0xff] %v462_v55  ;;  %v274_v8 = vadd.f32 %v785_v3, %v206_v59  ;;  %v275_v9 = vadd.f32 %v785_v3, %v207_v60  ;;  %v208_v10 = vmul.f32 %v780_v1, %v674_v61  ;;  %v209_v11 = vmul.f32 %v780_v1, %v675_v62 }
  0x4b   :  { %527 = vst [vmem:[#allocation2 + $0x1a8] sm:$0xff] %v463_v56  ;;  %v210_v14 = vmul.f32 %v780_v1, %v678_v6  ;;  %v211_v15 = vmul.f32 %v780_v1, %v679_v7  ;;  %v682_v16 = vunpack.c.l.bf16 %v714_v63  ;;  %v683_v17 = vunpack.c.h.bf16 %v714_v63 }
  0x4c   :  { %528 = vst [vmem:[#allocation2 + $0x1b0] sm:$0xff] %v464_v0  ;;  %v402_v18 = vadd.f32 %v338_v4, %v274_v8  ;;  %v403_v19 = vadd.f32 %v339_v5, %v275_v9  ;;  %v276_v20 = vadd.f32 %v785_v3, %v208_v10  ;;  %v277_v21 = vadd.f32 %v785_v3, %v209_v11 }
  0x4d   :  { %529 = vst [vmem:[#allocation2 + $0x1b8] sm:$0xff] %v465_v2  ;;  %v278_v24 = vadd.f32 %v785_v3, %v210_v14  ;;  %v279_v25 = vadd.f32 %v785_v3, %v211_v15  ;;  %v212_v26 = vmul.f32 %v780_v1, %v682_v16  ;;  %v213_v27 = vmul.f32 %v780_v1, %v683_v17 }
  0x4e   :  { %v466_v28 = vmax.f32 %v402_v18, 0.0  ;;  %v467_v29 = vmax.f32 %v403_v19, 0.0  ;;  %v404_v30 = vadd.f32 %v340_v12, %v276_v20  ;;  %v405_v31 = vadd.f32 %v341_v13, %v277_v21 }
  0x4f   :  { %v406_v34 = vadd.f32 %v342_v22, %v278_v24  ;;  %v407_v35 = vadd.f32 %v343_v23, %v279_v25  ;;  %v280_v36 = vadd.f32 %v785_v3, %v212_v26  ;;  %v281_v37 = vadd.f32 %v785_v3, %v213_v27 }
  0x50   :  { %530 = vst [vmem:[#allocation2 + $0x1c0] sm:$0xff] %v466_v28  ;;  %v468_v1 = vmax.f32 %v404_v30, 0.0  ;;  %v469_v38 = vmax.f32 %v405_v31, 0.0 }
  0x51   :  { %531 = vst [vmem:[#allocation2 + $0x1c8] sm:$0xff] %v467_v29  ;;  %v470_v39 = vmax.f32 %v406_v34, 0.0  ;;  %v471_v40 = vmax.f32 %v407_v35, 0.0  ;;  %v408_v41 = vadd.f32 %v344_v32, %v280_v36  ;;  %v409_v42 = vadd.f32 %v345_v33, %v281_v37 }
  0x52   :  { %532 = vst [vmem:[#allocation2 + $0x1d0] sm:$0xff] %v468_v1 }
  0x53   :  { %533 = vst [vmem:[#allocation2 + $0x1d8] sm:$0xff] %v469_v38  ;;  %v472_v43 = vmax.f32 %v408_v41, 0.0  ;;  %v473_v44 = vmax.f32 %v409_v42, 0.0 }
  0x54   :  { %534 = vst [vmem:[#allocation2 + $0x1e0] sm:$0xff] %v470_v39 }
  0x55   :  { %535 = vst [vmem:[#allocation2 + $0x1e8] sm:$0xff] %v471_v40 }
  0x56   :  { %536 = vst [vmem:[#allocation2 + $0x1f0] sm:$0xff] %v472_v43 }
  0x57   :  { %537 = vst [vmem:[#allocation2 + $0x1f8] sm:$0xff] %v473_v44 }
  0x58   :  { %550 = dma.vmem_to_hbm [thread:$0]  %s543_s15, 8192, %s545_s1, [#allocation3], %s747_s18, %s747_s18, %s748_s19  }
  0x59   :  { %744 = dma.done.wait [#allocation3], 8192  }
  0x5a   :  { %745 = vsyncadd [#allocation3], 4294959104 }
  0x5b   :  { %555 = vsyncpa [#allocation3], 1 }

// kernel: pspnet_block.5
= control target key start
LH: loop header
LB: loop body
LE: loop exit
PB: predicated region body
PF: predicated region fallthrough
CT: control target
= control target key end

     0   :  { %s3186_s18 = smov 0   ;;  %s4250_s0 = inlined_call_operand.vmem [shape: bf16[512,128], index: 0, kind: input, shape index: {}]   ;;  %s4251_s1 = inlined_call_operand.vmem [shape: bf16[3,384,128], index: 1, kind: input, shape index: {}]   ;;  %s4252_s2 = inlined_call_operand.vmem [shape: f32[1,128], index: 2, kind: input, shape index: {}]   ;;  %s4253_s3 = inlined_call_operand.vmem [shape: f32[1,128], index: 3, kind: input, shape index: {}]   ;;  %s4254_s4 = inlined_call_operand.vmem [shape: bf16[512,128], index: 4, kind: output, shape index: {0}]   ;;  %s4255_s5 = inlined_call_operand.vmem [shape: f32[2,2,128], index: 5, kind: output, shape index: {1}]  }
   0x1 LB: > { %s3192_s19 = sadd.s32 4294967295, %s3152_s18   ;;  %p2568_p0 = scmp.ge.s32.totalorder %s3152_s18, 1  ;;  %s3152_s18 = sphi %s3186_s18, %s16_s18  }
   0x2   : > { %p191_p1 = scmp.lt.s32.totalorder %s3152_s18, 3 }
   0x4   : > { %p192_p2 = pnand %p2568_p0, %p191_p1 }
   0x6   : > { %195 = sbr.rel (%p192_p2) target bundleno = 788 (0x314), region = 36 }
   0xb   : > { %v2895_v0 = vld [vmem:[%s4251_s1 + $0xf8] sm:$0xff]  ;;  %s2569_s22 = sshll.u32 %s3192_s19, 5  ;;  %v3154_v1 = vmov 0.0   ;;  %v2894_v2 = vld [vmem:[%s4251_s1 + $0xf0] sm:$0xff]  ;;  %v2893_v3 = vld [vmem:[%s4251_s1 + $0xe8] sm:$0xff]  ;;  %vm725_vm0 = vcmask 1046528  }
   0xc   : > { %p224_p3 = scmp.lt.s32.totalorder %s2569_s22, 63  ;;  %415 = vst [vmem:[#allocation2 + $0x18] sm:$0x1] %v3154_v1  ;;  %1163 = vmatpush.bf16.msra.mxu0 %v2895_v0  ;;  %3110 = vmatpush.bf16.msra.mxu1 %v2895_v0  ;;  %v3222_v4 = vld [vmem:[%s4252_s2] ss:$0 sm:$0xff]  ;;  %v2891_v14 = vld [vmem:[%s4251_s1 + $0xd8] sm:$0xff] }
   0xd   : > { %407 = vst [vmem:[#allocation2] sm:$0xff] %v3154_v1  ;;  %3111 = vmatpush.bf16.msra.mxu2 %v2895_v0  ;;  %3112 = vmatpush.bf16.msra.mxu3 %v2895_v0  ;;  %v3229_v8 = vld [vmem:[%s4253_s3] ss:$0 sm:$0xff]  ;;  %v2890_v17 = vld [vmem:[%s4251_s1 + $0xd0] sm:$0xff]  ;;  %v2889_v18 = vld [vmem:[%s4251_s1 + $0xc8] sm:$0xff]  ;;  %vm838_vm1 = vcmask 1045504  }
   0xe   : > { %s4370_s22 = smov (!%p224_p3, %s2569_s22), 63  ;;  %409 = vst [vmem:[#allocation2 + $0x10] sm:$0x3] %v3154_v1  ;;  %v2892_v9 = vld [vmem:[%s4251_s1 + $0xe0] sm:$0xff]  ;;  %v2911_v29 = vld [vmem:[%s4251_s1 + $0x178] sm:$0xff]  ;;  %v2910_v43 = vld [vmem:[%s4251_s1 + $0x170] sm:$0xff] }
   0xf   : > { %s2570_s25 = sshll.u32 %s4370_s22, 2  ;;  %413 = vst [vmem:[#allocation2 + $0x1a8] sm:$0x3] %v3154_v1  ;;  %v2888_v21 = vld [vmem:[%s4251_s1 + $0xc0] sm:$0xff]  ;;  %v2871_v30 = vld [vmem:[%s4251_s1 + $0x38] sm:$0xff]  ;;  %v2870_v44 = vld [vmem:[%s4251_s1 + $0x30] sm:$0xff] }
  0x10   : > { %1164 = vmatpush.bf16.msra.mxu0 %v2894_v2  ;;  %3113 = vmatpush.bf16.msra.mxu1 %v2894_v2  ;;  %s3217_s30 = scalar_lea.vmem %s4250_s0, %s2570_s25  ;;  %416 = vst [vmem:[#allocation2 + $0x30] sm:$0x1] %v3154_v1  ;;  %v2903_v35 = vld [vmem:[%s4251_s1 + $0x138] sm:$0xff]  ;;  %s4166_s29 = scalar_lea.vmem %s4254_s4, %s2570_s25  ;;  %vm2474_vm2 = vcmask 1040384  }
  0x11   : > { %3114 = vmatpush.bf16.msra.mxu2 %v2894_v2  ;;  %3115 = vmatpush.bf16.msra.mxu3 %v2894_v2  ;;  %v2937_v5 = vld [vmem:[%s3217_s30] sm:$0xff]   ;;  %417 = vst [vmem:[#allocation2 + $0x48] sm:$0x1] %v3154_v1  ;;  %v3080_v31 = vld [vmem:[%s3217_s30 + $0x8] sm:$0xff]   ;;  %v2879_v38 = vld [vmem:[%s4251_s1 + $0x78] sm:$0xff]  ;;  %p235_p4 = scmp.lt.s32.totalorder %s3192_s19, 1 }
  0x12   : > { %v2938_v6 = vunpack.c.l.bf16 %v2937_v5  ;;  %v2939_v7 = vunpack.c.h.bf16 %v2937_v5  ;;  %418 = vst [vmem:[#allocation2 + $0x60] sm:$0x1] %v3154_v1  ;;  %v3083_v19 = vld [vmem:[%s3217_s30 + $0x20] sm:$0xff]   ;;  %v3084_v39 = vld [vmem:[%s3217_s30 + $0x28] sm:$0xff]   ;;  %v2942_v41 = vunpack.c.l.bf16 %v3080_v31  ;;  %v2943_v45 = vunpack.c.h.bf16 %v3080_v31  ;;  %v3081_v0 = vld [vmem:[%s3217_s30 + $0x10] sm:$0xff]  }
  0x13   : > { %419 = vst [vmem:[#allocation2 + $0x78] sm:$0x1] %v3154_v1  ;;  %v3087_v20 = vld [vmem:[%s3217_s30 + $0x40] sm:$0xff]   ;;  %v2954_v22 = vunpack.c.l.bf16 %v3083_v19  ;;  %v2955_v25 = vunpack.c.h.bf16 %v3083_v19  ;;  %v3088_v46 = vld [vmem:[%s3217_s30 + $0x48] sm:$0xff]   ;;  %v2958_v49 = vunpack.c.l.bf16 %v3084_v39  ;;  %v2959_v52 = vunpack.c.h.bf16 %v3084_v39  ;;  %s4372_s19 = smov (!%p235_p4, %s3192_s19), 1 }
  0x14   : > { %1165 = vmatpush.bf16.msra.mxu0 %v2893_v3  ;;  %3116 = vmatpush.bf16.msra.mxu1 %v2893_v3  ;;  %v307_v10 = vmul.f32 %v3222_v4, %v2938_v6  ;;  %v308_v11 = vmul.f32 %v3222_v4, %v2939_v7  ;;  %420 = vst [vmem:[#allocation2 + $0x90] sm:$0x1] %v3154_v1  ;;  %v3091_v26 = vld [vmem:[%s3217_s30 + $0x60] sm:$0xff]   ;;  %v2970_v27 = vunpack.c.l.bf16 %v3087_v20  ;;  %v2971_v28 = vunpack.c.h.bf16 %v3087_v20  ;;  %v3092_v53 = vld [vmem:[%s3217_s30 + $0x68] sm:$0xff]   ;;  %v3085_v7 = vld [vmem:[%s3217_s30 + $0x30] sm:$0xff]   ;;  %s2573_s22 = sshll.u32 %s4372_s19, 1 }
  0x15   : > { %3117 = vmatpush.bf16.msra.mxu2 %v2893_v3  ;;  %3118 = vmatpush.bf16.msra.mxu3 %v2893_v3  ;;  %421 = vst [vmem:[#allocation2 + $0xa8] sm:$0x1] %v3154_v1  ;;  %v315_v33 = vmul.f32 %v3222_v4, %v2954_v22  ;;  %v2986_v34 = vunpack.c.l.bf16 %v3091_v26  ;;  %v316_v36 = vmul.f32 %v3222_v4, %v2955_v25  ;;  %v2987_v37 = vunpack.c.h.bf16 %v3091_v26  ;;  %v2869_v19 = vld [vmem:[%s4251_s1 + $0x28] sm:$0xff]  ;;  %v2878_v26 = vld [vmem:[%s4251_s1 + $0x70] sm:$0xff]  ;;  %s238_s7 = scalar_lea.vmem %s4255_s5, %s2573_s22 }
  0x16   : > { %v343_v12 = vadd.f32 %v3229_v8, %v307_v10  ;;  %v344_v13 = vadd.f32 %v3229_v8, %v308_v11  ;;  %422 = vst [vmem:[#allocation2 + $0xc0] sm:$0x1] %v3154_v1  ;;  %v323_v40 = vmul.f32 %v3222_v4, %v2970_v27  ;;  %v324_v42 = vmul.f32 %v3222_v4, %v2971_v28  ;;  %v2901_v31 = vld [vmem:[%s4251_s1 + $0x128] sm:$0xff] }
  0x17   : > { %423 = vst [vmem:[#allocation2 + $0xd8] sm:$0x1] %v3154_v1  ;;  %v351_v47 = vadd.f32 %v3229_v8, %v315_v33  ;;  %v331_v48 = vmul.f32 %v3222_v4, %v2986_v34  ;;  %v352_v50 = vadd.f32 %v3229_v8, %v316_v36  ;;  %v332_v51 = vmul.f32 %v3222_v4, %v2987_v37  ;;  %v2908_v33 = vld [vmem:[%s4251_s1 + $0x160] sm:$0xff]  ;;  %v2877_v39 = vld [vmem:[%s4251_s1 + $0x68] sm:$0xff] }
  0x18   : > { %1166 = vmatpush.bf16.msra.mxu0 %v2892_v9  ;;  %3119 = vmatpush.bf16.msra.mxu1 %v2892_v9  ;;  %v375_v15 = vmax.f32 %v343_v12, 0.0  ;;  %v376_v16 = vmax.f32 %v344_v13, 0.0  ;;  %424 = vst [vmem:[#allocation2 + $0xf0] sm:$0x1] %v3154_v1  ;;  %v359_v54 = vadd.f32 %v3229_v8, %v323_v40  ;;  %v309_v55 = vmul.f32 %v3222_v4, %v2942_v41  ;;  %v3089_v13 = vld [vmem:[%s3217_s30 + $0x50] sm:$0xff]  }
  0x19   : > { %3120 = vmatpush.bf16.msra.mxu2 %v2892_v9  ;;  %3121 = vmatpush.bf16.msra.mxu3 %v2892_v9  ;;  %425 = vst [vmem:[#allocation2 + $0x108] sm:$0x1] %v3154_v1  ;;  %v2974_v56 = vunpack.c.l.bf16 %v3088_v46  ;;  %v360_v57 = vadd.f32 %v3229_v8, %v324_v42  ;;  %v310_v58 = vmul.f32 %v3222_v4, %v2943_v45  ;;  %v2975_v59 = vunpack.c.h.bf16 %v3088_v46 }
  0x1a   : > { %447 = vst [vmem:[#allocation2 + $0x19] sm:$0xff] %v375_v15  ;;  %v383_v60 = vmax.f32 %v351_v47, 0.0  ;;  %v367_v61 = vadd.f32 %v3229_v8, %v331_v48  ;;  %v317_v62 = vmul.f32 %v3222_v4, %v2958_v49  ;;  %v2990_v63 = vunpack.c.l.bf16 %v3092_v53 }
  0x1b   : > { %448 = vst [vmem:[#allocation2 + $0x21] sm:$0xff] %v376_v16  ;;  %v384_v2 = vmax.f32 %v352_v50, 0.0  ;;  %v368_v3 = vadd.f32 %v3229_v8, %v332_v51  ;;  %v318_v5 = vmul.f32 %v3222_v4, %v2959_v52  ;;  %v2991_v6 = vunpack.c.h.bf16 %v3092_v53 }
  0x1c   : > { %1167 = vmatpush.bf16.msra.mxu0 %v2891_v14  ;;  %3122 = vmatpush.bf16.msra.mxu1 %v2891_v14  ;;  %426 = vst [vmem:[#allocation2 + $0x120] sm:$0x1] %v3154_v1  ;;  %v391_v9 = vmax.f32 %v359_v54, 0.0  ;;  %v345_v10 = vadd.f32 %v3229_v8, %v309_v55  ;;  %v325_v11 = vmul.f32 %v3222_v4, %v2974_v56  ;;  %v2946_v12 = vunpack.c.l.bf16 %v3081_v0 }
  0x1d   : > { %3123 = vmatpush.bf16.msra.mxu2 %v2891_v14  ;;  %3124 = vmatpush.bf16.msra.mxu3 %v2891_v14  ;;  %427 = vst [vmem:[#allocation2 + $0x138] sm:$0x1] %v3154_v1  ;;  %v392_v14 = vmax.f32 %v360_v57, 0.0  ;;  %v346_v15 = vadd.f32 %v3229_v8, %v310_v58  ;;  %v326_v16 = vmul.f32 %v3222_v4, %v2975_v59  ;;  %v2947_v20 = vunpack.c.h.bf16 %v3081_v0 }
  0x1e   : > { %428 = vst [vmem:[#allocation2 + $0x150] sm:$0x1] %v3154_v1  ;;  %v353_v22 = vadd.f32 %v3229_v8, %v317_v62  ;;  %v333_v25 = vmul.f32 %v3222_v4, %v2990_v63  ;;  %v2962_v27 = vunpack.c.l.bf16 %v3085_v7  ;;  %v400_v28 = vmax.f32 %v368_v3, 0.0 }
  0x1f   : > { %429 = vst [vmem:[#allocation2 + $0x168] sm:$0x1] %v3154_v1  ;;  %v2963_v34 = vunpack.c.h.bf16 %v3085_v7  ;;  %v377_v36 = vmax.f32 %v345_v10, 0.0  ;;  %v361_v37 = vadd.f32 %v3229_v8, %v325_v11  ;;  %v311_v40 = vmul.f32 %v3222_v4, %v2946_v12 }
  0x20   : > { %1168 = vmatpush.bf16.msra.mxu0 %v2890_v17  ;;  %3125 = vmatpush.bf16.msra.mxu1 %v2890_v17  ;;  %430 = vst [vmem:[#allocation2 + $0x180] sm:$0x1] %v3154_v1  ;;  %v2978_v41 = vunpack.c.l.bf16 %v3089_v13  ;;  %v378_v42 = vmax.f32 %v346_v15, 0.0  ;;  %v2979_v45 = vunpack.c.h.bf16 %v3089_v13  ;;  %v385_v46 = vmax.f32 %v353_v22, 0.0 }
  0x21   : > { %3126 = vmatpush.bf16.msra.mxu2 %v2890_v17  ;;  %3127 = vmatpush.bf16.msra.mxu3 %v2890_v17  ;;  %431 = vst [vmem:[#allocation2 + $0x29] sm:$0x1] %v3154_v1  ;;  %v3268_v23 = vld [vmem:[#allocation2 + $0x18] sm:$0xff]  ;;  %v2902_v17 = vld [vmem:[%s4251_s1 + $0x130] sm:$0xff]  ;;  %v369_v47 = vadd.f32 %v3229_v8, %v333_v25  ;;  %v319_v48 = vmul.f32 %v3222_v4, %v2962_v27  ;;  %v393_v54 = vmax.f32 %v361_v37, 0.0 }
  0x22   : > { %v3270_v24 = vld [vmem:[#allocation2 + $0x20] sm:$0xff]  ;;  %432 = vst [vmem:[#allocation2 + $0x41] sm:$0x1] %v3154_v1  ;;  %v320_v52 = vmul.f32 %v3222_v4, %v2963_v34  ;;  %v347_v55 = vadd.f32 %v3229_v8, %v311_v40  ;;  %v327_v56 = vmul.f32 %v3222_v4, %v2978_v41 }
  0x23   : > { %433 = vst [vmem:[#allocation2 + $0x59] sm:$0x1] %v3154_v1  ;;  %v3285_v32 = vpack.c.bf16 %v3270_v24, %v3268_v23  ;;  %v401_v62 = vmax.f32 %v369_v47, 0.0  ;;  %v355_v63 = vadd.f32 %v3229_v8, %v319_v48  ;;  %v2876_v40 = vld [vmem:[%s4251_s1 + $0x60] sm:$0xff]  ;;  %v2866_v47 = vld [vmem:[%s4251_s1 + $0x10] sm:$0xff] }
  0x24   : > { %1169 = vmatpush.bf16.msra.mxu0 %v2889_v18  ;;  %3128 = vmatpush.bf16.msra.mxu1 %v2889_v18  ;;  %434 = vst [vmem:[#allocation2 + $0x71] sm:$0x1] %v3154_v1  ;;  %v379_v10 = vmax.f32 %v347_v55, 0.0  ;;  %v363_v11 = vadd.f32 %v3229_v8, %v327_v56 }
  0x25   : > { %3129 = vmatpush.bf16.msra.mxu2 %v2889_v18  ;;  %3130 = vmatpush.bf16.msra.mxu3 %v2889_v18  ;;  %435 = vst [vmem:[#allocation2 + $0x89] sm:$0x1] %v3154_v1  ;;  %v2909_v18 = vld [vmem:[%s4251_s1 + $0x168] sm:$0xff] }
  0x26   : > { %436 = vst [vmem:[#allocation2 + $0xa1] sm:$0x1] %v3154_v1 }
  0x27   : > { %437 = vst [vmem:[#allocation2 + $0xb9] sm:$0x1] %v3154_v1 }
  0x28   : > { %1170 = vmatpush.bf16.msra.mxu0 %v2888_v21  ;;  %3131 = vmatpush.bf16.msra.mxu1 %v2888_v21  ;;  %438 = vst [vmem:[#allocation2 + $0xd1] sm:$0x1] %v3154_v1 }
  0x29   : > { %3132 = vmatpush.bf16.msra.mxu2 %v2888_v21  ;;  %3133 = vmatpush.bf16.msra.mxu3 %v2888_v21  ;;  %439 = vst [vmem:[#allocation2 + $0xe9] sm:$0x1] %v3154_v1  ;;  %v399_v21 = vmax.f32 %v367_v61, 0.0 }
  0x2a   : > { %440 = vst [vmem:[#allocation2 + $0x101] sm:$0x1] %v3154_v1 }
  0x2b   : > { %1171 = vmatmul.bf16.vlgmr.msra.gmra.mxu0 %v3285_v32  ;;  %441 = vst [vmem:[#allocation2 + $0x119] sm:$0x1] %v3154_v1 }
  0x2c   : > { %1252 = vmatpush.bf16.msrb.mxu1 %v2903_v35  ;;  %1663 = vmatpush.bf16.msrb.mxu0 %v2879_v38  ;;  %442 = vst [vmem:[#allocation2 + $0x131] sm:$0x1] %v3154_v1  ;;  %v3093_v35 = vld [vmem:[%s3217_s30 + $0x70] sm:$0xff]   ;;  %v2868_v38 = vld [vmem:[%s4251_s1 + $0x20] sm:$0xff] }
  0x2d   : > { %1341 = vmatpush.bf16.msrb.mxu2 %v2911_v29  ;;  %1574 = vmatpush.bf16.msrb.mxu3 %v2871_v30  ;;  %443 = vst [vmem:[#allocation2 + $0x149] sm:$0x1] %v3154_v1  ;;  %v354_v29 = vadd.f32 %v3229_v8, %v318_v5  ;;  %v334_v30 = vmul.f32 %v3222_v4, %v2991_v6  ;;  %v2994_v49 = vunpack.c.l.bf16 %v3093_v35  ;;  %v2995_v53 = vunpack.c.h.bf16 %v3093_v35  ;;  %v2900_v35 = vld [vmem:[%s4251_s1 + $0x120] sm:$0xff] }
  0x2e   : > { %444 = vst [vmem:[#allocation2 + $0x161] sm:$0x1] %v3154_v1  ;;  %v356_v6 = vadd.f32 %v3229_v8, %v320_v52  ;;  %v3090_v52 = vld [vmem:[%s3217_s30 + $0x58] sm:$0xff]  }
  0x2f   : > { %445 = vst [vmem:[#allocation2 + $0x179] sm:$0x1] %v3154_v1  ;;  %v386_v50 = vmax.f32 %v354_v29, 0.0  ;;  %v370_v51 = vadd.f32 %v3229_v8, %v334_v30  ;;  %v335_v0 = vmul.f32 %v3222_v4, %v2994_v49  ;;  %v336_v7 = vmul.f32 %v3222_v4, %v2995_v53 }
  0x30   : > { %446 = vst [vmem:[#allocation2 + $0x191] sm:$0x1] %v3154_v1  ;;  %1253 = vmatpush.bf16.msrb.mxu1 %v2902_v17  ;;  %1664 = vmatpush.bf16.msrb.mxu0 %v2878_v26  ;;  %v387_v17 = vmax.f32 %v355_v63, 0.0  ;;  %v388_v25 = vmax.f32 %v356_v6, 0.0  ;;  %v395_v29 = vmax.f32 %v363_v11, 0.0  ;;  %v2982_v63 = vunpack.c.l.bf16 %v3090_v52  ;;  %v3094_v6 = vld [vmem:[%s3217_s30 + $0x78] sm:$0xff]  }
  0x31   : > { %1342 = vmatpush.bf16.msrb.mxu2 %v2910_v43  ;;  %1575 = vmatpush.bf16.msrb.mxu3 %v2870_v44  ;;  %455 = vst [vmem:[#allocation2 + $0x79] sm:$0xff] %v383_v60  ;;  %v362_v43 = vadd.f32 %v3229_v8, %v326_v16  ;;  %v312_v44 = vmul.f32 %v3222_v4, %v2947_v20  ;;  %v402_v5 = vmax.f32 %v370_v51, 0.0  ;;  %v3086_v20 = vld [vmem:[%s3217_s30 + $0x38] sm:$0xff]  }
  0x32   : > { %456 = vst [vmem:[#allocation2 + $0x81] sm:$0xff] %v384_v2  ;;  %v328_v60 = vmul.f32 %v3222_v4, %v2979_v45  ;;  %v372_v26 = vadd.f32 %v3229_v8, %v336_v7 }
  0x33   : > { %463 = vst [vmem:[#allocation2 + $0xd9] sm:$0xff] %v391_v9  ;;  %v394_v58 = vmax.f32 %v362_v43, 0.0  ;;  %v348_v59 = vadd.f32 %v3229_v8, %v312_v44  ;;  %v2899_v44 = vld [vmem:[%s4251_s1 + $0x118] sm:$0xff] }
  0x34   : > { %464 = vst [vmem:[#allocation2 + $0xe1] sm:$0xff] %v392_v14  ;;  %1254 = vmatpush.bf16.msrb.mxu1 %v2901_v31  ;;  %1665 = vmatpush.bf16.msrb.mxu0 %v2877_v39  ;;  %v364_v15 = vadd.f32 %v3229_v8, %v328_v60  ;;  %v2966_v31 = vunpack.c.l.bf16 %v3086_v20  ;;  %v2867_v39 = vld [vmem:[%s4251_s1 + $0x18] sm:$0xff]  ;;  %v404_v43 = vmax.f32 %v372_v26, 0.0 }
  0x35   : > { %1343 = vmatpush.bf16.msrb.mxu2 %v2909_v18  ;;  %1576 = vmatpush.bf16.msrb.mxu3 %v2869_v19  ;;  %471 = vst [vmem:[#allocation2 + $0x139] sm:$0xff] %v399_v21  ;;  %v380_v14 = vmax.f32 %v348_v59, 0.0  ;;  %v371_v18 = vadd.f32 %v3229_v8, %v335_v0  ;;  %v3082_v19 = vld [vmem:[%s3217_s30 + $0x18] sm:$0xff]  }
  0x36   : > { %472 = vst [vmem:[#allocation2 + $0x141] sm:$0xff] %v400_v28  ;;  %v2950_v27 = vunpack.c.l.bf16 %v3082_v19  ;;  %v2951_v30 = vunpack.c.h.bf16 %v3082_v19  ;;  %v396_v34 = vmax.f32 %v364_v15, 0.0  ;;  %v321_v49 = vmul.f32 %v3222_v4, %v2966_v31 }
  0x37   : > { %449 = vst [vmem:[#allocation2 + $0x31] sm:$0xff] %v377_v36  ;;  %v2907_v36 = vld [vmem:[%s4251_s1 + $0x158] sm:$0xff]  ;;  %v731_v31 = vrot.slane %v3268_v23, 1 }
  0x38   : > { %v3377_v57 = vld [vmem:[#allocation2 + $0x78] sm:$0xff]  ;;  %450 = vst [vmem:[#allocation2 + $0x39] sm:$0xff] %v378_v42  ;;  %v313_v37 = vmul.f32 %v3222_v4, %v2950_v27  ;;  %v314_v41 = vmul.f32 %v3222_v4, %v2951_v30  ;;  %v2967_v42 = vunpack.c.h.bf16 %v3086_v20  ;;  %1255 = vmatpush.bf16.msrb.mxu1 %v2900_v35  ;;  %1666 = vmatpush.bf16.msrb.mxu0 %v2876_v40  ;;  %v2999_v30 = vunpack.c.h.bf16 %v3094_v6  ;;  %v2898_v40 = vld [vmem:[%s4251_s1 + $0x110] sm:$0xff] }
  0x39   : > { %1344 = vmatpush.bf16.msrb.mxu2 %v2908_v33  ;;  %1577 = vmatpush.bf16.msrb.mxu3 %v2868_v38  ;;  %v3381_v61 = vld [vmem:[#allocation2 + $0x80] sm:$0xff]  ;;  %457 = vst [vmem:[#allocation2 + $0x91] sm:$0xff] %v385_v46  ;;  %v403_v38 = vmax.f32 %v371_v18, 0.0  ;;  %v2906_v46 = vld [vmem:[%s4251_s1 + $0x150] sm:$0xff] }
  0x3a   : > { %v3387_v2 = vpack.c.bf16 %v3381_v61, %v3377_v57  ;;  %v3389_v3 = vld [vmem:[#allocation2 + $0xd8] sm:$0xff]  ;;  %458 = vst [vmem:[#allocation2 + $0x99] sm:$0xff] %v386_v50  ;;  %v349_v45 = vadd.f32 %v3229_v8, %v313_v37  ;;  %v350_v48 = vadd.f32 %v3229_v8, %v314_v41  ;;  %v322_v56 = vmul.f32 %v3222_v4, %v2967_v42  ;;  %v2905_v41 = vld [vmem:[%s4251_s1 + $0x148] sm:$0xff] }
  0x3b   : > { %v3393_v9 = vld [vmem:[#allocation2 + $0xe0] sm:$0xff]  ;;  %465 = vst [vmem:[#allocation2 + $0xf1] sm:$0xff] %v393_v54  ;;  %v2875_v50 = vld [vmem:[%s4251_s1 + $0x58] sm:$0xff]  ;;  %v2865_v42 = vld [vmem:[%s4251_s1 + $0x8] sm:$0xff] }
  0x3c   : > { %4281 = vst [vmem:[#allocation3_spill] sm:$0xff] %v3387_v2  ;;  %1191 = vmatmul.bf16.vlgmr.msra.gmra.mxu1 %v3387_v2  ;;  %v3399_v12 = vpack.c.bf16 %v3393_v9, %v3389_v3  ;;  %v3401_v13 = vld [vmem:[#allocation2 + $0x138] sm:$0xff]  ;;  %v381_v51 = vmax.f32 %v349_v45, 0.0  ;;  %v382_v55 = vmax.f32 %v350_v48, 0.0  ;;  %1667 = vmatpush.bf16.msrb.mxu0 %v2875_v50  ;;  %v2897_v45 = vld [vmem:[%s4251_s1 + $0x108] sm:$0xff]  ;;  %v2904_v48 = vld [vmem:[%s4251_s1 + $0x140] sm:$0xff] }
  0x3d   : > { %466 = vst [vmem:[#allocation2 + $0xf9] sm:$0xff] %v394_v58  ;;  %v3404_v16 = vld [vmem:[#allocation2 + $0x140] sm:$0xff]  ;;  %1345 = vmatpush.bf16.msrb.mxu2 %v2907_v36  ;;  %1578 = vmatpush.bf16.msrb.mxu3 %v2867_v39  ;;  %v357_v58 = vadd.f32 %v3229_v8, %v321_v49  ;;  %v338_v39 = vmul.f32 %v3222_v4, %v2999_v30 }
  0x3e   : > { %473 = vst [vmem:[#allocation2 + $0x151] sm:$0xff] %v401_v62  ;;  %1211 = vmatmul.bf16.vlgmr.msra.gmra.mxu2 %v3399_v12  ;;  %v3412_v21 = vpack.c.bf16 %v3404_v16, %v3401_v13  ;;  %v3414_v22 = vld [vmem:[#allocation2 + $0x30] sm:$0xff]  ;;  %1256 = vmatpush.bf16.msrb.mxu1 %v2899_v44  ;;  %v358_v62 = vadd.f32 %v3229_v8, %v322_v56  ;;  %v2864_v49 = vld [vmem:[%s4251_s1] sm:$0xff] }
  0x3f   : > { %474 = vst [vmem:[#allocation2 + $0x159] sm:$0xff] %v402_v5  ;;  %v3417_v28 = vld [vmem:[#allocation2 + $0x38] sm:$0xff]  ;;  %v389_v5 = vmax.f32 %v357_v58, 0.0  ;;  %v2874_v44 = vld [vmem:[%s4251_s1 + $0x50] sm:$0xff]  ;;  %v2896_v58 = vld [vmem:[%s4251_s1 + $0x100] sm:$0xff] }
  0x40   : > { %451 = vst [vmem:[#allocation2 + $0x49] sm:$0xff] %v379_v10  ;;  %1231 = vmatmul.bf16.vlgmr.msra.gmra.mxu3 %v3412_v21  ;;  %v3422_v33 = vpack.c.bf16 %v3417_v28, %v3414_v22  ;;  %v3455_v53 = vld [vmem:[#allocation2 + $0x90] sm:$0xff]  ;;  %v390_v11 = vmax.f32 %v358_v62, 0.0  ;;  %1668 = vmatpush.bf16.msrb.mxu0 %v2874_v44 }
  0x41   : > { %452 = vst [vmem:[#allocation2 + $0x51] sm:$0xff] %v380_v14  ;;  %v3457_v54 = vld [vmem:[#allocation2 + $0x98] sm:$0xff]  ;;  %1346 = vmatpush.bf16.msrb.mxu2 %v2906_v46  ;;  %1579 = vmatpush.bf16.msrb.mxu3 %v2866_v47  ;;  %v2983_v14 = vunpack.c.h.bf16 %v3090_v52 }
  0x42   : > { %459 = vst [vmem:[#allocation2 + $0xa9] sm:$0xff] %v387_v17  ;;  %1176 = vmatmul.bf16.gmra.mxu0 %v3422_v33  ;;  %v3461_v59 = vld [vmem:[#allocation2 + $0xf0] sm:$0xff]  ;;  %v3468_v0 = vpack.c.bf16 %v3457_v54, %v3455_v53  ;;  %v329_v17 = vmul.f32 %v3222_v4, %v2982_v63  ;;  %1257 = vmatpush.bf16.msrb.mxu1 %v2898_v40 }
  0x43   : > { %460 = vst [vmem:[#allocation2 + $0xb1] sm:$0xff] %v388_v25  ;;  %v330_v20 = vmul.f32 %v3222_v4, %v2983_v14  ;;  %v2998_v25 = vunpack.c.l.bf16 %v3094_v6 }
  0x44   : > { %467 = vst [vmem:[#allocation2 + $0x109] sm:$0xff] %v395_v29  ;;  %v3463_v60 = vld [vmem:[#allocation2 + $0xf8] sm:$0xff]  ;;  %v365_v27 = vadd.f32 %v3229_v8, %v329_v17  ;;  %v844_v17 = vrot.slane %v3268_v23, 2  ;;  %v737_v23 = vrot.slane %v3417_v28, 1 }
  0x45   : > { %468 = vst [vmem:[#allocation2 + $0x111] sm:$0xff] %v396_v34  ;;  %v3471_v7 = vld [vmem:[#allocation2 + $0x150] sm:$0xff]  ;;  %v3477_v15 = vpack.c.bf16 %v3463_v60, %v3461_v59  ;;  %v366_v29 = vadd.f32 %v3229_v8, %v330_v20  ;;  %v732_v34 = vrot.slane %v3270_v24, 1  ;;  %1347 = vmatpush.bf16.msrb.mxu2 %v2905_v41  ;;  %1580 = vmatpush.bf16.msrb.mxu3 %v2865_v42  ;;  %v845_v20 = vrot.slane %v3270_v24, 2  ;;  %v2919_v41 = vld [vmem:[%s4251_s1 + $0x1b8] sm:$0xff] }
  0x46   : > { %475 = vst [vmem:[#allocation2 + $0x169] sm:$0xff] %v403_v38  ;;  %v3473_v10 = vld [vmem:[#allocation2 + $0x158] sm:$0xff]  ;;  %v397_v36 = vmax.f32 %v365_v27, 0.0  ;;  %v337_v38 = vmul.f32 %v3222_v4, %v2998_v25  ;;  %v374_v4 = vadd.f32 %v3229_v8, %v338_v39  ;;  %1258 = vmatpush.bf16.msrb.mxu1 %v2897_v45  ;;  %v487_v45 = vld [vmem:[#allocation2 + $0x40] sm:$0x3] }
  0x47   : > { %476 = vst [vmem:[#allocation2 + $0x171] sm:$0xff] %v404_v43  ;;  %v3480_v18 = vld [vmem:[#allocation2 + $0x48] sm:$0xff]  ;;  %v3488_v26 = vpack.c.bf16 %v3473_v10, %v3471_v7  ;;  %v398_v37 = vmax.f32 %v366_v29, 0.0  ;;  %v733_v46 = vsel %vm725_vm0, %v731_v31, %v732_v34  ;;  %v2927_v42 = vld [vmem:[%s4251_s1 + $0x1f8] sm:$0xff] }
  0x48   : > { %453 = vst [vmem:[#allocation2 + $0x61] sm:$0xff] %v381_v51  ;;  %v3482_v19 = vld [vmem:[#allocation2 + $0x50] sm:$0xff]  ;;  %v373_v43 = vadd.f32 %v3229_v8, %v337_v38  ;;  %v406_v50 = vmax.f32 %v374_v4, 0.0  ;;  %v2873_v8 = vld [vmem:[%s4251_s1 + $0x48] sm:$0xff]  ;;  %v2935_v4 = vld [vmem:[%s4251_s1 + $0x238] sm:$0xff] }
  0x49   : > { %4282 = vst [vmem:[#allocation4_spill] sm:$0xff] %v3468_v0  ;;  %v3497_v35 = vpack.c.bf16 %v3482_v19, %v3480_v18  ;;  %v484_v51 = vld [vmem:[#allocation2 + $0x28] sm:$0x3]  ;;  %1348 = vmatpush.bf16.msrb.mxu2 %v2904_v48  ;;  %1581 = vmatpush.bf16.msrb.mxu3 %v2864_v49 }
  0x4a   : > { %454 = vst [vmem:[#allocation2 + $0x69] sm:$0xff] %v382_v55  ;;  %v405_v47 = vmax.f32 %v373_v43, 0.0  ;;  %v3530_v52 = vld [vmem:[#allocation2 + $0xa8] sm:$0xff]  ;;  %v3532_v55 = vld [vmem:[#allocation2 + $0xb0] sm:$0xff]  ;;  %v734_v56 = vrot.slane %v484_v51, 1  ;;  %1669 = vmatpush.bf16.msrb.mxu0 %v2873_v8  ;;  %1259 = vmatpush.bf16.msrb.mxu1 %v2896_v58  ;;  %v2887_v43 = vld [vmem:[%s4251_s1 + $0xb8] sm:$0xff] }
  0x4b   : > { %461 = vst [vmem:[#allocation2 + $0xc1] sm:$0xff] %v389_v5  ;;  %v3537_v62 = vld [vmem:[#allocation2 + $0x108] sm:$0xff]  ;;  %v3544_v6 = vpack.c.bf16 %v3532_v55, %v3530_v52  ;;  %v726_v58 = vrot.slane %v3154_v1, 1 }
  0x4c   : > { %462 = vst [vmem:[#allocation2 + $0xc9] sm:$0xff] %v390_v11  ;;  %1196 = vmatmul.bf16.gmra.mxu1 %v3468_v0  ;;  %v3539_v63 = vld [vmem:[#allocation2 + $0x110] sm:$0xff]  ;;  %v735_v5 = vsel %vm725_vm0, %v732_v34, %v734_v56  ;;  %v2872_v11 = vld [vmem:[%s4251_s1 + $0x40] sm:$0xff]  ;;  %v847_v34 = vrot.slane %v484_v51, 2 }
  0x4d   : > { %4283 = vst [vmem:[#allocation5_spill] sm:$0xff] %v3497_v35  ;;  %v3549_v14 = vpack.c.bf16 %v735_v5, %v733_v46  ;;  %v3553_v25 = vld [vmem:[#allocation2 + $0x168] sm:$0xff]  ;;  %v3559_v29 = vpack.c.bf16 %v3539_v63, %v3537_v62  ;;  %2005 = vmatpush.bf16.msra.mxu2 %v2919_v41  ;;  %v739_v46 = vrot.slane %v487_v45, 1  ;;  %2094 = vmatpush.bf16.msra.mxu3 %v2927_v42 }
  0x4e   : > { %1216 = vmatmul.bf16.gmra.mxu2 %v3477_v15  ;;  %469 = vst [vmem:[#allocation2 + $0x121] sm:$0xff] %v397_v36  ;;  %v3555_v27 = vld [vmem:[#allocation2 + $0x170] sm:$0xff]  ;;  %v736_v36 = vrot.slane %v3414_v22, 1  ;;  %1670 = vmatpush.bf16.msrb.mxu0 %v2872_v11  ;;  %v848_v38 = vsel %vm838_vm1, %v845_v20, %v847_v34  ;;  %v849_v11 = vrot.slane %v3414_v22, 2  ;;  %v742_v22 = vrot.slane %v3482_v19, 1 }
  0x4f   : > { %470 = vst [vmem:[#allocation2 + $0x129] sm:$0xff] %v398_v37  ;;  %v3561_v30 = vld [vmem:[#allocation2 + $0x60] sm:$0xff]  ;;  %v3570_v24 = vpack.c.bf16 %v3555_v27, %v3553_v25  ;;  %v846_v37 = vsel %vm838_vm1, %v844_v17, %v845_v20  ;;  %1752 = vmatpush.bf16.msra.mxu1 %v2887_v43  ;;  %v740_v48 = vsel %vm725_vm0, %v737_v23, %v739_v46  ;;  %v850_v17 = vrot.slane %v3417_v28, 2 }
  0x50   : > { %1236 = vmatmul.bf16.gmra.mxu3 %v3488_v26  ;;  %477 = vst [vmem:[#allocation2 + $0x181] sm:$0xff] %v405_v47  ;;  %v3579_v40 = vpack.c.bf16 %v848_v38, %v846_v37  ;;  %v738_v44 = vsel %vm725_vm0, %v736_v36, %v737_v23  ;;  %v3596_v47 = vld [vmem:[#allocation2 + $0x10] sm:$0x3]  ;;  %v852_v37 = vrot.slane %v487_v45, 2  ;;  %v741_v38 = vrot.slane %v3480_v18, 1 }
  0x51   : > { %478 = vst [vmem:[#allocation2 + $0x189] sm:$0xff] %v406_v50  ;;  %v3563_v31 = vld [vmem:[#allocation2 + $0x68] sm:$0xff]  ;;  %v3603_v8 = vpack.c.bf16 %v740_v48, %v738_v44  ;;  %v729_v5 = vrot.slane %v3596_v47, 1  ;;  %v851_v41 = vsel %vm838_vm1, %v849_v11, %v850_v17  ;;  %v854_v11 = vrot.slane %v3480_v18, 2  ;;  %v2918_v18 = vld [vmem:[%s4251_s1 + $0x1b0] sm:$0xff] }
  0x52   : > { %1181 = vmatmul.bf16.gmra.mxu0 %v3497_v35  ;;  %4284 = vst [vmem:[#allocation6_spill] sm:$0xff] %v3544_v6  ;;  %v3577_v39 = vpack.c.bf16 %v3563_v31, %v3561_v30  ;;  %v3599_v49 = vld [vmem:[#allocation2 + $0xc0] sm:$0xff]  ;;  %v853_v42 = vsel %vm838_vm1, %v850_v17, %v852_v37  ;;  %v743_v45 = vsel %vm725_vm0, %v741_v38, %v742_v22  ;;  %v855_v17 = vrot.slane %v3482_v19, 2  ;;  %v2926_v19 = vld [vmem:[%s4251_s1 + $0x1f0] sm:$0xff] }
  0x53   : > { %2183 = vmatpush.bf16.msra.mxu0 %v2935_v4  ;;  %v3601_v50 = vld [vmem:[#allocation2 + $0xc8] sm:$0xff]  ;;  %v730_v1 = vsel %vm725_vm0, %v726_v58, %v729_v5  ;;  %v3636_v44 = vpack.c.bf16 %v853_v42, %v851_v41  ;;  %v490_v4 = vld [vmem:[#allocation2 + $0x58] sm:$0x3]  ;;  %v3155_v42 = vmov 0.0|0.0   ;;  %2006 = vmatpush.bf16.msra.mxu2 %v2918_v18  ;;  %v865_v18 = vrot.slane %v3381_v61, 2 }
  0x54   : > { %4285 = vst [vmem:[#allocation7_spill] sm:$0xff] %v3577_v39  ;;  %v3615_v20 = vpack.c.bf16 %v3601_v50, %v3599_v49  ;;  %v952_v43 = vpack.c.bf16 %v730_v1, %v726_v58  ;;  %v744_v46 = vrot.slane %v490_v4, 1  ;;  %v857_v37 = vrot.slane %v490_v4, 2  ;;  %2095 = vmatpush.bf16.msra.mxu3 %v2926_v19  ;;  %v496_v19 = vld [vmem:[#allocation2 + $0x88] sm:$0x3] }
  0x55   : > { %v3605_v51 = vld [vmem:[#allocation2 + $0x120] sm:$0xff]  ;;  %v746_v58 = vrot.slane %v3561_v30, 1  ;;  %v747_v1 = vrot.slane %v3563_v31, 1  ;;  %v856_v41 = vsel %vm838_vm1, %v854_v11, %v855_v17 }
  0x56   : > { %v3607_v56 = vld [vmem:[#allocation2 + $0x128] sm:$0xff]  ;;  %v745_v48 = vsel %vm725_vm0, %v742_v22, %v744_v46  ;;  %v858_v38 = vsel %vm838_vm1, %v855_v17, %v857_v37  ;;  %v493_v46 = vld [vmem:[#allocation2 + $0x70] sm:$0x3]  ;;  %v859_v37 = vrot.slane %v3561_v30, 2  ;;  %v752_v30 = vrot.slane %v3381_v61, 1 }
  0x57   : > { %v3617_v34 = vld [vmem:[#allocation2 + $0x180] sm:$0xff]  ;;  %v3623_v23 = vpack.c.bf16 %v3607_v56, %v3605_v51  ;;  %v3641_v5 = vpack.c.bf16 %v745_v48, %v743_v45  ;;  %v3651_v22 = vpack.c.bf16 %v858_v38, %v856_v41  ;;  %v748_v4 = vsel %vm725_vm0, %v746_v58, %v747_v1  ;;  %v2934_v45 = vld [vmem:[%s4251_s1 + $0x230] sm:$0xff]  ;;  %v2917_v61 = vld [vmem:[%s4251_s1 + $0x1a8] sm:$0xff] }
  0x58   : > { %v3619_v36 = vld [vmem:[#allocation2 + $0x188] sm:$0xff]  ;;  %v749_v48 = vrot.slane %v493_v46, 1  ;;  %2184 = vmatpush.bf16.msra.mxu0 %v2934_v45  ;;  %v860_v58 = vrot.slane %v3563_v31, 2  ;;  %v862_v41 = vrot.slane %v493_v46, 2  ;;  %v864_v31 = vrot.slane %v3377_v57, 2  ;;  %2007 = vmatpush.bf16.msra.mxu2 %v2917_v61 }
  0x59   : > { %v3631_v28 = vpack.c.bf16 %v3619_v36, %v3617_v34  ;;  %4287 = vst [vmem:[#allocation9_spill] sm:$0xff] %v3641_v5  ;;  %v867_v45 = vrot.slane %v496_v19, 2  ;;  %v761_v61 = vrot.slane %v3530_v52, 1 }
  0x5a   : > { %v750_v11 = vsel %vm725_vm0, %v747_v1, %v749_v48  ;;  %v861_v38 = vsel %vm838_vm1, %v859_v37, %v860_v58  ;;  %v751_v1 = vrot.slane %v3377_v57, 1  ;;  %v2925_v37 = vld [vmem:[%s4251_s1 + $0x1e8] sm:$0xff] }
  0x5b   : > { %4286 = vst [vmem:[#allocation8_spill] sm:$0xff] %v3631_v28  ;;  %v3668_v17 = vpack.c.bf16 %v750_v11, %v748_v4  ;;  %v754_v4 = vrot.slane %v496_v19, 1  ;;  %v868_v11 = vsel %vm838_vm1, %v865_v18, %v867_v45  ;;  %2096 = vmatpush.bf16.msra.mxu3 %v2925_v37  ;;  %v762_v37 = vrot.slane %v3532_v55, 1 }
  0x5c   : > { %1201 = vmatmul.bf16.gmra.mxu1 %v3544_v6 }
  0x5d   : > { %4288 = vst [vmem:[#allocation10_spill] sm:$0xff] %v3668_v17  ;;  %v755_v46 = vsel %vm725_vm0, %v752_v30, %v754_v4 }
  0x5e   : > { %1221 = vmatmul.bf16.gmra.mxu2 %v3559_v29 }
  0x60   : > { %1241 = vmatmul.bf16.gmra.mxu3 %v3570_v24 }
  0x62   : > { %1186 = vmatmul.bf16.gmra.mxu0 %v3577_v39 }
  0x6c   : > { %1206 = vmatmul.bf16.gmra.mxu1 %v3615_v20 }
  0x6e   : > { %1226 = vmatmul.bf16.gmra.mxu2 %v3623_v23 }
  0x70   : > { %1246 = vmatmul.bf16.gmra.mxu3 %v3631_v28 }
  0x72   : > { %1671 = vmatmul.bf16.vlgmr.msrb.gmra.mxu0 %v952_v43  ;;  %v2886_v43 = vld [vmem:[%s4251_s1 + $0xb0] sm:$0xff] }
  0x73   : > { %1753 = vmatpush.bf16.msra.mxu1 %v2886_v43  ;;  %v753_v43 = vsel %vm725_vm0, %v751_v1, %v752_v30  ;;  %v869_v1 = vrot.slane %v3455_v53, 2  ;;  %v870_v30 = vrot.slane %v3457_v54, 2 }
  0x74   : > { %v3688_v48 = vpack.c.bf16 %v755_v46, %v753_v43 }
  0x75   : > { %v871_v45 = vsel %vm838_vm1, %v869_v1, %v870_v30  ;;  %v763_v1 = vsel %vm725_vm0, %v761_v61, %v762_v37 }
  0x76   : > { %4290 = vst [vmem:[#allocation12_spill] sm:$0xff] %v3688_v48 }
  0x7c   : > { %1260 = vmatmul.bf16.vlgmr.msrb.gmra.mxu1 %v3549_v14 }
  0x7e   : > { %1349 = vmatmul.bf16.vlgmr.msrb.gmra.mxu2 %v3579_v40 }
  0x80   : > { %1582 = vmatmul.bf16.vlgmr.msrb.gmra.mxu3 %v3155_v42 }
  0x82   : > { %1676 = vmatmul.bf16.gmra.mxu0 %v3549_v14  ;;  %v863_v14 = vsel %vm838_vm1, %v860_v58, %v862_v41  ;;  %v2885_v58 = vld [vmem:[%s4251_s1 + $0xa8] sm:$0xff] }
  0x83   : > { %v3676_v42 = vpack.c.bf16 %v863_v14, %v861_v38  ;;  %v2933_v41 = vld [vmem:[%s4251_s1 + $0x228] sm:$0xff]  ;;  %1754 = vmatpush.bf16.msra.mxu1 %v2885_v58  ;;  %v756_v38 = vrot.slane %v3455_v53, 1  ;;  %v757_v14 = vrot.slane %v3457_v54, 1  ;;  %v874_v58 = vrot.slane %v3530_v52, 2 }
  0x84   : > { %2185 = vmatpush.bf16.msra.mxu0 %v2933_v41  ;;  %v875_v41 = vrot.slane %v3532_v55, 2 }
  0x85   : > { %4289 = vst [vmem:[#allocation11_spill] sm:$0xff] %v3676_v42  ;;  %v758_v19 = vsel %vm725_vm0, %v756_v38, %v757_v14 }
  0x8c   : > { %1265 = vmatmul.bf16.gmra.mxu1 %v3603_v8 }
  0x8e   : > { %1354 = vmatmul.bf16.gmra.mxu2 %v3636_v44 }
  0x90   : > { %1587 = vmatmul.bf16.gmra.mxu3 %v3285_v32  ;;  %v866_v32 = vsel %vm838_vm1, %v864_v31, %v865_v18  ;;  %v499_v31 = vld [vmem:[#allocation2 + $0xa0] sm:$0x3] }
  0x91   : > { %v3692_v57 = vpack.c.bf16 %v868_v11, %v866_v32  ;;  %v759_v43 = vrot.slane %v499_v31, 1  ;;  %v872_v4 = vrot.slane %v499_v31, 2 }
  0x92   : > { %1681 = vmatmul.bf16.gmra.mxu0 %v3603_v8 }
  0x93   : > { %4291 = vst [vmem:[#allocation13_spill] sm:$0xff] %v3692_v57  ;;  %v760_v46 = vsel %vm725_vm0, %v757_v14, %v759_v43  ;;  %v873_v32 = vsel %vm838_vm1, %v870_v30, %v872_v4  ;;  %v502_v14 = vld [vmem:[#allocation2 + $0xb8] sm:$0x3] }
  0x94   : > { %v3720_v53 = vpack.c.bf16 %v760_v46, %v758_v19  ;;  %v3722_v54 = vpack.c.bf16 %v873_v32, %v871_v45  ;;  %v764_v30 = vrot.slane %v502_v14, 1  ;;  %v877_v31 = vrot.slane %v502_v14, 2  ;;  %v2916_v46 = vld [vmem:[%s4251_s1 + $0x1a0] sm:$0xff] }
  0x95   : > { %v876_v19 = vsel %vm838_vm1, %v874_v58, %v875_v41  ;;  %v2924_v32 = vld [vmem:[%s4251_s1 + $0x1e0] sm:$0xff]  ;;  %2008 = vmatpush.bf16.msra.mxu2 %v2916_v46 }
  0x96   : > { %4292 = vst [vmem:[#allocation14_spill] sm:$0xff] %v3720_v53  ;;  %v765_v43 = vsel %vm725_vm0, %v762_v37, %v764_v30  ;;  %v878_v4 = vsel %vm838_vm1, %v875_v41, %v877_v31  ;;  %2097 = vmatpush.bf16.msra.mxu3 %v2924_v32  ;;  %v2884_v41 = vld [vmem:[%s4251_s1 + $0xa0] sm:$0xff]  ;;  %v767_v30 = vrot.slane %v3601_v50, 1  ;;  %v505_v32 = vld [vmem:[#allocation2 + $0xd0] sm:$0x3] }
  0x97   : > { %4293 = vst [vmem:[#allocation15_spill] sm:$0xff] %v3722_v54  ;;  %v3740_v52 = vpack.c.bf16 %v765_v43, %v763_v1  ;;  %v3742_v55 = vpack.c.bf16 %v878_v4, %v876_v19  ;;  %v2932_v14 = vld [vmem:[%s4251_s1 + $0x220] sm:$0xff]  ;;  %1755 = vmatpush.bf16.msra.mxu1 %v2884_v41  ;;  %v766_v1 = vrot.slane %v3599_v49, 1  ;;  %v879_v19 = vrot.slane %v3599_v49, 2 }
  0x98   : > { %2186 = vmatpush.bf16.msra.mxu0 %v2932_v14  ;;  %v880_v43 = vrot.slane %v3601_v50, 2  ;;  %v769_v14 = vrot.slane %v505_v32, 1 }
  0x99   : > { %4294 = vst [vmem:[#allocation16_spill] sm:$0xff] %v3740_v52  ;;  %v768_v41 = vsel %vm725_vm0, %v766_v1, %v767_v30 }
  0x9a   : > { %4295 = vst [vmem:[#allocation17_spill] sm:$0xff] %v3742_v55 }
  0x9c   : > { %1270 = vmatmul.bf16.gmra.mxu1 %v3641_v5 }
  0x9e   : > { %1359 = vmatmul.bf16.gmra.mxu2 %v3651_v22 }
  0xa0   : > { %1592 = vmatmul.bf16.gmra.mxu3 %v3422_v33 }
  0xa2   : > { %1686 = vmatmul.bf16.gmra.mxu0 %v3641_v5 }
  0xa8   : > { %v3712_v18 = vpop.f32.mrf.mxu0 }
  0xac   : > { %1275 = vmatmul.bf16.gmra.mxu1 %v3668_v17 }
  0xae   : > { %1364 = vmatmul.bf16.gmra.mxu2 %v3676_v42 }
  0xb0   : > { %1597 = vmatmul.bf16.gmra.mxu3 %v3497_v35  ;;  %v3726_v11 = vpop.f32.mrf.mxu0 }
  0xb2   : > { %1691 = vmatmul.bf16.gmra.mxu0 %v3668_v17 }
  0xb9   : > { %v3732_v38 = vpop.f32.mrf.mxu1 }
  0xbc   : > { %1280 = vmatmul.bf16.gmra.mxu1 %v3688_v48 }
  0xbe   : > { %1369 = vmatmul.bf16.gmra.mxu2 %v3692_v57  ;;  %v770_v57 = vsel %vm725_vm0, %v767_v30, %v769_v14  ;;  %v772_v30 = vrot.slane %v3393_v9, 1 }
  0xbf   : > { %v3744_v45 = vpop.f32.mrf.mxu0  ;;  %v3784_v50 = vpack.c.bf16 %v770_v57, %v768_v41 }
  0xc0   : > { %1602 = vmatmul.bf16.gmra.mxu3 %v3577_v39 }
  0xc1   : > { %v3753_v61 = vpop.f32.mrf.mxu2  ;;  %v3755_v37 = vpop.f32.mrf.mxu1  ;;  %4298 = vst [vmem:[#allocation20_spill] sm:$0xff] %v3784_v50 }
  0xc2   : > { %1696 = vmatmul.bf16.gmra.mxu0 %v3688_v48  ;;  %v881_v48 = vsel %vm838_vm1, %v879_v19, %v880_v43 }
  0xc3   : > { %v3758_v58 = vpop.f32.mrf.mxu3 }
  0xc4   : > { %4296 = vst [vmem:[#allocation18_spill] sm:$0xff] %v3758_v58  ;;  %v882_v58 = vrot.slane %v505_v32, 2 }
  0xc6   : > { %v883_v49 = vsel %vm838_vm1, %v880_v43, %v882_v58  ;;  %v771_v58 = vrot.slane %v3389_v3, 1  ;;  %v885_v43 = vrot.slane %v3393_v9, 2 }
  0xc7   : > { %v3768_v31 = vpop.f32.mrf.mxu0  ;;  %v3786_v17 = vpack.c.bf16 %v883_v49, %v881_v48  ;;  %v884_v48 = vrot.slane %v3389_v3, 2  ;;  %v508_v49 = vld [vmem:[#allocation2 + $0xe8] sm:$0x3] }
  0xc9   : > { %v3772_v4 = vpop.f32.mrf.mxu2  ;;  %v3774_v46 = vpop.f32.mrf.mxu1  ;;  %4299 = vst [vmem:[#allocation21_spill] sm:$0xff] %v3786_v17 }
  0xcb   : > { %v3776_v28 = vpop.f32.mrf.mxu3 }
  0xcc   : > { %4297 = vst [vmem:[#allocation19_spill] sm:$0xff] %v3776_v28  ;;  %1285 = vmatmul.bf16.gmra.mxu1 %v3720_v53 }
  0xce   : > { %1374 = vmatmul.bf16.gmra.mxu2 %v3722_v54  ;;  %v887_v54 = vrot.slane %v508_v49, 2 }
  0xcf   : > { %v3788_v39 = vpop.f32.mrf.mxu0 }
  0xd0   : > { %1607 = vmatmul.bf16.gmra.mxu3 %v3387_v2  ;;  %v886_v2 = vsel %vm838_vm1, %v884_v48, %v885_v43  ;;  %v888_v3 = vsel %vm838_vm1, %v885_v43, %v887_v54  ;;  %v776_v43 = vrot.slane %v3461_v59, 1 }
  0xd1   : > { %v3791_v1 = vpop.f32.mrf.mxu2  ;;  %v3793_v32 = vpop.f32.mrf.mxu1 }
  0xd2   : > { %4300 = vst [vmem:[#allocation22_spill] sm:$0xff] %v3791_v1  ;;  %1701 = vmatmul.bf16.gmra.mxu0 %v3720_v53  ;;  %v773_v53 = vsel %vm725_vm0, %v771_v58, %v772_v30  ;;  %v2915_v58 = vld [vmem:[%s4251_s1 + $0x198] sm:$0xff] }
  0xd3   : > { %v3796_v19 = vpop.f32.mrf.mxu3  ;;  %2009 = vmatpush.bf16.msra.mxu2 %v2915_v58  ;;  %v890_v58 = vrot.slane %v3463_v60, 2 }
  0xd4   : > { %4301 = vst [vmem:[#allocation23_spill] sm:$0xff] %v3796_v19  ;;  %v774_v19 = vrot.slane %v508_v49, 1  ;;  %v777_v49 = vrot.slane %v3463_v60, 1 }
  0xd6   : > { %v775_v42 = vsel %vm725_vm0, %v772_v30, %v774_v19  ;;  %v2923_v19 = vld [vmem:[%s4251_s1 + $0x1d8] sm:$0xff] }
  0xd7   : > { %v3800_v57 = vpop.f32.mrf.mxu0  ;;  %v3816_v9 = vpack.c.bf16 %v775_v42, %v773_v53  ;;  %2098 = vmatpush.bf16.msra.mxu3 %v2923_v19  ;;  %v2883_v42 = vld [vmem:[%s4251_s1 + $0x98] sm:$0xff] }
  0xd8   : > { %v2931_v53 = vld [vmem:[%s4251_s1 + $0x218] sm:$0xff]  ;;  %1756 = vmatpush.bf16.msra.mxu1 %v2883_v42 }
  0xd9   : > { %v3804_v41 = vpop.f32.mrf.mxu2  ;;  %v3806_v14 = vpop.f32.mrf.mxu1  ;;  %4304 = vst [vmem:[#allocation26_spill] sm:$0xff] %v3816_v9  ;;  %2187 = vmatpush.bf16.msra.mxu0 %v2931_v53  ;;  %v778_v53 = vsel %vm725_vm0, %v776_v43, %v777_v49 }
  0xda   : > { %4302 = vst [vmem:[#allocation24_spill] sm:$0xff] %v3804_v41  ;;  %v3818_v41 = vpack.c.bf16 %v888_v3, %v886_v2  ;;  %v889_v3 = vrot.slane %v3461_v59, 2 }
  0xdb   : > { %v3808_v28 = vpop.f32.mrf.mxu3 }
  0xdc   : > { %4303 = vst [vmem:[#allocation25_spill] sm:$0xff] %v3808_v28  ;;  %1290 = vmatmul.bf16.gmra.mxu1 %v3740_v52  ;;  %v511_v28 = vld [vmem:[#allocation2 + $0x100] sm:$0x3] }
  0xdd   : > { %4305 = vst [vmem:[#allocation27_spill] sm:$0xff] %v3818_v41  ;;  %v892_v42 = vrot.slane %v511_v28, 2 }
  0xde   : > { %1379 = vmatmul.bf16.gmra.mxu2 %v3742_v55  ;;  %v779_v55 = vrot.slane %v511_v28, 1 }
  0xdf   : > { %v3820_v5 = vpop.f32.mrf.mxu0  ;;  %v893_v59 = vsel %vm838_vm1, %v890_v58, %v892_v42 }
  0xe0   : > { %1612 = vmatmul.bf16.gmra.mxu3 %v3468_v0  ;;  %v891_v0 = vsel %vm838_vm1, %v889_v3, %v890_v58  ;;  %v782_v3 = vrot.slane %v3539_v63, 1 }
  0xe1   : > { %v3829_v30 = vpop.f32.mrf.mxu2  ;;  %v3831_v54 = vpop.f32.mrf.mxu1 }
  0xe2   : > { %4306 = vst [vmem:[#allocation28_spill] sm:$0xff] %v3829_v30  ;;  %1706 = vmatmul.bf16.gmra.mxu0 %v3740_v52  ;;  %v780_v30 = vsel %vm725_vm0, %v777_v49, %v779_v55  ;;  %v781_v49 = vrot.slane %v3537_v62, 1 }
  0xe3   : > { %v3834_v2 = vpop.f32.mrf.mxu3  ;;  %v3860_v60 = vpack.c.bf16 %v780_v30, %v778_v53  ;;  %v894_v30 = vrot.slane %v3537_v62, 2  ;;  %v514_v53 = vld [vmem:[#allocation2 + $0x118] sm:$0x3] }
  0xe4   : > { %4307 = vst [vmem:[#allocation29_spill] sm:$0xff] %v3834_v2 }
  0xe7   : > { %v3842_v48 = vpop.f32.mrf.mxu0 }
  0xe9   : > { %v3848_v19 = vpop.f32.mrf.mxu2  ;;  %v3850_v2 = vpop.f32.mrf.mxu1 }
  0xea   : > { %4308 = vst [vmem:[#allocation30_spill] sm:$0xff] %v3848_v19  ;;  %v3862_v19 = vpack.c.bf16 %v893_v59, %v891_v0  ;;  %v895_v0 = vrot.slane %v3539_v63, 2 }
  0xeb   : > { %v3852_v52 = vpop.f32.mrf.mxu3 }
  0xec   : > { %4309 = vst [vmem:[#allocation31_spill] sm:$0xff] %v3852_v52  ;;  %1295 = vmatmul.bf16.gmra.mxu1 %v3784_v50 }
  0xee   : > { %1384 = vmatmul.bf16.gmra.mxu2 %v3786_v17  ;;  %v784_v17 = vrot.slane %v514_v53, 1 }
  0xef   : > { %v1672_v1 = vpop.f32.mrf.mxu0 }
  0xf0   : > { %1617 = vmatmul.bf16.gmra.mxu3 %v3544_v6  ;;  %v897_v6 = vrot.slane %v514_v53, 2 }
  0xf1   : > { %v3865_v28 = vpop.f32.mrf.mxu2  ;;  %v3867_v52 = vpop.f32.mrf.mxu1 }
  0xf2   : > { %4310 = vst [vmem:[#allocation32_spill] sm:$0xff] %v3865_v28  ;;  %1711 = vmatmul.bf16.gmra.mxu0 %v3784_v50  ;;  %v896_v50 = vsel %vm838_vm1, %v894_v30, %v895_v0  ;;  %v785_v28 = vsel %vm725_vm0, %v782_v3, %v784_v17  ;;  %v898_v62 = vsel %vm838_vm1, %v895_v0, %v897_v6  ;;  %v2922_v17 = vld [vmem:[%s4251_s1 + $0x1d0] sm:$0xff] }
  0xf3   : > { %v3870_v43 = vpop.f32.mrf.mxu3  ;;  %2099 = vmatpush.bf16.msra.mxu3 %v2922_v17 }
  0xf4   : > { %4311 = vst [vmem:[#allocation33_spill] sm:$0xff] %v3870_v43  ;;  %v783_v43 = vsel %vm725_vm0, %v781_v49, %v782_v3  ;;  %v2914_v49 = vld [vmem:[%s4251_s1 + $0x190] sm:$0xff] }
  0xf5   : > { %v3886_v63 = vpack.c.bf16 %v785_v28, %v783_v43  ;;  %2010 = vmatpush.bf16.msra.mxu2 %v2914_v49  ;;  %v2930_v43 = vld [vmem:[%s4251_s1 + $0x210] sm:$0xff]  ;;  %v900_v49 = vrot.slane %v3607_v56, 2 }
  0xf6   : > { %2188 = vmatpush.bf16.msra.mxu0 %v2930_v43 }
  0xf7   : > { %v1674_v55 = vpop.f32.mrf.mxu0 }
  0xf9   : > { %v3876_v58 = vpop.f32.mrf.mxu2  ;;  %v1261_v42 = vpop.f32.mrf.mxu1 }
  0xfa   : > { %4312 = vst [vmem:[#allocation34_spill] sm:$0xff] %v3876_v58  ;;  %v3888_v58 = vpack.c.bf16 %v898_v62, %v896_v50  ;;  %v899_v62 = vrot.slane %v3605_v51, 2 }
  0xfb   : > { %v3878_v59 = vpop.f32.mrf.mxu3 }
  0xfc   : > { %4313 = vst [vmem:[#allocation35_spill] sm:$0xff] %v3878_v59  ;;  %1300 = vmatmul.bf16.gmra.mxu1 %v3816_v9  ;;  %v1262_v59 = vadd.f32 %v1261_v42, %v3712_v18  ;;  %v2882_v18 = vld [vmem:[%s4251_s1 + $0x90] sm:$0xff]  ;;  %v786_v42 = vrot.slane %v3605_v51, 1 }
  0xfd   : > { %1757 = vmatpush.bf16.msra.mxu1 %v2882_v18 }
  0xfe   : > { %1389 = vmatmul.bf16.gmra.mxu2 %v3818_v41 }
  0xff   : > { %v1677_v35 = vpop.f32.mrf.mxu0 }
 0x100   : > { %1622 = vmatmul.bf16.gmra.mxu3 %v3615_v20 }
 0x101   : > { %v1350_v6 = vpop.f32.mrf.mxu2  ;;  %v1263_v3 = vpop.f32.mrf.mxu1 }
 0x102   : > { %v1351_v30 = vadd.f32 %v1350_v6, %v1262_v59  ;;  %1716 = vmatmul.bf16.gmra.mxu0 %v3816_v9  ;;  %v787_v59 = vrot.slane %v3607_v56, 1  ;;  %v1264_v17 = vadd.f32 %v1263_v3, %v3726_v11  ;;  %v517_v9 = vld [vmem:[#allocation2 + $0x130] sm:$0x3] }
 0x103   : > { %v1583_v50 = vpop.f32.mrf.mxu3  ;;  %v789_v18 = vrot.slane %v517_v9, 1  ;;  %v902_v43 = vrot.slane %v517_v9, 2 }
 0x104   : > { %v1584_v28 = vadd.f32 %v1583_v50, %v1351_v30 }
 0x105   : > { %v790_v51 = vsel %vm725_vm0, %v787_v59, %v789_v18  ;;  %v903_v56 = vsel %vm838_vm1, %v900_v49, %v902_v43  ;;  %v791_v18 = vrot.slane %v3401_v13, 1  ;;  %v904_v43 = vrot.slane %v3401_v13, 2 }
 0x106   : > { %v3905_v0 = vadd.f32 %v1672_v1, %v1584_v28  ;;  %v788_v28 = vsel %vm725_vm0, %v786_v42, %v787_v59 }
 0x107   : > { %v1679_v53 = vpop.f32.mrf.mxu0  ;;  %v3918_v11 = vpack.c.bf16 %v790_v51, %v788_v28 }
 0x108   : > { %4314 = vst [vmem:[#allocation36_spill] sm:$0xff] %v3905_v0  ;;  %v901_v0 = vsel %vm838_vm1, %v899_v62, %v900_v49 }
 0x109   : > { %v1352_v6 = vpop.f32.mrf.mxu2  ;;  %v1266_v30 = vpop.f32.mrf.mxu1  ;;  %v3920_v3 = vpack.c.bf16 %v903_v56, %v901_v0  ;;  %v520_v56 = vld [vmem:[#allocation2 + $0x148] sm:$0x3] }
 0x10a   : > { %v1353_v50 = vadd.f32 %v1352_v6, %v1264_v17 }
 0x10b   : > { %v1585_v41 = vpop.f32.mrf.mxu3 }
 0x10c   : > { %v1586_v1 = vadd.f32 %v1585_v41, %v1353_v50  ;;  %1305 = vmatmul.bf16.gmra.mxu1 %v3860_v60  ;;  %v1267_v41 = vadd.f32 %v1266_v30, %v3744_v45  ;;  %v905_v45 = vrot.slane %v3404_v16, 2 }
 0x10e   : > { %1394 = vmatmul.bf16.gmra.mxu2 %v3862_v19  ;;  %v3922_v17 = vadd.f32 %v1674_v55, %v1586_v1  ;;  %v792_v55 = vrot.slane %v3404_v16, 1 }
 0x10f   : > { %v1682_v9 = vpop.f32.mrf.mxu0 }
 0x110   : > { %1627 = vmatmul.bf16.gmra.mxu3 %v3399_v12 }
 0x111   : > { %v1355_v42 = vpop.f32.mrf.mxu2  ;;  %v1268_v6 = vpop.f32.mrf.mxu1 }
 0x112   : > { %v1356_v62 = vadd.f32 %v1355_v42, %v1267_v41  ;;  %1721 = vmatmul.bf16.gmra.mxu0 %v3860_v60  ;;  %v1269_v30 = vadd.f32 %v1268_v6, %v3768_v31  ;;  %v794_v42 = vrot.slane %v520_v56, 1 }
 0x113   : > { %v1588_v59 = vpop.f32.mrf.mxu3 }
 0x114   : > { %v1589_v49 = vadd.f32 %v1588_v59, %v1356_v62  ;;  %v907_v62 = vrot.slane %v520_v56, 2  ;;  %v793_v59 = vsel %vm725_vm0, %v791_v18, %v792_v55  ;;  %v795_v13 = vsel %vm725_vm0, %v792_v55, %v794_v42  ;;  %v2913_v18 = vld [vmem:[%s4251_s1 + $0x188] sm:$0xff] }
 0x115   : > { %v3940_v31 = vpack.c.bf16 %v795_v13, %v793_v59  ;;  %v2921_v55 = vld [vmem:[%s4251_s1 + $0x1c8] sm:$0xff]  ;;  %2011 = vmatpush.bf16.msra.mxu2 %v2913_v18  ;;  %v797_v59 = vrot.slane %v3473_v10, 1  ;;  %v910_v13 = vrot.slane %v3473_v10, 2 }
 0x116   : > { %v3927_v50 = vadd.f32 %v1677_v35, %v1589_v49  ;;  %v906_v49 = vsel %vm838_vm1, %v904_v43, %v905_v45  ;;  %v908_v16 = vsel %vm838_vm1, %v905_v45, %v907_v62  ;;  %2100 = vmatpush.bf16.msra.mxu3 %v2921_v55  ;;  %v796_v62 = vrot.slane %v3471_v7, 1 }
 0x117   : > { %v1684_v0 = vpop.f32.mrf.mxu0  ;;  %v3942_v6 = vpack.c.bf16 %v908_v16, %v906_v49  ;;  %v909_v49 = vrot.slane %v3471_v7, 2 }
 0x119   : > { %v1357_v1 = vpop.f32.mrf.mxu2  ;;  %v1271_v28 = vpop.f32.mrf.mxu1 }
 0x11a   : > { %v1358_v51 = vadd.f32 %v1357_v1, %v1269_v30 }
 0x11b   : > { %v1590_v41 = vpop.f32.mrf.mxu3 }
 0x11c   : > { %v1591_v35 = vadd.f32 %v1590_v41, %v1358_v51  ;;  %1310 = vmatmul.bf16.gmra.mxu1 %v3886_v63  ;;  %v1272_v51 = vadd.f32 %v1271_v28, %v3788_v39  ;;  %v2881_v39 = vld [vmem:[%s4251_s1 + $0x88] sm:$0xff] }
 0x11d   : > { %v2929_v28 = vld [vmem:[%s4251_s1 + $0x208] sm:$0xff]  ;;  %1758 = vmatpush.bf16.msra.mxu1 %v2881_v39 }
 0x11e   : > { %1399 = vmatmul.bf16.gmra.mxu2 %v3888_v58  ;;  %v3944_v30 = vadd.f32 %v1679_v53, %v1591_v35  ;;  %2189 = vmatpush.bf16.msra.mxu0 %v2929_v28  ;;  %v911_v28 = vsel %vm838_vm1, %v909_v49, %v910_v13 }
 0x11f   : > { %v1687_v1 = vpop.f32.mrf.mxu0 }
 0x120   : > { %1632 = vmatmul.bf16.gmra.mxu3 %v3477_v15 }
 0x121   : > { %v1360_v43 = vpop.f32.mrf.mxu2  ;;  %v1273_v45 = vpop.f32.mrf.mxu1 }
 0x122   : > { %v1361_v56 = vadd.f32 %v1360_v43, %v1272_v51  ;;  %1726 = vmatmul.bf16.gmra.mxu0 %v3886_v63  ;;  %v1274_v16 = vadd.f32 %v1273_v45, %v3800_v57  ;;  %v523_v43 = vld [vmem:[#allocation2 + $0x160] sm:$0x3] }
 0x123   : > { %v1593_v53 = vpop.f32.mrf.mxu3  ;;  %v912_v39 = vrot.slane %v523_v43, 2 }
 0x124   : > { %v1594_v41 = vadd.f32 %v1593_v53, %v1361_v56  ;;  %v799_v53 = vrot.slane %v523_v43, 1 }
 0x125   : > { %v913_v10 = vsel %vm838_vm1, %v910_v13, %v912_v39 }
 0x126   : > { %v3961_v42 = vadd.f32 %v1682_v9, %v1594_v41  ;;  %v798_v41 = vsel %vm725_vm0, %v796_v62, %v797_v59  ;;  %v800_v7 = vsel %vm725_vm0, %v797_v59, %v799_v53  ;;  %v3976_v45 = vpack.c.bf16 %v913_v10, %v911_v28  ;;  %v526_v10 = vld [vmem:[#allocation2 + $0x178] sm:$0x3] }
 0x127   : > { %v1689_v35 = vpop.f32.mrf.mxu0  ;;  %v3974_v57 = vpack.c.bf16 %v800_v7, %v798_v41  ;;  %v801_v53 = vrot.slane %v3553_v25, 1 }
 0x129   : > { %v1362_v51 = vpop.f32.mrf.mxu2  ;;  %v1276_v18 = vpop.f32.mrf.mxu1 }
 0x12a   : > { %v1363_v55 = vadd.f32 %v1362_v51, %v1274_v16 }
 0x12b   : > { %v1595_v56 = vpop.f32.mrf.mxu3 }
 0x12c   : > { %v1596_v9 = vadd.f32 %v1595_v56, %v1363_v55  ;;  %1315 = vmatmul.bf16.gmra.mxu1 %v3918_v11  ;;  %v1277_v55 = vadd.f32 %v1276_v18, %v3820_v5  ;;  %v915_v5 = vrot.slane %v3555_v27, 2 }
 0x12e   : > { %1404 = vmatmul.bf16.gmra.mxu2 %v3920_v3  ;;  %v3978_v16 = vadd.f32 %v1684_v0, %v1596_v9  ;;  %v802_v0 = vrot.slane %v3555_v27, 1  ;;  %v914_v9 = vrot.slane %v3553_v25, 2 }
 0x12f   : > { %v1692_v51 = vpop.f32.mrf.mxu0 }
 0x130   : > { %1637 = vmatmul.bf16.gmra.mxu3 %v3559_v29 }
 0x131   : > { %v1365_v62 = vpop.f32.mrf.mxu2  ;;  %v1278_v43 = vpop.f32.mrf.mxu1 }
 0x132   : > { %v1366_v49 = vadd.f32 %v1365_v62, %v1277_v55  ;;  %1731 = vmatmul.bf16.gmra.mxu0 %v3918_v11  ;;  %v1279_v18 = vadd.f32 %v1278_v43, %v3842_v48  ;;  %v804_v62 = vrot.slane %v526_v10, 1 }
 0x133   : > { %v1598_v59 = vpop.f32.mrf.mxu3 }
 0x134   : > { %v1599_v13 = vadd.f32 %v1598_v59, %v1366_v49  ;;  %v917_v49 = vrot.slane %v526_v10, 2  ;;  %v803_v59 = vsel %vm725_vm0, %v801_v53, %v802_v0  ;;  %v805_v25 = vsel %vm725_vm0, %v802_v0, %v804_v62  ;;  %v2912_v53 = vld [vmem:[%s4251_s1 + $0x180] sm:$0xff] }
 0x135   : > { %v3996_v48 = vpack.c.bf16 %v805_v25, %v803_v59  ;;  %v2920_v0 = vld [vmem:[%s4251_s1 + $0x1c0] sm:$0xff]  ;;  %2012 = vmatpush.bf16.msra.mxu2 %v2912_v53  ;;  %v1003_v59 = vrot.slane %v3619_v36, 1  ;;  %v1010_v25 = vrot.slane %v3619_v36, 2 }
 0x136   : > { %v3983_v56 = vadd.f32 %v1687_v1, %v1599_v13  ;;  %v916_v13 = vsel %vm838_vm1, %v914_v9, %v915_v5  ;;  %v918_v27 = vsel %vm838_vm1, %v915_v5, %v917_v49  ;;  %2101 = vmatpush.bf16.msra.mxu3 %v2920_v0  ;;  %v1002_v49 = vrot.slane %v3617_v34, 1 }
 0x137   : > { %v1694_v39 = vpop.f32.mrf.mxu0  ;;  %v3998_v43 = vpack.c.bf16 %v918_v27, %v916_v13  ;;  %v1009_v13 = vrot.slane %v3617_v34, 2 }
 0x139   : > { %v1367_v41 = vpop.f32.mrf.mxu2  ;;  %v1281_v28 = vpop.f32.mrf.mxu1 }
 0x13a   : > { %v1368_v7 = vadd.f32 %v1367_v41, %v1279_v18 }
 0x13b   : > { %v1600_v55 = vpop.f32.mrf.mxu3 }
 0x13c   : > { %v1601_v1 = vadd.f32 %v1600_v55, %v1368_v7  ;;  %1320 = vmatmul.bf16.gmra.mxu1 %v3940_v31  ;;  %v1282_v7 = vadd.f32 %v1281_v28, %v3732_v38  ;;  %v2880_v38 = vld [vmem:[%s4251_s1 + $0x80] sm:$0xff] }
 0x13d   : > { %v2928_v28 = vld [vmem:[%s4251_s1 + $0x200] sm:$0xff]  ;;  %1759 = vmatpush.bf16.msra.mxu1 %v2880_v38 }
 0x13e   : > { %1409 = vmatmul.bf16.gmra.mxu2 %v3942_v6  ;;  %v4000_v18 = vadd.f32 %v1689_v35, %v1601_v1  ;;  %2190 = vmatpush.bf16.msra.mxu0 %v2928_v28  ;;  %v1011_v28 = vsel %vm838_vm1, %v1009_v13, %v1010_v25 }
 0x13f   : > { %v1697_v41 = vpop.f32.mrf.mxu0 }
 0x140   : > { %1642 = vmatmul.bf16.gmra.mxu3 %v3623_v23 }
 0x141   : > { %v1370_v9 = vpop.f32.mrf.mxu2  ;;  %v1283_v5 = vpop.f32.mrf.mxu1 }
 0x142   : > { %v1371_v10 = vadd.f32 %v1370_v9, %v1282_v7  ;;  %1736 = vmatmul.bf16.gmra.mxu0 %v3940_v31  ;;  %v1284_v27 = vadd.f32 %v1283_v5, %v3755_v37  ;;  %v529_v9 = vld [vmem:[#allocation2 + $0x190] sm:$0x3] }
 0x143   : > { %v1603_v35 = vpop.f32.mrf.mxu3  ;;  %v1012_v38 = vrot.slane %v529_v9, 2 }
 0x144   : > { %v1604_v55 = vadd.f32 %v1603_v35, %v1371_v10  ;;  %v1005_v35 = vrot.slane %v529_v9, 1 }
 0x145   : > { %v1013_v36 = vsel %vm838_vm1, %v1010_v25, %v1012_v38 }
 0x146   : > { %v4017_v62 = vadd.f32 %v1692_v51, %v1604_v55  ;;  %v1004_v55 = vsel %vm725_vm0, %v1002_v49, %v1003_v59  ;;  %v1006_v34 = vsel %vm725_vm0, %v1003_v59, %v1005_v35  ;;  %v4032_v5 = vpack.c.bf16 %v1013_v36, %v1011_v28 }
 0x147   : > { %v1699_v1 = vpop.f32.mrf.mxu0  ;;  %v4030_v37 = vpack.c.bf16 %v1006_v34, %v1004_v55 }
 0x149   : > { %v1372_v7 = vpop.f32.mrf.mxu2  ;;  %v1286_v53 = vpop.f32.mrf.mxu1 }
 0x14a   : > { %v1373_v0 = vadd.f32 %v1372_v7, %v1284_v27 }
 0x14b   : > { %v1605_v10 = vpop.f32.mrf.mxu3 }
 0x14c   : > { %v1606_v51 = vadd.f32 %v1605_v10, %v1373_v0  ;;  %1325 = vmatmul.bf16.gmra.mxu1 %v3974_v57  ;;  %v1287_v0 = vadd.f32 %v1286_v53, %v3774_v46 }
 0x14e   : > { %1414 = vmatmul.bf16.gmra.mxu2 %v3976_v45  ;;  %v4034_v27 = vadd.f32 %v1694_v39, %v1606_v51 }
 0x14f   : > { %v1702_v7 = vpop.f32.mrf.mxu0 }
 0x150   : > { %1647 = vmatmul.bf16.gmra.mxu3 %v3412_v21 }
 0x151   : > { %v1375_v49 = vpop.f32.mrf.mxu2  ;;  %v1288_v9 = vpop.f32.mrf.mxu1 }
 0x152   : > { %v1376_v13 = vadd.f32 %v1375_v49, %v1287_v0  ;;  %1741 = vmatmul.bf16.gmra.mxu0 %v3974_v57  ;;  %v1289_v38 = vadd.f32 %v1288_v9, %v3793_v32 }
 0x153   : > { %v1608_v59 = vpop.f32.mrf.mxu3 }
 0x154   : > { %v1609_v25 = vadd.f32 %v1608_v59, %v1376_v13 }
 0x156   : > { %v4039_v10 = vadd.f32 %v1697_v41, %v1609_v25 }
 0x157   : > { %v1704_v35 = vpop.f32.mrf.mxu0 }
 0x159   : > { %v1377_v55 = vpop.f32.mrf.mxu2  ;;  %v1291_v39 = vpop.f32.mrf.mxu1 }
 0x15a   : > { %v1378_v51 = vadd.f32 %v1377_v55, %v1289_v38  ;;  %v1292_v36 = vadd.f32 %v1291_v39, %v3806_v14 }
 0x15b   : > { %v1610_v28 = vpop.f32.mrf.mxu3 }
 0x15c   : > { %v1611_v34 = vadd.f32 %v1610_v28, %v1378_v51  ;;  %1330 = vmatmul.bf16.gmra.mxu1 %v3996_v48 }
 0x15e   : > { %1419 = vmatmul.bf16.gmra.mxu2 %v3998_v43  ;;  %v4044_v46 = vadd.f32 %v1699_v1, %v1611_v34 }
 0x15f   : > { %v1707_v53 = vpop.f32.mrf.mxu0 }
 0x160   : > { %1652 = vmatmul.bf16.gmra.mxu3 %v3488_v26 }
 0x161   : > { %v1380_v41 = vpop.f32.mrf.mxu2  ;;  %v1293_v0 = vpop.f32.mrf.mxu1 }
 0x162   : > { %v1381_v49 = vadd.f32 %v1380_v41, %v1292_v36  ;;  %1746 = vmatmul.bf16.gmra.mxu0 %v3996_v48  ;;  %v1294_v25 = vadd.f32 %v1293_v0, %v3831_v54  ;;  %v842_v36 = vrot.slane %v3596_v47, 2 }
 0x163   : > { %v1613_v32 = vpop.f32.mrf.mxu3 }
 0x164   : > { %v1614_v9 = vadd.f32 %v1613_v32, %v1381_v49 }
 0x166   : > { %v4049_v13 = vadd.f32 %v1702_v7, %v1614_v9  ;;  %v4058_v7 = vld [vmem:[#allocation2] sm:$0xff] }
 0x167   : > { %v1709_v59 = vpop.f32.mrf.mxu0  ;;  %v4061_v54 = vrot.slane %v4058_v7, 2 }
 0x169   : > { %v1382_v38 = vpop.f32.mrf.mxu2  ;;  %v1296_v1 = vpop.f32.mrf.mxu1  ;;  %v843_v9 = vsel %vm838_vm1, %v4061_v54, %v842_v36 }
 0x16a   : > { %v1383_v55 = vadd.f32 %v1382_v38, %v1294_v25  ;;  %v1297_v34 = vadd.f32 %v1296_v1, %v3850_v2  ;;  %v953_v1 = vpack.c.bf16 %v843_v9, %v4061_v54 }
 0x16b   : > { %v1615_v51 = vpop.f32.mrf.mxu3 }
 0x16c   : > { %v1616_v28 = vadd.f32 %v1615_v51, %v1383_v55  ;;  %1335 = vmatmul.bf16.gmra.mxu1 %v4030_v37 }
 0x16e   : > { %1424 = vmatmul.bf16.gmra.mxu2 %v4032_v5  ;;  %v4054_v14 = vadd.f32 %v1704_v35, %v1616_v28 }
 0x16f   : > { %v1712_v39 = vpop.f32.mrf.mxu0 }
 0x170   : > { %4315 = vst [vmem:[#allocation37_spill] sm:$0xff] %v4054_v14  ;;  %1657 = vmatmul.bf16.gmra.mxu3 %v3570_v24 }
 0x171   : > { %v1385_v41 = vpop.f32.mrf.mxu2  ;;  %v1298_v0 = vpop.f32.mrf.mxu1 }
 0x172   : > { %v1386_v49 = vadd.f32 %v1385_v41, %v1297_v34  ;;  %2191 = vmatmul.bf16.vlgmr.msra.gmra.mxu0 %v3636_v44  ;;  %v1299_v38 = vadd.f32 %v1298_v0, %v3867_v52 }
 0x173   : > { %v1618_v32 = vpop.f32.mrf.mxu3 }
 0x174   : > { %v1619_v35 = vadd.f32 %v1618_v32, %v1386_v49 }
 0x176   : > { %v4067_v2 = vadd.f32 %v1707_v53, %v1619_v35 }
 0x177   : > { %v1714_v25 = vpop.f32.mrf.mxu0 }
 0x179   : > { %v1387_v55 = vpop.f32.mrf.mxu2  ;;  %v1301_v51 = vpop.f32.mrf.mxu1 }
 0x17a   : > { %v1388_v47 = vadd.f32 %v1387_v55, %v1299_v38  ;;  %v1302_v36 = vadd.f32 %v1301_v51, %v3753_v61 }
 0x17b   : > { %v1620_v28 = vpop.f32.mrf.mxu3 }
 0x17c   : > { %v1621_v14 = vadd.f32 %v1620_v28, %v1388_v47  ;;  %1760 = vmatmul.bf16.vlgmr.msra.gmra.mxu1 %v953_v1  ;;  %v4317_v47 = vld [vmem:[#allocation22_spill] sm:$0xff] }
 0x17e   : > { %2013 = vmatmul.bf16.vlgmr.msra.gmra.mxu2 %v3422_v33  ;;  %v4072_v34 = vadd.f32 %v1709_v59, %v1621_v14 }
 0x17f   : > { %v1717_v41 = vpop.f32.mrf.mxu0 }
 0x180   : > { %2102 = vmatmul.bf16.vlgmr.msra.gmra.mxu3 %v3603_v8  ;;  %v4316_v8 = vld [vmem:[#allocation5_spill] sm:$0xff] }
 0x181   : > { %v1390_v53 = vpop.f32.mrf.mxu2  ;;  %v1303_v49 = vpop.f32.mrf.mxu1 }
 0x182   : > { %v1391_v52 = vadd.f32 %v1390_v53, %v1302_v36  ;;  %2196 = vmatmul.bf16.gmra.mxu0 %v3651_v22  ;;  %v1304_v38 = vadd.f32 %v1303_v49, %v3772_v4  ;;  %v4318_v36 = vld [vmem:[#allocation9_spill] sm:$0xff]  ;;  %v4319_v4 = vld [vmem:[#allocation11_spill] sm:$0xff] }
 0x183   : > { %v1623_v0 = vpop.f32.mrf.mxu3 }
 0x184   : > { %v1624_v32 = vadd.f32 %v1623_v0, %v1391_v52 }
 0x186   : > { %v4077_v35 = vadd.f32 %v1712_v39, %v1624_v32 }
 0x187   : > { %v1719_v9 = vpop.f32.mrf.mxu0 }
 0x189   : > { %v1392_v33 = vpop.f32.mrf.mxu2  ;;  %v1306_v59 = vpop.f32.mrf.mxu1 }
 0x18a   : > { %v1393_v14 = vadd.f32 %v1392_v33, %v1304_v38  ;;  %v1307_v28 = vadd.f32 %v1306_v59, %v4317_v47  ;;  %v4322_v59 = vld [vmem:[#allocation7_spill] sm:$0xff] }
 0x18b   : > { %v1625_v1 = vpop.f32.mrf.mxu3 }
 0x18c   : > { %v1626_v55 = vadd.f32 %v1625_v1, %v1393_v14  ;;  %1765 = vmatmul.bf16.gmra.mxu1 %v3579_v40  ;;  %v4321_v40 = vld [vmem:[#allocation24_spill] sm:$0xff] }
 0x18e   : > { %2018 = vmatmul.bf16.gmra.mxu2 %v4316_v8  ;;  %v4082_v61 = vadd.f32 %v1714_v25, %v1626_v55 }
 0x18f   : > { %v1722_v51 = vpop.f32.mrf.mxu0 }
 0x190   : > { %2107 = vmatmul.bf16.gmra.mxu3 %v4318_v36  ;;  %v4324_v36 = vld [vmem:[#allocation28_spill] sm:$0xff] }
 0x191   : > { %v1395_v39 = vpop.f32.mrf.mxu2  ;;  %v1308_v53 = vpop.f32.mrf.mxu1 }
 0x192   : > { %v1396_v52 = vadd.f32 %v1395_v39, %v1307_v28  ;;  %2201 = vmatmul.bf16.gmra.mxu0 %v4319_v4  ;;  %v1309_v33 = vadd.f32 %v1308_v53, %v4321_v40  ;;  %v4326_v53 = vld [vmem:[#allocation13_spill] sm:$0xff] }
 0x193   : > { %v1628_v49 = vpop.f32.mrf.mxu3 }
 0x194   : > { %v1629_v0 = vadd.f32 %v1628_v49, %v1396_v52  ;;  %v4325_v52 = vld [vmem:[#allocation10_spill] sm:$0xff] }
 0x196   : > { %v4087_v32 = vadd.f32 %v1717_v41, %v1629_v0 }
 0x197   : > { %v1724_v38 = vpop.f32.mrf.mxu0 }
 0x198   : > { %4320 = vst [vmem:[#allocation5_spill] sm:$0xff] %v4087_v32 }
 0x199   : > { %v1397_v14 = vpop.f32.mrf.mxu2  ;;  %v1311_v25 = vpop.f32.mrf.mxu1 }
 0x19a   : > { %v1398_v1 = vadd.f32 %v1397_v14, %v1309_v33  ;;  %v1312_v39 = vadd.f32 %v1311_v25, %v4324_v36  ;;  %v4329_v25 = vld [vmem:[#allocation3_spill] sm:$0xff] }
 0x19b   : > { %v1630_v55 = vpop.f32.mrf.mxu3 }
 0x19c   : > { %v1631_v8 = vadd.f32 %v1630_v55, %v1398_v1  ;;  %1770 = vmatmul.bf16.gmra.mxu1 %v3636_v44  ;;  %v4328_v44 = vld [vmem:[#allocation30_spill] sm:$0xff] }
 0x19e   : > { %2023 = vmatmul.bf16.gmra.mxu2 %v4322_v59  ;;  %v4092_v47 = vadd.f32 %v1719_v9, %v1631_v8 }
 0x19f   : > { %v1727_v28 = vpop.f32.mrf.mxu0 }
 0x1a0   : > { %4323 = vst [vmem:[#allocation22_spill] sm:$0xff] %v4092_v47  ;;  %2112 = vmatmul.bf16.gmra.mxu3 %v4325_v52  ;;  %v4331_v52 = vld [vmem:[#allocation32_spill] sm:$0xff] }
 0x1a1   : > { %v1400_v41 = vpop.f32.mrf.mxu2  ;;  %v1313_v49 = vpop.f32.mrf.mxu1 }
 0x1a2   : > { %v1401_v0 = vadd.f32 %v1400_v41, %v1312_v39  ;;  %2206 = vmatmul.bf16.gmra.mxu0 %v4326_v53  ;;  %v1314_v55 = vadd.f32 %v1313_v49, %v4328_v44  ;;  %v4333_v49 = vld [vmem:[#allocation15_spill] sm:$0xff] }
 0x1a3   : > { %v1633_v40 = vpop.f32.mrf.mxu3 }
 0x1a4   : > { %v1634_v33 = vadd.f32 %v1633_v40, %v1401_v0  ;;  %v4332_v0 = vld [vmem:[#allocation12_spill] sm:$0xff] }
 0x1a6   : > { %v4097_v14 = vadd.f32 %v1722_v51, %v1634_v33 }
 0x1a7   : > { %v1729_v1 = vpop.f32.mrf.mxu0 }
 0x1a8   : > { %4327 = vst [vmem:[#allocation9_spill] sm:$0xff] %v4097_v14 }
 0x1a9   : > { %v1402_v59 = vpop.f32.mrf.mxu2  ;;  %v1316_v9 = vpop.f32.mrf.mxu1 }
 0x1aa   : > { %v1403_v8 = vadd.f32 %v1402_v59, %v1314_v55  ;;  %v1317_v41 = vadd.f32 %v1316_v9, %v4331_v52  ;;  %v4336_v9 = vld [vmem:[#allocation4_spill] sm:$0xff] }
 0x1ab   : > { %v1635_v47 = vpop.f32.mrf.mxu3 }
 0x1ac   : > { %v1636_v32 = vadd.f32 %v1635_v47, %v1403_v8  ;;  %1775 = vmatmul.bf16.gmra.mxu1 %v3651_v22  ;;  %v4335_v22 = vld [vmem:[#allocation34_spill] sm:$0xff] }
 0x1ae   : > { %2028 = vmatmul.bf16.gmra.mxu2 %v4329_v25  ;;  %v4102_v36 = vadd.f32 %v1724_v38, %v1636_v32 }
 0x1af   : > { %v1732_v39 = vpop.f32.mrf.mxu0 }
 0x1b0   : > { %4330 = vst [vmem:[#allocation11_spill] sm:$0xff] %v4102_v36  ;;  %2117 = vmatmul.bf16.gmra.mxu3 %v4332_v0  ;;  %v4338_v0 = vld [vmem:[#allocation18_spill] sm:$0xff] }
 0x1b1   : > { %v1405_v51 = vpop.f32.mrf.mxu2  ;;  %v1318_v40 = vpop.f32.mrf.mxu1 }
 0x1b2   : > { %v1406_v33 = vadd.f32 %v1405_v51, %v1317_v41  ;;  %2211 = vmatmul.bf16.gmra.mxu0 %v4333_v49  ;;  %v1319_v8 = vadd.f32 %v1318_v40, %v4335_v22  ;;  %v4340_v40 = vld [vmem:[#allocation17_spill] sm:$0xff] }
 0x1b3   : > { %v1638_v44 = vpop.f32.mrf.mxu3 }
 0x1b4   : > { %v1639_v55 = vadd.f32 %v1638_v44, %v1406_v33  ;;  %v4339_v33 = vld [vmem:[#allocation14_spill] sm:$0xff] }
 0x1b6   : > { %v4107_v59 = vadd.f32 %v1727_v28, %v1639_v55 }
 0x1b7   : > { %v1734_v47 = vpop.f32.mrf.mxu0 }
 0x1b8   : > { %4334 = vst [vmem:[#allocation24_spill] sm:$0xff] %v4107_v59 }
 0x1b9   : > { %v1407_v25 = vpop.f32.mrf.mxu2  ;;  %v1321_v32 = vpop.f32.mrf.mxu1 }
 0x1ba   : > { %v1408_v38 = vadd.f32 %v1407_v25, %v1319_v8  ;;  %v1322_v51 = vadd.f32 %v1321_v32, %v4338_v0  ;;  %v4343_v32 = vld [vmem:[#allocation6_spill] sm:$0xff] }
 0x1bb   : > { %v1640_v36 = vpop.f32.mrf.mxu3 }
 0x1bc   : > { %v1641_v14 = vadd.f32 %v1640_v36, %v1408_v38  ;;  %1780 = vmatmul.bf16.gmra.mxu1 %v4319_v4  ;;  %v4342_v4 = vld [vmem:[#allocation19_spill] sm:$0xff] }
 0x1be   : > { %2033 = vmatmul.bf16.gmra.mxu2 %v4336_v9  ;;  %v4112_v52 = vadd.f32 %v1729_v1, %v1641_v14 }
 0x1bf   : > { %v1737_v41 = vpop.f32.mrf.mxu0 }
 0x1c0   : > { %4337 = vst [vmem:[#allocation7_spill] sm:$0xff] %v4112_v52  ;;  %2122 = vmatmul.bf16.gmra.mxu3 %v4339_v33  ;;  %v4345_v33 = vld [vmem:[#allocation23_spill] sm:$0xff] }
 0x1c1   : > { %v1410_v28 = vpop.f32.mrf.mxu2  ;;  %v1323_v44 = vpop.f32.mrf.mxu1 }
 0x1c2   : > { %v1411_v55 = vadd.f32 %v1410_v28, %v1322_v51  ;;  %2216 = vmatmul.bf16.gmra.mxu0 %v4340_v40  ;;  %v1324_v38 = vadd.f32 %v1323_v44, %v4342_v4  ;;  %v4347_v44 = vld [vmem:[#allocation21_spill] sm:$0xff] }
 0x1c3   : > { %v1643_v22 = vpop.f32.mrf.mxu3 }
 0x1c4   : > { %v1644_v8 = vadd.f32 %v1643_v22, %v1411_v55  ;;  %v4346_v55 = vld [vmem:[#allocation16_spill] sm:$0xff] }
 0x1c6   : > { %v4117_v25 = vadd.f32 %v1732_v39, %v1644_v8 }
 0x1c7   : > { %v1739_v36 = vpop.f32.mrf.mxu0 }
 0x1c8   : > { %4341 = vst [vmem:[#allocation28_spill] sm:$0xff] %v4117_v25 }
 0x1c9   : > { %v1412_v9 = vpop.f32.mrf.mxu2  ;;  %v1326_v14 = vpop.f32.mrf.mxu1 }
 0x1ca   : > { %v1413_v1 = vadd.f32 %v1412_v9, %v1324_v38  ;;  %v1327_v28 = vadd.f32 %v1326_v14, %v4345_v33 }
 0x1cb   : > { %v1645_v52 = vpop.f32.mrf.mxu3 }
 0x1cc   : > { %v1646_v59 = vadd.f32 %v1645_v52, %v1413_v1  ;;  %1785 = vmatmul.bf16.gmra.mxu1 %v4326_v53  ;;  %v4348_v53 = vld [vmem:[#allocation25_spill] sm:$0xff] }
 0x1ce   : > { %2038 = vmatmul.bf16.gmra.mxu2 %v4343_v32  ;;  %v4122_v0 = vadd.f32 %v1734_v47, %v1646_v59 }
 0x1cf   : > { %v1742_v51 = vpop.f32.mrf.mxu0 }
 0x1d0   : > { %4344 = vst [vmem:[#allocation10_spill] sm:$0xff] %v4122_v0  ;;  %2127 = vmatmul.bf16.gmra.mxu3 %v4346_v55 }
 0x1d1   : > { %v1415_v39 = vpop.f32.mrf.mxu2  ;;  %v1328_v22 = vpop.f32.mrf.mxu1 }
 0x1d2   : > { %v1416_v8 = vadd.f32 %v1415_v39, %v1327_v28  ;;  %2221 = vmatmul.bf16.gmra.mxu0 %v4347_v44  ;;  %v1329_v1 = vadd.f32 %v1328_v22, %v4348_v53  ;;  %v4350_v28 = vld [vmem:[#allocation29_spill] sm:$0xff]  ;;  %v4351_v39 = vld [vmem:[#allocation20_spill] sm:$0xff]  ;;  %v4352_v22 = vld [vmem:[#allocation27_spill] sm:$0xff] }
 0x1d3   : > { %v1648_v4 = vpop.f32.mrf.mxu3 }
 0x1d4   : > { %v1649_v38 = vadd.f32 %v1648_v4, %v1416_v8 }
 0x1d6   : > { %v4127_v9 = vadd.f32 %v1737_v41, %v1649_v38 }
 0x1d7   : > { %v1744_v52 = vpop.f32.mrf.mxu0 }
 0x1d9   : > { %v1417_v32 = vpop.f32.mrf.mxu2  ;;  %v1331_v59 = vpop.f32.mrf.mxu1 }
 0x1da   : > { %v1418_v47 = vadd.f32 %v1417_v32, %v1329_v1  ;;  %v1332_v55 = vadd.f32 %v1331_v59, %v4350_v28 }
 0x1db   : > { %v1650_v0 = vpop.f32.mrf.mxu3 }
 0x1dc   : > { %v1651_v25 = vadd.f32 %v1650_v0, %v1418_v47  ;;  %1790 = vmatmul.bf16.gmra.mxu1 %v4333_v49  ;;  %v4353_v49 = vld [vmem:[#allocation31_spill] sm:$0xff] }
 0x1de   : > { %2043 = vmatmul.bf16.gmra.mxu2 %v3615_v20  ;;  %v4132_v14 = vadd.f32 %v1739_v36, %v1651_v25 }
 0x1df   : > { %v1747_v33 = vpop.f32.mrf.mxu0 }
 0x1e0   : > { %4349 = vst [vmem:[#allocation13_spill] sm:$0xff] %v4132_v14  ;;  %2132 = vmatmul.bf16.gmra.mxu3 %v4351_v39 }
 0x1e1   : > { %v1420_v41 = vpop.f32.mrf.mxu2  ;;  %v1333_v8 = vpop.f32.mrf.mxu1 }
 0x1e2   : > { %v1421_v4 = vadd.f32 %v1420_v41, %v1332_v55  ;;  %2226 = vmatmul.bf16.gmra.mxu0 %v4352_v22  ;;  %v1334_v32 = vadd.f32 %v1333_v8, %v4353_v49  ;;  %v4354_v55 = vld [vmem:[#allocation33_spill] sm:$0xff]  ;;  %v4355_v41 = vld [vmem:[#allocation26_spill] sm:$0xff] }
 0x1e3   : > { %v1653_v38 = vpop.f32.mrf.mxu3 }
 0x1e4   : > { %v1654_v53 = vadd.f32 %v1653_v38, %v1421_v4 }
 0x1e6   : > { %v4137_v1 = vadd.f32 %v1742_v51, %v1654_v53 }
 0x1e7   : > { %v1749_v0 = vpop.f32.mrf.mxu0 }
 0x1e9   : > { %v1422_v20 = vpop.f32.mrf.mxu2  ;;  %v1336_v25 = vpop.f32.mrf.mxu1 }
 0x1ea   : > { %v1423_v36 = vadd.f32 %v1422_v20, %v1334_v32  ;;  %v1337_v39 = vadd.f32 %v1336_v25, %v4354_v55 }
 0x1eb   : > { %v1655_v47 = vpop.f32.mrf.mxu3 }
 0x1ec   : > { %v1656_v14 = vadd.f32 %v1655_v47, %v1423_v36  ;;  %1795 = vmatmul.bf16.gmra.mxu1 %v4340_v40  ;;  %v4356_v40 = vld [vmem:[#allocation35_spill] sm:$0xff] }
 0x1ee   : > { %2048 = vmatmul.bf16.gmra.mxu2 %v3399_v12  ;;  %v4142_v59 = vadd.f32 %v1744_v52, %v1656_v14 }
 0x1ef   : > { %v2192_v28 = vpop.f32.mrf.mxu0 }
 0x1f0   : > { %2137 = vmatmul.bf16.gmra.mxu3 %v4355_v41 }
 0x1f1   : > { %v1425_v51 = vpop.f32.mrf.mxu2  ;;  %v1338_v4 = vpop.f32.mrf.mxu1 }
 0x1f2   : > { %v1426_v38 = vadd.f32 %v1425_v51, %v1337_v39  ;;  %2231 = vmatmul.bf16.gmra.mxu0 %v3862_v19  ;;  %v1339_v20 = vadd.f32 %v1338_v4, %v4356_v40 }
 0x1f3   : > { %v1658_v8 = vpop.f32.mrf.mxu3 }
 0x1f4   : > { %v1659_v53 = vadd.f32 %v1658_v8, %v1426_v38 }
 0x1f6   : > { %v4147_v49 = vadd.f32 %v1747_v33, %v1659_v53 }
 0x1f7   : > { %v2194_v32 = vpop.f32.mrf.mxu0 }
 0x1f9   : > { %v1427_v12 = vpop.f32.mrf.mxu2  ;;  %v1761_v52 = vpop.f32.mrf.mxu1 }
 0x1fa   : > { %v1428_v14 = vadd.f32 %v1427_v12, %v1339_v20 }
 0x1fb   : > { %v1660_v36 = vpop.f32.mrf.mxu3 }
 0x1fc   : > { %v1661_v47 = vadd.f32 %v1660_v36, %v1428_v14  ;;  %1800 = vmatmul.bf16.gmra.mxu1 %v4347_v44  ;;  %v4357_v44 = vld [vmem:[#allocation36_spill] sm:$0xff] }
 0x1fd   : > { %v1762_v20 = vadd.f32 %v1761_v52, %v4357_v44 }
 0x1fe   : > { %2053 = vmatmul.bf16.gmra.mxu2 %v3477_v15  ;;  %v4152_v25 = vadd.f32 %v1749_v0, %v1661_v47 }
 0x1ff   : > { %v2197_v55 = vpop.f32.mrf.mxu0 }
 0x200   : > { %2142 = vmatmul.bf16.gmra.mxu3 %v3860_v60 }
 0x201   : > { %v2014_v39 = vpop.f32.mrf.mxu2  ;;  %v1763_v33 = vpop.f32.mrf.mxu1 }
 0x202   : > { %2236 = vmatmul.bf16.gmra.mxu0 %v3888_v58  ;;  %v1764_v60 = vadd.f32 %v1763_v33, %v3922_v17 }
 0x203   : > { %v2103_v41 = vpop.f32.mrf.mxu3 }
 0x204   : > { %v2104_v51 = vadd.f32 %v2103_v41, %v2014_v39 }
 0x206   : > { %v2193_v53 = vadd.f32 %v2192_v28, %v2104_v51 }
 0x207   : > { %v2199_v4 = vpop.f32.mrf.mxu0 }
 0x208   : > { %v2272_v0 = vadd.f32 %v2193_v53, %v1762_v20 }
 0x209   : > { %v2016_v38 = vpop.f32.mrf.mxu2  ;;  %v1766_v8 = vpop.f32.mrf.mxu1 }
 0x20b   : > { %v2105_v40 = vpop.f32.mrf.mxu3 }
 0x20c   : > { %v2106_v15 = vadd.f32 %v2105_v40, %v2016_v38  ;;  %1805 = vmatmul.bf16.gmra.mxu1 %v4352_v22  ;;  %v2405_v22 = vmul.f32 %v2272_v0, %v2272_v0 }
 0x20e   : > { %v2195_v12 = vadd.f32 %v2194_v32, %v2106_v15  ;;  %2058 = vmatmul.bf16.gmra.mxu2 %v3559_v29 }
 0x20f   : > { %v2202_v14 = vpop.f32.mrf.mxu0 }
 0x210   : > { %v2273_v36 = vadd.f32 %v2195_v12, %v1764_v60  ;;  %2147 = vmatmul.bf16.gmra.mxu3 %v3886_v63  ;;  %v1767_v63 = vadd.f32 %v1766_v8, %v3927_v50 }
 0x211   : > { %v2019_v28 = vpop.f32.mrf.mxu2  ;;  %v1768_v52 = vpop.f32.mrf.mxu1 }
 0x212   : > { %v3003_v47 = vpack.c.bf16 %v2273_v36, %v2272_v0  ;;  %v2368_v39 = vadd.f32 %v2273_v36, %v2272_v0  ;;  %v2406_v17 = vmul.f32 %v2273_v36, %v2273_v36  ;;  %2241 = vmatmul.bf16.gmra.mxu0 %v3920_v3  ;;  %v1769_v12 = vadd.f32 %v1768_v52, %v3944_v30 }
 0x213   : > { %v2108_v29 = vpop.f32.mrf.mxu3 }
 0x214   : > { %3004 = vst [vmem:[%s4166_s29] sm:$0xff] %v3003_v47   ;;  %v2437_v32 = vadd.f32 %v2406_v17, %v2405_v22  ;;  %v2109_v33 = vadd.f32 %v2108_v29, %v2019_v28 }
 0x216   : > { %v2198_v41 = vadd.f32 %v2197_v55, %v2109_v33 }
 0x217   : > { %v2204_v51 = vpop.f32.mrf.mxu0 }
 0x218   : > { %v2274_v38 = vadd.f32 %v2198_v41, %v1767_v63 }
 0x219   : > { %v2021_v53 = vpop.f32.mrf.mxu2  ;;  %v1771_v40 = vpop.f32.mrf.mxu1 }
 0x21a   : > { %v2369_v44 = vadd.f32 %v2368_v39, %v2274_v38  ;;  %v2407_v20 = vmul.f32 %v2274_v38, %v2274_v38  ;;  %v1772_v30 = vadd.f32 %v1771_v40, %v3961_v42 }
 0x21b   : > { %v2110_v15 = vpop.f32.mrf.mxu3 }
 0x21c   : > { %v2438_v60 = vadd.f32 %v2437_v32, %v2407_v20  ;;  %v2111_v0 = vadd.f32 %v2110_v15, %v2021_v53  ;;  %1810 = vmatmul.bf16.gmra.mxu1 %v3862_v19 }
 0x21e   : > { %v2200_v36 = vadd.f32 %v2199_v4, %v2111_v0  ;;  %2063 = vmatmul.bf16.gmra.mxu2 %v3623_v23 }
 0x21f   : > { %v2207_v28 = vpop.f32.mrf.mxu0 }
 0x220   : > { %v2275_v50 = vadd.f32 %v2200_v36, %v1769_v12  ;;  %2152 = vmatmul.bf16.gmra.mxu3 %v3918_v11 }
 0x221   : > { %v2024_v55 = vpop.f32.mrf.mxu2  ;;  %v1773_v8 = vpop.f32.mrf.mxu1 }
 0x222   : > { %v3008_v22 = vpack.c.bf16 %v2275_v50, %v2274_v38  ;;  %v2370_v47 = vadd.f32 %v2369_v44, %v2275_v50  ;;  %v2408_v39 = vmul.f32 %v2275_v50, %v2275_v50  ;;  %2246 = vmatmul.bf16.gmra.mxu0 %v3942_v6  ;;  %v1774_v44 = vadd.f32 %v1773_v8, %v3978_v16 }
 0x223   : > { %v2113_v17 = vpop.f32.mrf.mxu3 }
 0x224   : > { %3095 = vst [vmem:[%s4166_s29 + $0x8] sm:$0xff] %v3008_v22   ;;  %v2439_v29 = vadd.f32 %v2438_v60, %v2408_v39  ;;  %v2114_v19 = vadd.f32 %v2113_v17, %v2024_v55 }
 0x226   : > { %v2203_v4 = vadd.f32 %v2202_v14, %v2114_v19 }
 0x227   : > { %v2209_v52 = vpop.f32.mrf.mxu0 }
 0x228   : > { %v2276_v23 = vadd.f32 %v2203_v4, %v1772_v30 }
 0x229   : > { %v2026_v32 = vpop.f32.mrf.mxu2  ;;  %v1776_v33 = vpop.f32.mrf.mxu1 }
 0x22a   : > { %v2371_v63 = vadd.f32 %v2370_v47, %v2276_v23  ;;  %v2409_v11 = vmul.f32 %v2276_v23, %v2276_v23  ;;  %v1777_v16 = vadd.f32 %v1776_v33, %v3983_v56 }
 0x22b   : > { %v2115_v41 = vpop.f32.mrf.mxu3 }
 0x22c   : > { %v2440_v53 = vadd.f32 %v2439_v29, %v2409_v11  ;;  %v2116_v38 = vadd.f32 %v2115_v41, %v2026_v32  ;;  %1815 = vmatmul.bf16.gmra.mxu1 %v3888_v58 }
 0x22e   : > { %v2205_v20 = vadd.f32 %v2204_v51, %v2116_v38  ;;  %2068 = vmatmul.bf16.gmra.mxu2 %v3412_v21 }
 0x22f   : > { %v2212_v15 = vpop.f32.mrf.mxu0 }
 0x230   : > { %v2277_v42 = vadd.f32 %v2205_v20, %v1774_v44  ;;  %2157 = vmatmul.bf16.gmra.mxu3 %v3940_v31 }
 0x231   : > { %v2029_v14 = vpop.f32.mrf.mxu2  ;;  %v1778_v40 = vpop.f32.mrf.mxu1 }
 0x232   : > { %v3013_v60 = vpack.c.bf16 %v2277_v42, %v2276_v23  ;;  %v2372_v0 = vadd.f32 %v2371_v63, %v2277_v42  ;;  %v2410_v12 = vmul.f32 %v2277_v42, %v2277_v42  ;;  %2251 = vmatmul.bf16.gmra.mxu0 %v3976_v45  ;;  %v1779_v19 = vadd.f32 %v1778_v40, %v4000_v18 }
 0x233   : > { %v2118_v36 = vpop.f32.mrf.mxu3 }
 0x234   : > { %3096 = vst [vmem:[%s4166_s29 + $0x10] sm:$0xff] %v3013_v60   ;;  %v2441_v50 = vadd.f32 %v2440_v53, %v2410_v12  ;;  %v2119_v58 = vadd.f32 %v2118_v36, %v2029_v14 }
 0x236   : > { %v2208_v51 = vadd.f32 %v2207_v28, %v2119_v58 }
 0x237   : > { %v2214_v55 = vpop.f32.mrf.mxu0 }
 0x238   : > { %v2278_v21 = vadd.f32 %v2208_v51, %v1777_v16 }
 0x239   : > { %v2031_v8 = vpop.f32.mrf.mxu2  ;;  %v1781_v22 = vpop.f32.mrf.mxu1 }
 0x23a   : > { %v2373_v47 = vadd.f32 %v2372_v0, %v2278_v21  ;;  %v2411_v31 = vmul.f32 %v2278_v21, %v2278_v21  ;;  %v1782_v18 = vadd.f32 %v1781_v22, %v4017_v62 }
 0x23b   : > { %v2120_v39 = vpop.f32.mrf.mxu3 }
 0x23c   : > { %v2442_v17 = vadd.f32 %v2441_v50, %v2411_v31  ;;  %v2121_v29 = vadd.f32 %v2120_v39, %v2031_v8  ;;  %1820 = vmatmul.bf16.gmra.mxu1 %v3920_v3  ;;  %v532_v8 = vld [vmem:[#allocation2 + $0x1a8] sm:$0x3] }
 0x23d   : > { %v1854_v22 = vrot.slane %v532_v8, 2 }
 0x23e   : > { %v2210_v30 = vadd.f32 %v2209_v52, %v2121_v29  ;;  %2073 = vmatmul.bf16.gmra.mxu2 %v3488_v26 }
 0x23f   : > { %v2217_v4 = vpop.f32.mrf.mxu0 }
 0x240   : > { %v2279_v56 = vadd.f32 %v2210_v30, %v1779_v19  ;;  %2162 = vmatmul.bf16.gmra.mxu3 %v3974_v57  ;;  %v1855_v19 = vsel %vm838_vm1, %v4061_v54, %v1854_v22 }
 0x241   : > { %v2034_v28 = vpop.f32.mrf.mxu2  ;;  %v1783_v23 = vpop.f32.mrf.mxu1 }
 0x242   : > { %v3018_v32 = vpack.c.bf16 %v2279_v56, %v2278_v21  ;;  %v2374_v33 = vadd.f32 %v2373_v47, %v2279_v56  ;;  %v2412_v63 = vmul.f32 %v2279_v56, %v2279_v56  ;;  %2256 = vmatmul.bf16.gmra.mxu0 %v3998_v43  ;;  %v1784_v60 = vadd.f32 %v1783_v23, %v4034_v27 }
 0x243   : > { %v2123_v11 = vpop.f32.mrf.mxu3 }
 0x244   : > { %3097 = vst [vmem:[%s4166_s29 + $0x18] sm:$0xff] %v3018_v32   ;;  %v2443_v41 = vadd.f32 %v2442_v17, %v2412_v63  ;;  %v2124_v3 = vadd.f32 %v2123_v11, %v2034_v28  ;;  %v1860_v28 = vpack.c.bf16 %v1855_v19, %v4061_v54 }
 0x246   : > { %v2213_v52 = vadd.f32 %v2212_v15, %v2124_v3 }
 0x247   : > { %v2219_v53 = vpop.f32.mrf.mxu0 }
 0x248   : > { %v2280_v26 = vadd.f32 %v2213_v52, %v1782_v18 }
 0x249   : > { %v2036_v38 = vpop.f32.mrf.mxu2  ;;  %v1786_v44 = vpop.f32.mrf.mxu1 }
 0x24a   : > { %v2375_v20 = vadd.f32 %v2374_v33, %v2280_v26  ;;  %v2413_v57 = vmul.f32 %v2280_v26, %v2280_v26  ;;  %v1787_v27 = vadd.f32 %v1786_v44, %v4039_v10 }
 0x24b   : > { %v2125_v42 = vpop.f32.mrf.mxu3 }
 0x24c   : > { %v2444_v14 = vadd.f32 %v2443_v41, %v2413_v57  ;;  %v2126_v40 = vadd.f32 %v2125_v42, %v2036_v38  ;;  %1825 = vmatmul.bf16.gmra.mxu1 %v3942_v6 }
 0x24e   : > { %v2215_v0 = vadd.f32 %v2214_v55, %v2126_v40  ;;  %2078 = vmatmul.bf16.gmra.mxu2 %v3570_v24  ;;  %v1858_v40 = vpack.c.bf16 %v4058_v7, %v4058_v7 }
 0x24f   : > { %v2222_v12 = vpop.f32.mrf.mxu0 }
 0x250   : > { %v2281_v62 = vadd.f32 %v2215_v0, %v1784_v60  ;;  %2167 = vmatmul.bf16.gmra.mxu3 %v3996_v48 }
 0x251   : > { %v2039_v15 = vpop.f32.mrf.mxu2  ;;  %v1788_v36 = vpop.f32.mrf.mxu1 }
 0x252   : > { %v3023_v50 = vpack.c.bf16 %v2281_v62, %v2280_v26  ;;  %v2376_v58 = vadd.f32 %v2375_v20, %v2281_v62  ;;  %v2414_v16 = vmul.f32 %v2281_v62, %v2281_v62  ;;  %2261 = vmatmul.bf16.gmra.mxu0 %v4032_v5  ;;  %v1789_v56 = vadd.f32 %v1788_v36, %v4044_v46 }
 0x253   : > { %v2128_v51 = vpop.f32.mrf.mxu3  ;;  %v1844_v46 = vrot.slane %v4058_v7, 1 }
 0x254   : > { %3098 = vst [vmem:[%s4166_s29 + $0x20] sm:$0xff] %v3023_v50   ;;  %v2445_v21 = vadd.f32 %v2444_v14, %v2414_v16  ;;  %v2129_v6 = vadd.f32 %v2128_v51, %v2039_v15 }
 0x256   : > { %v2218_v55 = vadd.f32 %v2217_v4, %v2129_v6  ;;  %v4358_v4 = vld [vmem:[#allocation8_spill] sm:$0xff] }
 0x257   : > { %v2224_v24 = vpop.f32.mrf.mxu0 }
 0x258   : > { %v2282_v47 = vadd.f32 %v2218_v55, %v1787_v27 }
 0x259   : > { %v2041_v31 = vpop.f32.mrf.mxu2  ;;  %v1791_v48 = vpop.f32.mrf.mxu1 }
 0x25a   : > { %v2377_v39 = vadd.f32 %v2376_v58, %v2282_v47  ;;  %v2415_v17 = vmul.f32 %v2282_v47, %v2282_v47  ;;  %v1792_v26 = vadd.f32 %v1791_v48, %v4049_v13  ;;  %v4359_v13 = vld [vmem:[#allocation37_spill] sm:$0xff] }
 0x25b   : > { %v2130_v29 = vpop.f32.mrf.mxu3 }
 0x25c   : > { %v2446_v5 = vadd.f32 %v2445_v21, %v2415_v17  ;;  %v2131_v30 = vadd.f32 %v2130_v29, %v2041_v31  ;;  %1830 = vmatmul.bf16.gmra.mxu1 %v3976_v45 }
 0x25e   : > { %v2220_v10 = vadd.f32 %v2219_v53, %v2131_v30  ;;  %2083 = vmatmul.bf16.gmra.mxu2 %v4358_v4  ;;  %v1847_v53 = vrot.slane %v532_v8, 1 }
 0x25f   : > { %v2227_v23 = vpop.f32.mrf.mxu0 }
 0x260   : > { %v2283_v32 = vadd.f32 %v2220_v10, %v1789_v56  ;;  %2172 = vmatmul.bf16.gmra.mxu3 %v4030_v37  ;;  %v1848_v57 = vsel %vm725_vm0, %v1844_v46, %v1847_v53 }
 0x261   : > { %v2044_v33 = vpop.f32.mrf.mxu2  ;;  %v1793_v63 = vpop.f32.mrf.mxu1  ;;  %v1859_v15 = vpack.c.bf16 %v1848_v57, %v1844_v46 }
 0x262   : > { %v3028_v11 = vpack.c.bf16 %v2283_v32, %v2282_v47  ;;  %v2378_v41 = vadd.f32 %v2377_v39, %v2283_v32  ;;  %v2416_v3 = vmul.f32 %v2283_v32, %v2283_v32  ;;  %2266 = vmatmul.bf16.gmra.mxu0 %v1860_v28 }
 0x263   : > { %v2133_v18 = vpop.f32.mrf.mxu3 }
 0x264   : > { %3099 = vst [vmem:[%s4166_s29 + $0x28] sm:$0xff] %v3028_v11   ;;  %v2447_v45 = vadd.f32 %v2446_v5, %v2416_v3  ;;  %v2134_v52 = vadd.f32 %v2133_v18, %v2044_v33 }
 0x266   : > { %v2223_v54 = vadd.f32 %v2222_v12, %v2134_v52  ;;  %v1794_v12 = vadd.f32 %v1793_v63, %v4359_v13 }
 0x267   : > { %v2229_v38 = vpop.f32.mrf.mxu0 }
 0x268   : > { %v2284_v44 = vadd.f32 %v2223_v54, %v1792_v26 }
 0x269   : > { %v2046_v20 = vpop.f32.mrf.mxu2  ;;  %v1796_v37 = vpop.f32.mrf.mxu1 }
 0x26a   : > { %v2379_v42 = vadd.f32 %v2378_v41, %v2284_v44  ;;  %v2417_v14 = vmul.f32 %v2284_v44, %v2284_v44  ;;  %v1797_v22 = vadd.f32 %v1796_v37, %v4067_v2 }
 0x26b   : > { %v2135_v60 = vpop.f32.mrf.mxu3 }
 0x26c   : > { %v2448_v0 = vadd.f32 %v2447_v45, %v2417_v14  ;;  %v2136_v62 = vadd.f32 %v2135_v60, %v2046_v20  ;;  %1835 = vmatmul.bf16.gmra.mxu1 %v3998_v43 }
 0x26e   : > { %v2225_v36 = vadd.f32 %v2224_v24, %v2136_v62  ;;  %2088 = vmatmul.bf16.gmra.mxu2 %v1858_v40 }
 0x26f   : > { %v2232_v50 = vpop.f32.mrf.mxu0 }
 0x270   : > { %v2285_v58 = vadd.f32 %v2225_v36, %v1794_v12  ;;  %2177 = vmatmul.bf16.gmra.mxu3 %v1859_v15  ;;  %v4360_v12 = vld [vmem:[#allocation5_spill] sm:$0xff] }
 0x271   : > { %v2049_v16 = vpop.f32.mrf.mxu2  ;;  %v1798_v51 = vpop.f32.mrf.mxu1 }
 0x272   : > { %v3033_v21 = vpack.c.bf16 %v2285_v58, %v2284_v44  ;;  %v2380_v6 = vadd.f32 %v2379_v42, %v2285_v58  ;;  %v2418_v8 = vmul.f32 %v2285_v58, %v2285_v58  ;;  %v1799_v30 = vadd.f32 %v1798_v51, %v4072_v34 }
 0x273   : > { %v2138_v7 = vpop.f32.mrf.mxu3 }
 0x274   : > { %3100 = vst [vmem:[%s4166_s29 + $0x30] sm:$0xff] %v3033_v21   ;;  %v2449_v27 = vadd.f32 %v2448_v0, %v2418_v8  ;;  %v2139_v55 = vadd.f32 %v2138_v7, %v2049_v16 }
 0x276   : > { %v2228_v43 = vadd.f32 %v2227_v23, %v2139_v55  ;;  %v4361_v55 = vld [vmem:[#allocation22_spill] sm:$0xff] }
 0x277   : > { %v2234_v47 = vpop.f32.mrf.mxu0 }
 0x278   : > { %v2286_v31 = vadd.f32 %v2228_v43, %v1797_v22 }
 0x279   : > { %v2051_v48 = vpop.f32.mrf.mxu2  ;;  %v1801_v24 = vpop.f32.mrf.mxu1 }
 0x27a   : > { %v2381_v39 = vadd.f32 %v2380_v6, %v2286_v31  ;;  %v2419_v17 = vmul.f32 %v2286_v31, %v2286_v31  ;;  %v1802_v3 = vadd.f32 %v1801_v24, %v4077_v35 }
 0x27b   : > { %v2140_v29 = vpop.f32.mrf.mxu3 }
 0x27c   : > { %v2450_v19 = vadd.f32 %v2449_v27, %v2419_v17  ;;  %v2141_v5 = vadd.f32 %v2140_v29, %v2051_v48 }
 0x27e   : > { %v2230_v56 = vadd.f32 %v2229_v38, %v2141_v5 }
 0x27f   : > { %v2237_v10 = vpop.f32.mrf.mxu0 }
 0x280   : > { %v2287_v4 = vadd.f32 %v2230_v56, %v1799_v30  ;;  %v4362_v56 = vld [vmem:[#allocation9_spill] sm:$0xff] }
 0x281   : > { %v2054_v28 = vpop.f32.mrf.mxu2  ;;  %v1803_v32 = vpop.f32.mrf.mxu1 }
 0x282   : > { %v3038_v33 = vpack.c.bf16 %v2287_v4, %v2286_v31  ;;  %v2382_v2 = vadd.f32 %v2381_v39, %v2287_v4  ;;  %v2420_v23 = vmul.f32 %v2287_v4, %v2287_v4  ;;  %v1804_v20 = vadd.f32 %v1803_v32, %v4082_v61 }
 0x283   : > { %v2143_v63 = vpop.f32.mrf.mxu3 }
 0x284   : > { %3101 = vst [vmem:[%s4166_s29 + $0x38] sm:$0xff] %v3038_v33   ;;  %v2451_v11 = vadd.f32 %v2450_v19, %v2420_v23  ;;  %v2144_v41 = vadd.f32 %v2143_v63, %v2054_v28 }
 0x286   : > { %v2233_v18 = vadd.f32 %v2232_v50, %v2144_v41 }
 0x287   : > { %v2239_v45 = vpop.f32.mrf.mxu0 }
 0x288   : > { %v2288_v52 = vadd.f32 %v2233_v18, %v1802_v3  ;;  %v4363_v18 = vld [vmem:[#allocation11_spill] sm:$0xff] }
 0x289   : > { %v2056_v46 = vpop.f32.mrf.mxu2  ;;  %v1806_v53 = vpop.f32.mrf.mxu1 }
 0x28a   : > { %v2383_v34 = vadd.f32 %v2382_v2, %v2288_v52  ;;  %v2421_v26 = vmul.f32 %v2288_v52, %v2288_v52  ;;  %v1807_v36 = vadd.f32 %v1806_v53, %v4360_v12 }
 0x28b   : > { %v2145_v54 = vpop.f32.mrf.mxu3 }
 0x28c   : > { %v2452_v38 = vadd.f32 %v2451_v11, %v2421_v26  ;;  %v2146_v44 = vadd.f32 %v2145_v54, %v2056_v46 }
 0x28e   : > { %v2235_v37 = vadd.f32 %v2234_v47, %v2146_v44 }
 0x28f   : > { %v2242_v57 = vpop.f32.mrf.mxu0 }
 0x290   : > { %v2289_v42 = vadd.f32 %v2235_v37, %v1804_v20 }
 0x291   : > { %v2059_v14 = vpop.f32.mrf.mxu2  ;;  %v1808_v40 = vpop.f32.mrf.mxu1 }
 0x292   : > { %v3043_v60 = vpack.c.bf16 %v2289_v42, %v2288_v52  ;;  %v2384_v35 = vadd.f32 %v2383_v34, %v2289_v42  ;;  %v2422_v0 = vmul.f32 %v2289_v42, %v2289_v42  ;;  %v1809_v22 = vadd.f32 %v1808_v40, %v4361_v55 }
 0x293   : > { %v2148_v62 = vpop.f32.mrf.mxu3 }
 0x294   : > { %3102 = vst [vmem:[%s4166_s29 + $0x40] sm:$0xff] %v3043_v60   ;;  %v2453_v15 = vadd.f32 %v2452_v38, %v2422_v0  ;;  %v2149_v13 = vadd.f32 %v2148_v62, %v2059_v14 }
 0x296   : > { %v2238_v50 = vadd.f32 %v2237_v10, %v2149_v13 }
 0x297   : > { %v2244_v16 = vpop.f32.mrf.mxu0 }
 0x298   : > { %v2290_v58 = vadd.f32 %v2238_v50, %v1807_v36  ;;  %v4365_v50 = vld [vmem:[#allocation7_spill] sm:$0xff] }
 0x299   : > { %v2061_v51 = vpop.f32.mrf.mxu2  ;;  %v1811_v21 = vpop.f32.mrf.mxu1 }
 0x29a   : > { %v2385_v61 = vadd.f32 %v2384_v35, %v2290_v58  ;;  %v2423_v6 = vmul.f32 %v2290_v58, %v2290_v58  ;;  %v1812_v10 = vadd.f32 %v1811_v21, %v4362_v56 }
 0x29b   : > { %v2150_v8 = vpop.f32.mrf.mxu3 }
 0x29c   : > { %v2454_v7 = vadd.f32 %v2453_v15, %v2423_v6  ;;  %v2151_v27 = vadd.f32 %v2150_v8, %v2061_v51 }
 0x29e   : > { %v2240_v43 = vadd.f32 %v2239_v45, %v2151_v27 }
 0x29f   : > { %v2247_v29 = vpop.f32.mrf.mxu0 }
 0x2a0   : > { %v2291_v47 = vadd.f32 %v2240_v43, %v1809_v22 }
 0x2a1   : > { %v2064_v31 = vpop.f32.mrf.mxu2  ;;  %v1813_v48 = vpop.f32.mrf.mxu1 }
 0x2a2   : > { %v3048_v24 = vpack.c.bf16 %v2291_v47, %v2290_v58  ;;  %v2386_v39 = vadd.f32 %v2385_v61, %v2291_v47  ;;  %v2424_v17 = vmul.f32 %v2291_v47, %v2291_v47  ;;  %v1814_v45 = vadd.f32 %v1813_v48, %v4363_v18  ;;  %v4366_v47 = vld [vmem:[#allocation28_spill] sm:$0xff] }
 0x2a3   : > { %v2153_v19 = vpop.f32.mrf.mxu3 }
 0x2a4   : > { %3103 = vst [vmem:[%s4166_s29 + $0x48] sm:$0xff] %v3048_v24   ;;  %v2455_v5 = vadd.f32 %v2454_v7, %v2424_v17  ;;  %v2154_v30 = vadd.f32 %v2153_v19, %v2064_v31 }
 0x2a6   : > { %v2243_v4 = vadd.f32 %v2242_v57, %v2154_v30  ;;  %v4364_v57 = vld [vmem:[#allocation24_spill] sm:$0xff] }
 0x2a7   : > { %v2249_v3 = vpop.f32.mrf.mxu0 }
 0x2a8   : > { %v2292_v28 = vadd.f32 %v2243_v4, %v1812_v10  ;;  %v4367_v4 = vld [vmem:[#allocation10_spill] sm:$0xff] }
 0x2a9   : > { %v2066_v32 = vpop.f32.mrf.mxu2  ;;  %v1816_v33 = vpop.f32.mrf.mxu1 }
 0x2aa   : > { %v2387_v2 = vadd.f32 %v2386_v39, %v2292_v28  ;;  %v2425_v23 = vmul.f32 %v2292_v28, %v2292_v28  ;;  %v1817_v42 = vadd.f32 %v1816_v33, %v4364_v57 }
 0x2ab   : > { %v2155_v63 = vpop.f32.mrf.mxu3 }
 0x2ac   : > { %v2456_v11 = vadd.f32 %v2455_v5, %v2425_v23  ;;  %v2156_v41 = vadd.f32 %v2155_v63, %v2066_v32 }
 0x2ae   : > { %v2245_v52 = vadd.f32 %v2244_v16, %v2156_v41 }
 0x2af   : > { %v2252_v40 = vpop.f32.mrf.mxu0 }
 0x2b0   : > { %v2293_v46 = vadd.f32 %v2245_v52, %v1814_v45 }
 0x2b1   : > { %v2069_v53 = vpop.f32.mrf.mxu2  ;;  %v1818_v34 = vpop.f32.mrf.mxu1 }
 0x2b2   : > { %v3053_v26 = vpack.c.bf16 %v2293_v46, %v2292_v28  ;;  %v2388_v54 = vadd.f32 %v2387_v2, %v2293_v46  ;;  %v2426_v38 = vmul.f32 %v2293_v46, %v2293_v46  ;;  %v1819_v58 = vadd.f32 %v1818_v34, %v4365_v50 }
 0x2b3   : > { %v2158_v44 = vpop.f32.mrf.mxu3 }
 0x2b4   : > { %3104 = vst [vmem:[%s4166_s29 + $0x50] sm:$0xff] %v3053_v26   ;;  %v2457_v20 = vadd.f32 %v2456_v11, %v2426_v38  ;;  %v2159_v37 = vadd.f32 %v2158_v44, %v2069_v53 }
 0x2b6   : > { %v2248_v14 = vadd.f32 %v2247_v29, %v2159_v37 }
 0x2b7   : > { %v2254_v21 = vpop.f32.mrf.mxu0 }
 0x2b8   : > { %v2294_v60 = vadd.f32 %v2248_v14, %v1817_v42  ;;  %v4368_v42 = vld [vmem:[#allocation13_spill] sm:$0xff] }
 0x2b9   : > { %v2071_v35 = vpop.f32.mrf.mxu2  ;;  %v1821_v0 = vpop.f32.mrf.mxu1 }
 0x2ba   : > { %v2389_v62 = vadd.f32 %v2388_v54, %v2294_v60  ;;  %v2427_v15 = vmul.f32 %v2294_v60, %v2294_v60  ;;  %v1822_v31 = vadd.f32 %v1821_v0, %v4366_v47 }
 0x2bb   : > { %v2160_v13 = vpop.f32.mrf.mxu3 }
 0x2bc   : > { %v2458_v12 = vadd.f32 %v2457_v20, %v2427_v15  ;;  %v2161_v36 = vadd.f32 %v2160_v13, %v2071_v35 }
 0x2be   : > { %v2250_v16 = vadd.f32 %v2249_v3, %v2161_v36 }
 0x2bf   : > { %v2257_v30 = vpop.f32.mrf.mxu0 }
 0x2c0   : > { %v2295_v51 = vadd.f32 %v2250_v16, %v1819_v58 }
 0x2c1   : > { %v2074_v61 = vpop.f32.mrf.mxu2  ;;  %v1823_v6 = vpop.f32.mrf.mxu1 }
 0x2c2   : > { %v3058_v8 = vpack.c.bf16 %v2295_v51, %v2294_v60  ;;  %v2390_v7 = vadd.f32 %v2389_v62, %v2295_v51  ;;  %v2428_v27 = vmul.f32 %v2295_v51, %v2295_v51  ;;  %v1824_v28 = vadd.f32 %v1823_v6, %v4367_v4 }
 0x2c3   : > { %v2163_v55 = vpop.f32.mrf.mxu3 }
 0x2c4   : > { %3105 = vst [vmem:[%s4166_s29 + $0x58] sm:$0xff] %v3058_v8   ;;  %v2459_v22 = vadd.f32 %v2458_v12, %v2428_v27  ;;  %v2164_v43 = vadd.f32 %v2163_v55, %v2074_v61 }
 0x2c6   : > { %v2253_v48 = vadd.f32 %v2252_v40, %v2164_v43 }
 0x2c7   : > { %v2259_v52 = vpop.f32.mrf.mxu0 }
 0x2c8   : > { %v2296_v24 = vadd.f32 %v2253_v48, %v1822_v31 }
 0x2c9   : > { %v2076_v39 = vpop.f32.mrf.mxu2  ;;  %v1826_v17 = vpop.f32.mrf.mxu1 }
 0x2ca   : > { %v2391_v29 = vadd.f32 %v2390_v7, %v2296_v24  ;;  %v2429_v19 = vmul.f32 %v2296_v24, %v2296_v24  ;;  %v1827_v46 = vadd.f32 %v1826_v17, %v4127_v9 }
 0x2cb   : > { %v2165_v5 = vpop.f32.mrf.mxu3 }
 0x2cc   : > { %v2460_v56 = vadd.f32 %v2459_v22, %v2429_v19  ;;  %v2166_v10 = vadd.f32 %v2165_v5, %v2076_v39 }
 0x2ce   : > { %v2255_v32 = vadd.f32 %v2254_v21, %v2166_v10 }
 0x2cf   : > { %v2262_v60 = vpop.f32.mrf.mxu0 }
 0x2d0   : > { %v2297_v33 = vadd.f32 %v2255_v32, %v1824_v28 }
 0x2d1   : > { %v2079_v2 = vpop.f32.mrf.mxu2  ;;  %v1828_v3 = vpop.f32.mrf.mxu1 }
 0x2d2   : > { %v3063_v23 = vpack.c.bf16 %v2297_v33, %v2296_v24  ;;  %v2392_v63 = vadd.f32 %v2391_v29, %v2297_v33  ;;  %v2430_v11 = vmul.f32 %v2297_v33, %v2297_v33  ;;  %v1829_v14 = vadd.f32 %v1828_v3, %v4368_v42 }
 0x2d3   : > { %v2168_v41 = vpop.f32.mrf.mxu3 }
 0x2d4   : > { %3106 = vst [vmem:[%s4166_s29 + $0x60] sm:$0xff] %v3063_v23   ;;  %v2461_v18 = vadd.f32 %v2460_v56, %v2430_v11  ;;  %v2169_v45 = vadd.f32 %v2168_v41, %v2079_v2 }
 0x2d6   : > { %v2258_v53 = vadd.f32 %v2257_v30, %v2169_v45 }
 0x2d7   : > { %v2264_v21 = vpop.f32.mrf.mxu0 }
 0x2d8   : > { %v2298_v34 = vadd.f32 %v2258_v53, %v1827_v46 }
 0x2d9   : > { %v2081_v26 = vpop.f32.mrf.mxu2  ;;  %v1831_v57 = vpop.f32.mrf.mxu1 }
 0x2da   : > { %v2393_v54 = vadd.f32 %v2392_v63, %v2298_v34  ;;  %v2431_v38 = vmul.f32 %v2298_v34, %v2298_v34  ;;  %v1832_v50 = vadd.f32 %v1831_v57, %v4137_v1 }
 0x2db   : > { %v2170_v44 = vpop.f32.mrf.mxu3 }
 0x2dc   : > { %v2462_v20 = vadd.f32 %v2461_v18, %v2431_v38  ;;  %v2171_v37 = vadd.f32 %v2170_v44, %v2081_v26 }
 0x2de   : > { %v2260_v40 = vadd.f32 %v2259_v52, %v2171_v37 }
 0x2df   : > { %v2267_v17 = vpop.f32.mrf.mxu0 }
 0x2e0   : > { %v2299_v35 = vadd.f32 %v2260_v40, %v1829_v14 }
 0x2e1   : > { %v2084_v0 = vpop.f32.mrf.mxu2  ;;  %v1833_v16 = vpop.f32.mrf.mxu1 }
 0x2e2   : > { %v3068_v62 = vpack.c.bf16 %v2299_v35, %v2298_v34  ;;  %v2394_v15 = vadd.f32 %v2393_v54, %v2299_v35  ;;  %v2432_v13 = vmul.f32 %v2299_v35, %v2299_v35  ;;  %v1834_v22 = vadd.f32 %v1833_v16, %v4142_v59 }
 0x2e3   : > { %v2173_v9 = vpop.f32.mrf.mxu3 }
 0x2e4   : > { %3107 = vst [vmem:[%s4166_s29 + $0x68] sm:$0xff] %v3068_v62   ;;  %v2463_v12 = vadd.f32 %v2462_v20, %v2432_v13  ;;  %v2174_v36 = vadd.f32 %v2173_v9, %v2084_v0 }
 0x2e6   : > { %v2263_v58 = vadd.f32 %v2262_v60, %v2174_v36 }
 0x2e7   : > { %v2269_v63 = vpop.f32.mrf.mxu0 }
 0x2e8   : > { %v2300_v51 = vadd.f32 %v2263_v58, %v1832_v50 }
 0x2e9   : > { %v2086_v61 = vpop.f32.mrf.mxu2  ;;  %v1836_v31 = vpop.f32.mrf.mxu1 }
 0x2ea   : > { %v2395_v6 = vadd.f32 %v2394_v15, %v2300_v51  ;;  %v2433_v8 = vmul.f32 %v2300_v51, %v2300_v51  ;;  %v1837_v30 = vadd.f32 %v1836_v31, %v4147_v49 }
 0x2eb   : > { %v2175_v7 = vpop.f32.mrf.mxu3 }
 0x2ec   : > { %v2464_v27 = vadd.f32 %v2463_v12, %v2433_v8  ;;  %v2176_v55 = vadd.f32 %v2175_v7, %v2086_v61 }
 0x2ee   : > { %v2265_v43 = vadd.f32 %v2264_v21, %v2176_v55 }
 0x2f0   : > { %v2301_v47 = vadd.f32 %v2265_v43, %v1834_v22 }
 0x2f1   : > { %v2089_v48 = vpop.f32.mrf.mxu2  ;;  %v1838_v32 = vpop.f32.mrf.mxu1 }
 0x2f2   : > { %v3073_v24 = vpack.c.bf16 %v2301_v47, %v2300_v51  ;;  %v2396_v39 = vadd.f32 %v2395_v6, %v2301_v47  ;;  %v2434_v1 = vmul.f32 %v2301_v47, %v2301_v47  ;;  %v1839_v11 = vadd.f32 %v1838_v32, %v4152_v25 }
 0x2f3   : > { %v2178_v29 = vpop.f32.mrf.mxu3 }
 0x2f4   : > { %3108 = vst [vmem:[%s4166_s29 + $0x70] sm:$0xff] %v3073_v24   ;;  %v2465_v19 = vadd.f32 %v2464_v27, %v2434_v1  ;;  %v2179_v5 = vadd.f32 %v2178_v29, %v2089_v48 }
 0x2f6   : > { %v2268_v56 = vadd.f32 %v2267_v17, %v2179_v5 }
 0x2f8   : > { %v2302_v10 = vadd.f32 %v2268_v56, %v1837_v30 }
 0x2f9   : > { %v2091_v4 = vpop.f32.mrf.mxu2 }
 0x2fa   : > { %v2397_v28 = vadd.f32 %v2396_v39, %v2302_v10  ;;  %v2435_v59 = vmul.f32 %v2302_v10, %v2302_v10 }
 0x2fb   : > { %v2180_v33 = vpop.f32.mrf.mxu3 }
 0x2fc   : > { %v2466_v2 = vadd.f32 %v2465_v19, %v2435_v59  ;;  %v2181_v23 = vadd.f32 %v2180_v33, %v2091_v4 }
 0x2fe   : > { %v2270_v41 = vadd.f32 %v2269_v63, %v2181_v23 }
 0x300   : > { %v2303_v3 = vadd.f32 %v2270_v41, %v1839_v11 }
 0x302   : > { %v3078_v18 = vpack.c.bf16 %v2303_v3, %v2302_v10  ;;  %v2398_v45 = vadd.f32 %v2397_v28, %v2303_v3  ;;  %v2436_v49 = vmul.f32 %v2303_v3, %v2303_v3 }
 0x304   : > { %3109 = vst [vmem:[%s4166_s29 + $0x78] sm:$0xff] %v3078_v18   ;;  %v2399_v52 = vrot.slane %v2398_v45, 4  ;;  %v2467_v46 = vadd.f32 %v2466_v2, %v2436_v49 }
 0x306   : > { %v2400_v53 = vadd.f32 %v2399_v52, %v2398_v45  ;;  %v2468_v34 = vrot.slane %v2467_v46, 4 }
 0x308   : > { %v2401_v26 = vrot.slane %v2400_v53, 2  ;;  %v2469_v54 = vadd.f32 %v2468_v34, %v2467_v46 }
 0x30a   : > { %v2402_v38 = vadd.f32 %v2401_v26, %v2400_v53  ;;  %v2470_v44 = vrot.slane %v2469_v54, 2 }
 0x30c   : > { %v2403_v20 = vrot.slane %v2402_v38, 1  ;;  %v2471_v37 = vadd.f32 %v2470_v44, %v2469_v54 }
 0x30e   : > { %v2472_v25 = vrot.slane %v2471_v37, 1  ;;  %v2404_v57 = vadd.f32 %v2403_v20, %v2402_v38 }
 0x310   : > { %v2473_v42 = vadd.f32 %v2472_v25, %v2471_v37 }
 0x312   : > { %v2475_v14 = vsel %vm2474_vm2, %v2404_v57, %v2473_v42 }
 0x313   : > { %2476 = vst [vmem:[%s238_s7] sm:$0x3] %v2475_v14 }
 0x314 PF: > { %s16_s18 = sadd.s32 1, %s3152_s18  }
 0x315   : > { %p13_p5 = scmp.ge.s32.totalorder %s16_s18, 4  }
 0x317   :  { %15 = sbr.rel (!%p13_p5) target bundleno = 1 (0x1), region = 80 }

</bundles_post_ra>
